<compile_context>
chip_gen: v7x
topology: tpu7x:2x2x1
jax: 0.10.0
libtpu: 0.0.40
codegen_flags: <defaults>
</compile_context>

<pallas_src>
import math

import numpy as np
import jax
import jax.numpy as jnp
from jax import lax
from jax.experimental import pallas as pl
from jax.experimental.pallas import tpu as pltpu

C = 8        # base_filter
KS = 6       # kernel size
STRIDE = 2   # stride  (deconv: x2 upsample, conv: /2 downsample)
PAD = 2      # padding


# -----------------------------------------------------------------------------
# In-kernel building blocks (traced inside the Pallas kernel bodies)
# -----------------------------------------------------------------------------
def _shift_cols(a, d):
    """b[:, m] = a[:, (m + d) % M]  (circular column shift, static d)."""
    m = a.shape[1]
    d = d % m
    if d == 0:
        return a
    return jnp.concatenate([a[:, d:], a[:, :d]], axis=1)


def _layer(a, mk_ref, w_img, w_ref, b_ref, alpha, res=None):
    """prelu( sum_t W[t] @ (shift_t(a) * mask_t) + b ) (+ res).

    a:      (Cin, M)   activation, columns = flattened (image, y, x)
    mk_ref: (9, 1, M)  per-tap validity masks (zero padding of the 3x3 window)
    w_ref:  (9, Cout, Cin) per-tap weight slabs
    b_ref:  (Cout, 1) bias column; alpha: scalar PReLU slope (SMEM)
    Wrapped columns produced by the circular shift are always masked (proof:
    a wrap requires y+di or x+dj to fall outside the image), so this is an
    exact in-VMEM im2col + matmul, contracted tap-by-tap on the MXU.
    """
    cout = w_ref.shape[1]
    mt = a.shape[1]
    acc = jnp.zeros((cout, mt), jnp.float32)
    t = 0
    for di in (-1, 0, 1):
        for dj in (-1, 0, 1):
            d = di * w_img + dj
            tap = a if d == 0 else _shift_cols(a, d) * mk_ref[t]
            acc = acc + jnp.dot(w_ref[t], tap, preferred_element_type=jnp.float32)
            t += 1
    y = acc + b_ref[...]
    y = jnp.where(y >= 0.0, y, alpha * y)
    return y if res is None else y + res


def _up_kernel(w_img):
    # x (C, M) plain low-res  ->  o (4C, M) sub-pixel phases of the 2x image
    def kernel(al_ref, w1, b1, w2, b2, w3, b3, mk, x_ref, o_ref):
        x = x_ref[...]
        h0 = _layer(x, mk, w_img, w1, b1, al_ref[0])                       # deconv1 (phases)
        l0 = _layer(h0, mk, w_img, w2, b2, al_ref[1])                      # conv2 (on phases)
        o_ref[...] = _layer(l0 - x, mk, w_img, w3, b3, al_ref[2], res=h0)  # deconv3 + h0
    return kernel


def _down_kernel(w_img):
    # x (4C, M) phases of the 2x image  ->  o (C, M) low-res image
    def kernel(al_ref, w1, b1, w2, b2, w3, b3, mk, x_ref, o_ref):
        x = x_ref[...]
        l0 = _layer(x, mk, w_img, w1, b1, al_ref[0])                       # conv1 (on phases)
        h0 = _layer(l0, mk, w_img, w2, b2, al_ref[1])                      # deconv2 (phases)
        o_ref[...] = _layer(h0 - x, mk, w_img, w3, b3, al_ref[2], res=l0)  # conv3 + l0
    return kernel


# -----------------------------------------------------------------------------
# pallas_call wrapper (grid over the batch dimension)
# -----------------------------------------------------------------------------
def _tap_masks(h, wd, n_img):
    """(9, 1, n_img*h*wd) f32: 3x3-tap validity per flattened pixel (zero pad)."""
    m = np.arange(n_img * h * wd)
    xx = m % wd
    yy = (m // wd) % h
    rows = []
    for di in (-1, 0, 1):
        for dj in (-1, 0, 1):
            ok = (yy + di >= 0) & (yy + di < h) & (xx + dj >= 0) & (xx + dj < wd)
            rows.append(ok.astype(np.float32))
    return jnp.asarray(np.stack(rows, 0)[:, None, :])


def _run_block(kernel_fn, x_flat, masks, wts, alphas, cout, grid_n, cols):
    cin, mtot = x_flat.shape
    assert grid_n * cols == mtot
    w1, b1, w2, b2, w3, b3 = wts

    def _full2(shape):
        return pl.BlockSpec(shape, lambda n: (0, 0))

    def _full3(shape):
        return pl.BlockSpec(shape, lambda n: (0, 0, 0))

    in_specs = [
        pl.BlockSpec(memory_space=pltpu.MemorySpace.SMEM),   # PReLU alphas (3,)
        _full3(w1.shape), _full2(b1.shape),
        _full3(w2.shape), _full2(b2.shape),
        _full3(w3.shape), _full2(b3.shape),
        _full3(masks.shape),                                 # (9, 1, cols)
        pl.BlockSpec((cin, cols), lambda n: (0, n)),         # one image per step
    ]
    out_specs = pl.BlockSpec((cout, cols), lambda n: (0, n))  # lane-dense output
    return pl.pallas_call(
        kernel_fn,
        out_shape=jax.ShapeDtypeStruct((cout, mtot), jnp.float32),
        grid=(grid_n,),
        in_specs=in_specs,
        out_specs=out_specs,
        compiler_params=pltpu.CompilerParams(
            dimension_semantics=("parallel",)),
    )(alphas, w1, b1, w2, b2, w3, b3, masks, x_flat)


def up_block(x_cnhw, p):
    """x (C, N, H, W) plain -> (4C, N*H*W) phase layout of the 2x image."""
    c, n, h, wd = x_cnhw.shape
    hw = h * wd
    grid_n = n if hw % 128 == 0 else 1   # per-image blocks when lane-aligned
    per = n // grid_n
    masks = _tap_masks(h, wd, per)
    x_flat = x_cnhw.reshape(c, n * hw)
    wts = (p["dc1"]["wt3"], p["dc1"]["bcol"],
           p["c2"]["wt3"], p["c2"]["bcol"],
           p["dc3"]["wt3"], p["dc3"]["bcol"])
    return _run_block(_up_kernel(wd), x_flat, masks, wts, p["alphas"],
                      cout=4 * c, grid_n=grid_n, cols=per * hw)


def down_block(xp_flat, dims, p):
    """xp (4C, N*H*W) phase layout of the 2x image -> (C, N*H*W) low-res."""
    n, h, wd = dims
    c = xp_flat.shape[0] // 4
    hw = h * wd
    grid_n = n if hw % 128 == 0 else 1
    per = n // grid_n
    masks = _tap_masks(h, wd, per)
    wts = (p["c1"]["wt3"], p["c1"]["bcol"],
           p["dc2"]["wt3"], p["dc2"]["bcol"],
           p["c3"]["wt3"], p["c3"]["bcol"])
    return _run_block(_down_kernel(wd), xp_flat, masks, wts, p["alphas"],
                      cout=c, grid_n=grid_n, cols=per * hw)


def _phase_to_image(yp, n, h, wd):
    """(4C, N*H*W) phases (row = c*4 + pr*2 + pc) -> (C, N, 2H, 2W) image."""
    c = yp.shape[0] // 4
    y = yp.reshape(c, 2, 2, n, h, wd)
    y = jnp.transpose(y, (0, 3, 4, 1, 5, 2))
    return y.reshape(c, n, 2 * h, 2 * wd)


def pbpn_block(x_nchw, params, num_expand):
    x = jnp.transpose(x_nchw, (1, 0, 2, 3))            # NCHW -> CNHW
    c, n, h, wd = x.shape
    h2p = up_block(x, params["up"])                     # phases of the 2x image
    h2 = _phase_to_image(h2p, n, h, wd)                 # (C, N, 2H, 2W)
    if num_expand == 1:
        l1d = down_block(h2p, (n, h, wd), params["down"]).reshape(c, n, h, wd)
        outs = [jnp.concatenate([x, l1d], axis=0), h2]
    elif num_expand == 2:
        # TODO(synk): down_block(h2p) / down_block(h4p) share weights and could
        # be batched into a single pallas_call (v7x feedback item).
        h4p = up_block(h2, params["up"])
        h4 = _phase_to_image(h4p, n, 2 * h, 2 * wd)
        l2 = down_block(h4p, (n, 2 * h, 2 * wd),
                        params["down"]).reshape(c, n, 2 * h, 2 * wd)
        l1d = down_block(h2p, (n, h, wd), params["down"]).reshape(c, n, h, wd)
        outs = [jnp.concatenate([x, l1d], axis=0), h2, h4, l2]
    else:
        # TODO(synk): num_expand == 0 calls self.conv, which PBPNBlock.__init__
        # never defines (would raise AttributeError in PyTorch as well).
        raise NotImplementedError("num_expand == 0 is undefined in the reference")
    return [jnp.transpose(o, (1, 0, 2, 3)) for o in outs]   # back to NCHW


# -----------------------------------------------------------------------------
# Weight rearrangement (trace-time numpy; runs once at init)
# -----------------------------------------------------------------------------
def _deconv_wt3(w):
    """torch ConvTranspose2d weight (Cin, Cout, 6, 6) -> (9, 4*Cout, Cin).

    out[t, co*4 + pr*2 + pc, ci] = w[ci, co, 2a+pr, 2b+pc] with tap t =
    (di+1)*3 + (dj+1), a = 1-di, b = 1-dj; i.e. the x2-upsampled output phase
    (pr, pc) is a 3x3 / stride-1 / pad-1 correlation of the undilated input.
    """
    w = np.asarray(w, np.float32)
    ci, co = w.shape[0], w.shape[1]
    out = np.zeros((9, 4 * co, ci), np.float32)
    for di in (-1, 0, 1):
        for dj in (-1, 0, 1):
            t = (di + 1) * 3 + (dj + 1)
            a, b = 1 - di, 1 - dj
            for pr in range(2):
                for pc in range(2):
                    out[t, pr * 2 + pc::4, :] = w[:, :, 2 * a + pr, 2 * b + pc].T
    return jnp.asarray(out)


def _conv_wt3(w):
    """torch Conv2d weight (Cout, Cin, 6, 6) -> (9, Cout, 4*Cin).

    out[t, co, cin*4 + pi*2 + pj] = w[co, cin, 2ai+pi, 2aj+pj] with t = ai*3+aj;
    i.e. the stride-2 6x6 conv applied directly to the sub-pixel phase layout
    as a 3x3 / stride-1 / pad-1 conv with 4*Cin input channels.
    """
    w = np.asarray(w, np.float32)
    co, ci = w.shape[0], w.shape[1]
    out = np.zeros((9, co, 4 * ci), np.float32)
    for ai in range(3):
        for aj in range(3):
            t = ai * 3 + aj
            for pi in range(2):
                for pj in range(2):
                    out[t, :, pi * 2 + pj::4] = w[:, :, 2 * ai + pi, 2 * aj + pj]
    return jnp.asarray(out)


# -----------------------------------------------------------------------------
# pure-JAX reference (ground truth for the self-test)
# -----------------------------------------------------------------------------
def _prelu(x, a):
    return jnp.where(x >= 0, x, a * x)


def conv_ref(x, p):
    y = lax.conv_general_dilated(x, p["w"], (STRIDE, STRIDE), [(PAD, PAD)] * 2,
                                 dimension_numbers=("NCHW", "OIHW", "NCHW"),
                                 precision=lax.Precision.HIGHEST)
    return _prelu(y + p["b"][None, :, None, None], p["alpha"][0])


def deconv_ref(x, p):
    w2 = jnp.transpose(p["w"], (1, 0, 2, 3))[:, :, ::-1, ::-1]
    pe = KS - 1 - PAD
    y = lax.conv_general_dilated(x, w2, (1, 1), [(pe, pe)] * 2,
                                 lhs_dilation=(STRIDE, STRIDE),
                                 dimension_numbers=("NCHW", "OIHW", "NCHW"),
                                 precision=lax.Precision.HIGHEST)
    return _prelu(y + p["b"][None, :, None, None], p["alpha"][0])


def up_ref(x, p):
    h0 = deconv_ref(x, p["dc1"])
    l0 = conv_ref(h0, p["c2"])
    return deconv_ref(l0 - x, p["dc3"]) + h0


def down_ref(x, p):
    l0 = conv_ref(x, p["c1"])
    h0 = deconv_ref(l0, p["dc2"])
    return conv_ref(h0 - x, p["c3"]) + l0


def pbpn_ref(x, params, num_expand):
    h2 = up_ref(x, params["up"])
    if num_expand == 1:
        return [jnp.concatenate([x, down_ref(h2, params["down"])], axis=1), h2]
    h4 = up_ref(h2, params["up"])
    l2 = down_ref(h4, params["down"])
    l1 = jnp.concatenate([x, down_ref(h2, params["down"])], axis=1)
    return [l1, h2, h4, l2]


# -----------------------------------------------------------------------------
# parameter init
# -----------------------------------------------------------------------------
def _init_layer(key, transposed):
    k1, k2 = jax.random.split(key)
    scale = 1.0 / math.sqrt(C * KS * KS)
    w = jax.random.normal(k1, (C, C, KS, KS), jnp.float32) * scale
    b = jax.random.normal(k2, (C,), jnp.float32) * scale
    alpha = jnp.full((1,), 0.25, jnp.float32)        # PyTorch PReLU default
    if transposed:
        wt3 = _deconv_wt3(w)                         # (9, 4C, C)
        bcol = jnp.repeat(b, 4).reshape(4 * C, 1)    # per (c, phase) row
    else:
        wt3 = _conv_wt3(w)                           # (9, C, 4C)
        bcol = b.reshape(C, 1)
    return {"w": w, "b": b, "alpha": alpha, "wt3": wt3, "bcol": bcol}


def init_params(key):
    ks = jax.random.split(key, 6)
    up = {"dc1": _init_layer(ks[0], True),
          "c2": _init_layer(ks[1], False),
          "dc3": _init_layer(ks[2], True)}
    up["alphas"] = jnp.concatenate(
        [up["dc1"]["alpha"], up["c2"]["alpha"], up["dc3"]["alpha"]])
    down = {"c1": _init_layer(ks[3], False),
            "dc2": _init_layer(ks[4], True),
            "c3": _init_layer(ks[5], False)}
    down["alphas"] = jnp.concatenate(
        [down["c1"]["alpha"], down["dc2"]["alpha"], down["c3"]["alpha"]])
    return {"up": up, "down": down}


# -----------------------------------------------------------------------------
# main
# -----------------------------------------------------------------------------
if __name__ == "__main__":
    root = jax.random.PRNGKey(0)
    kx, kp = jax.random.split(root)
    x = jax.random.normal(kx, (2, C, 16, 16), jnp.float32)   # NCHW input
    params = init_params(kp)

    fwd = jax.jit(pbpn_block, static_argnums=2)

    for ne in (1, 2):
        outs = fwd(x, params, ne)
        outs = [jax.block_until_ready(o) for o in outs]
        refs = pbpn_ref(x, params, ne)
        assert len(outs) == len(refs)
        for o, r in zip(outs, refs):
            assert o.shape == r.shape, (o.shape, r.shape)
            err = float(jnp.max(jnp.abs(o - r)) / (jnp.max(jnp.abs(r)) + 1e-6))
            assert err < 2e-2, err

    print("KERNEL_OK")
</pallas_src>

<mosaic_0001>
module attributes {stable_mosaic.version = 11 : i64} {
  func.func @kernel(%arg0: i32, %arg1: memref<3xf32, #tpu.memory_space<smem>>, %arg2: memref<9x32x8xf32, #tpu.memory_space<vmem>>, %arg3: memref<32x1xf32, #tpu.memory_space<vmem>>, %arg4: memref<9x8x32xf32, #tpu.memory_space<vmem>>, %arg5: memref<8x1xf32, #tpu.memory_space<vmem>>, %arg6: memref<9x32x8xf32, #tpu.memory_space<vmem>>, %arg7: memref<32x1xf32, #tpu.memory_space<vmem>>, %arg8: memref<9x1x256xf32, #tpu.memory_space<vmem>>, %arg9: memref<8x256xf32, #tpu.memory_space<vmem>>, %arg10: memref<32x256xf32, #tpu.memory_space<vmem>>) attributes {dimension_semantics = [#tpu.dimension_semantics<parallel>], iteration_bounds = array<i64: 2>, scalar_prefetch = 0 : i64, scratch_operands = 0 : i64, tpu.core_type = #tpu.core_type<tc>, window_params = [{transform_indices = @transform_0, window_bounds = array<i64: 3>}, {pipeline_mode = #tpu.pipeline_mode<synchronous>, transform_indices = @transform_1, window_bounds = array<i64: 9, 32, 8>}, {pipeline_mode = #tpu.pipeline_mode<synchronous>, transform_indices = @transform_2, window_bounds = array<i64: 32, 1>}, {pipeline_mode = #tpu.pipeline_mode<synchronous>, transform_indices = @transform_3, window_bounds = array<i64: 9, 8, 32>}, {pipeline_mode = #tpu.pipeline_mode<synchronous>, transform_indices = @transform_4, window_bounds = array<i64: 8, 1>}, {pipeline_mode = #tpu.pipeline_mode<synchronous>, transform_indices = @transform_5, window_bounds = array<i64: 9, 32, 8>}, {pipeline_mode = #tpu.pipeline_mode<synchronous>, transform_indices = @transform_6, window_bounds = array<i64: 32, 1>}, {pipeline_mode = #tpu.pipeline_mode<synchronous>, transform_indices = @transform_7, window_bounds = array<i64: 9, 1, 256>}, {transform_indices = @transform_8, window_bounds = array<i64: 8, 256>}, {transform_indices = @transform_9, window_bounds = array<i64: 32, 256>}]} {
    %c0 = arith.constant 0 : index
    %c0_0 = arith.constant 0 : index
    %0 = vector.load %arg9[%c0, %c0_0] : memref<8x256xf32, #tpu.memory_space<vmem>>, vector<8x256xf32>
    %c0_1 = arith.constant 0 : index
    %1 = memref.load %arg1[%c0_1] : memref<3xf32, #tpu.memory_space<smem>>
    %cst = arith.constant 0.000000e+00 : f32
    %2 = vector.broadcast %cst : f32 to vector<32x256xf32>
    %3 = vector.extract_strided_slice %0 {offsets = [0, 239], sizes = [8, 17], strides = [1, 1]} : vector<8x256xf32> to vector<8x17xf32>
    %4 = vector.extract_strided_slice %0 {offsets = [0, 0], sizes = [8, 239], strides = [1, 1]} : vector<8x256xf32> to vector<8x239xf32>
    %5 = tpu.concatenate %3, %4 in 1 : vector<8x17xf32>, vector<8x239xf32> -> vector<8x256xf32>
    %c0_2 = arith.constant 0 : index
    %c0_3 = arith.constant 0 : index
    %c0_4 = arith.constant 0 : index
    %6 = vector.load %arg8[%c0_2, %c0_3, %c0_4] : memref<9x1x256xf32, #tpu.memory_space<vmem>>, vector<1x1x256xf32>
    %7 = vector.shape_cast %6 : vector<1x1x256xf32> to vector<1x256xf32>
    %8 = vector.broadcast %7 : vector<1x256xf32> to vector<8x256xf32>
    %9 = arith.mulf %5, %8 : vector<8x256xf32>
    %c0_5 = arith.constant 0 : index
    %c0_6 = arith.constant 0 : index
    %c0_7 = arith.constant 0 : index
    %10 = vector.load %arg2[%c0_5, %c0_6, %c0_7] : memref<9x32x8xf32, #tpu.memory_space<vmem>>, vector<1x32x8xf32>
    %11 = vector.shape_cast %10 : vector<1x32x8xf32> to vector<32x8xf32>
    %cst_8 = arith.constant dense<0.000000e+00> : vector<32x256xf32>
    %12 = tpu.matmul %11, %9, %cst_8 {dimension_numbers = #tpu.dot_dimension_numbers<[1], [0], [0], [1], [0, 0, 1, 1], [], []>} : vector<32x8xf32>, vector<8x256xf32>, vector<32x256xf32> -> vector<32x256xf32>
    %13 = arith.addf %2, %12 : vector<32x256xf32>
    %14 = vector.extract_strided_slice %0 {offsets = [0, 240], sizes = [8, 16], strides = [1, 1]} : vector<8x256xf32> to vector<8x16xf32>
    %15 = vector.extract_strided_slice %0 {offsets = [0, 0], sizes = [8, 240], strides = [1, 1]} : vector<8x256xf32> to vector<8x240xf32>
    %16 = tpu.concatenate %14, %15 in 1 : vector<8x16xf32>, vector<8x240xf32> -> vector<8x256xf32>
    %c1 = arith.constant 1 : index
    %c0_9 = arith.constant 0 : index
    %c0_10 = arith.constant 0 : index
    %17 = vector.load %arg8[%c1, %c0_9, %c0_10] : memref<9x1x256xf32, #tpu.memory_space<vmem>>, vector<1x1x256xf32>
    %18 = vector.shape_cast %17 : vector<1x1x256xf32> to vector<1x256xf32>
    %19 = vector.broadcast %18 : vector<1x256xf32> to vector<8x256xf32>
    %20 = arith.mulf %16, %19 : vector<8x256xf32>
    %c1_11 = arith.constant 1 : index
    %c0_12 = arith.constant 0 : index
    %c0_13 = arith.constant 0 : index
    %21 = vector.load %arg2[%c1_11, %c0_12, %c0_13] : memref<9x32x8xf32, #tpu.memory_space<vmem>>, vector<1x32x8xf32>
    %22 = vector.shape_cast %21 : vector<1x32x8xf32> to vector<32x8xf32>
    %cst_14 = arith.constant dense<0.000000e+00> : vector<32x256xf32>
    %23 = tpu.matmul %22, %20, %cst_14 {dimension_numbers = #tpu.dot_dimension_numbers<[1], [0], [0], [1], [0, 0, 1, 1], [], []>} : vector<32x8xf32>, vector<8x256xf32>, vector<32x256xf32> -> vector<32x256xf32>
    %24 = arith.addf %13, %23 : vector<32x256xf32>
    %25 = vector.extract_strided_slice %0 {offsets = [0, 241], sizes = [8, 15], strides = [1, 1]} : vector<8x256xf32> to vector<8x15xf32>
    %26 = vector.extract_strided_slice %0 {offsets = [0, 0], sizes = [8, 241], strides = [1, 1]} : vector<8x256xf32> to vector<8x241xf32>
    %27 = tpu.concatenate %25, %26 in 1 : vector<8x15xf32>, vector<8x241xf32> -> vector<8x256xf32>
    %c2 = arith.constant 2 : index
    %c0_15 = arith.constant 0 : index
    %c0_16 = arith.constant 0 : index
    %28 = vector.load %arg8[%c2, %c0_15, %c0_16] : memref<9x1x256xf32, #tpu.memory_space<vmem>>, vector<1x1x256xf32>
    %29 = vector.shape_cast %28 : vector<1x1x256xf32> to vector<1x256xf32>
    %30 = vector.broadcast %29 : vector<1x256xf32> to vector<8x256xf32>
    %31 = arith.mulf %27, %30 : vector<8x256xf32>
    %c2_17 = arith.constant 2 : index
    %c0_18 = arith.constant 0 : index
    %c0_19 = arith.constant 0 : index
    %32 = vector.load %arg2[%c2_17, %c0_18, %c0_19] : memref<9x32x8xf32, #tpu.memory_space<vmem>>, vector<1x32x8xf32>
    %33 = vector.shape_cast %32 : vector<1x32x8xf32> to vector<32x8xf32>
    %cst_20 = arith.constant dense<0.000000e+00> : vector<32x256xf32>
    %34 = tpu.matmul %33, %31, %cst_20 {dimension_numbers = #tpu.dot_dimension_numbers<[1], [0], [0], [1], [0, 0, 1, 1], [], []>} : vector<32x8xf32>, vector<8x256xf32>, vector<32x256xf32> -> vector<32x256xf32>
    %35 = arith.addf %24, %34 : vector<32x256xf32>
    %36 = vector.extract_strided_slice %0 {offsets = [0, 255], sizes = [8, 1], strides = [1, 1]} : vector<8x256xf32> to vector<8x1xf32>
    %37 = vector.extract_strided_slice %0 {offsets = [0, 0], sizes = [8, 255], strides = [1, 1]} : vector<8x256xf32> to vector<8x255xf32>
    %38 = tpu.concatenate %36, %37 in 1 : vector<8x1xf32>, vector<8x255xf32> -> vector<8x256xf32>
    %c3 = arith.constant 3 : index
    %c0_21 = arith.constant 0 : index
    %c0_22 = arith.constant 0 : index
    %39 = vector.load %arg8[%c3, %c0_21, %c0_22] : memref<9x1x256xf32, #tpu.memory_space<vmem>>, vector<1x1x256xf32>
    %40 = vector.shape_cast %39 : vector<1x1x256xf32> to vector<1x256xf32>
    %41 = vector.broadcast %40 : vector<1x256xf32> to vector<8x256xf32>
    %42 = arith.mulf %38, %41 : vector<8x256xf32>
    %c3_23 = arith.constant 3 : index
    %c0_24 = arith.constant 0 : index
    %c0_25 = arith.constant 0 : index
    %43 = vector.load %arg2[%c3_23, %c0_24, %c0_25] : memref<9x32x8xf32, #tpu.memory_space<vmem>>, vector<1x32x8xf32>
    %44 = vector.shape_cast %43 : vector<1x32x8xf32> to vector<32x8xf32>
    %cst_26 = arith.constant dense<0.000000e+00> : vector<32x256xf32>
    %45 = tpu.matmul %44, %42, %cst_26 {dimension_numbers = #tpu.dot_dimension_numbers<[1], [0], [0], [1], [0, 0, 1, 1], [], []>} : vector<32x8xf32>, vector<8x256xf32>, vector<32x256xf32> -> vector<32x256xf32>
    %46 = arith.addf %35, %45 : vector<32x256xf32>
    %c4 = arith.constant 4 : index
    %c0_27 = arith.constant 0 : index
    %c0_28 = arith.constant 0 : index
    %47 = vector.load %arg2[%c4, %c0_27, %c0_28] : memref<9x32x8xf32, #tpu.memory_space<vmem>>, vector<1x32x8xf32>
    %48 = vector.shape_cast %47 : vector<1x32x8xf32> to vector<32x8xf32>
    %cst_29 = arith.constant dense<0.000000e+00> : vector<32x256xf32>
    %49 = tpu.matmul %48, %0, %cst_29 {dimension_numbers = #tpu.dot_dimension_numbers<[1], [0], [0], [1], [0, 0, 1, 1], [], []>} : vector<32x8xf32>, vector<8x256xf32>, vector<32x256xf32> -> vector<32x256xf32>
    %50 = arith.addf %46, %49 : vector<32x256xf32>
    %51 = vector.extract_strided_slice %0 {offsets = [0, 1], sizes = [8, 255], strides = [1, 1]} : vector<8x256xf32> to vector<8x255xf32>
    %52 = vector.extract_strided_slice %0 {offsets = [0, 0], sizes = [8, 1], strides = [1, 1]} : vector<8x256xf32> to vector<8x1xf32>
    %53 = tpu.concatenate %51, %52 in 1 : vector<8x255xf32>, vector<8x1xf32> -> vector<8x256xf32>
    %c5 = arith.constant 5 : index
    %c0_30 = arith.constant 0 : index
    %c0_31 = arith.constant 0 : index
    %54 = vector.load %arg8[%c5, %c0_30, %c0_31] : memref<9x1x256xf32, #tpu.memory_space<vmem>>, vector<1x1x256xf32>
    %55 = vector.shape_cast %54 : vector<1x1x256xf32> to vector<1x256xf32>
    %56 = vector.broadcast %55 : vector<1x256xf32> to vector<8x256xf32>
    %57 = arith.mulf %53, %56 : vector<8x256xf32>
    %c5_32 = arith.constant 5 : index
    %c0_33 = arith.constant 0 : index
    %c0_34 = arith.constant 0 : index
    %58 = vector.load %arg2[%c5_32, %c0_33, %c0_34] : memref<9x32x8xf32, #tpu.memory_space<vmem>>, vector<1x32x8xf32>
    %59 = vector.shape_cast %58 : vector<1x32x8xf32> to vector<32x8xf32>
    %cst_35 = arith.constant dense<0.000000e+00> : vector<32x256xf32>
    %60 = tpu.matmul %59, %57, %cst_35 {dimension_numbers = #tpu.dot_dimension_numbers<[1], [0], [0], [1], [0, 0, 1, 1], [], []>} : vector<32x8xf32>, vector<8x256xf32>, vector<32x256xf32> -> vector<32x256xf32>
    %61 = arith.addf %50, %60 : vector<32x256xf32>
    %62 = vector.extract_strided_slice %0 {offsets = [0, 15], sizes = [8, 241], strides = [1, 1]} : vector<8x256xf32> to vector<8x241xf32>
    %63 = vector.extract_strided_slice %0 {offsets = [0, 0], sizes = [8, 15], strides = [1, 1]} : vector<8x256xf32> to vector<8x15xf32>
    %64 = tpu.concatenate %62, %63 in 1 : vector<8x241xf32>, vector<8x15xf32> -> vector<8x256xf32>
    %c6 = arith.constant 6 : index
    %c0_36 = arith.constant 0 : index
    %c0_37 = arith.constant 0 : index
    %65 = vector.load %arg8[%c6, %c0_36, %c0_37] : memref<9x1x256xf32, #tpu.memory_space<vmem>>, vector<1x1x256xf32>
    %66 = vector.shape_cast %65 : vector<1x1x256xf32> to vector<1x256xf32>
    %67 = vector.broadcast %66 : vector<1x256xf32> to vector<8x256xf32>
    %68 = arith.mulf %64, %67 : vector<8x256xf32>
    %c6_38 = arith.constant 6 : index
    %c0_39 = arith.constant 0 : index
    %c0_40 = arith.constant 0 : index
    %69 = vector.load %arg2[%c6_38, %c0_39, %c0_40] : memref<9x32x8xf32, #tpu.memory_space<vmem>>, vector<1x32x8xf32>
    %70 = vector.shape_cast %69 : vector<1x32x8xf32> to vector<32x8xf32>
    %cst_41 = arith.constant dense<0.000000e+00> : vector<32x256xf32>
    %71 = tpu.matmul %70, %68, %cst_41 {dimension_numbers = #tpu.dot_dimension_numbers<[1], [0], [0], [1], [0, 0, 1, 1], [], []>} : vector<32x8xf32>, vector<8x256xf32>, vector<32x256xf32> -> vector<32x256xf32>
    %72 = arith.addf %61, %71 : vector<32x256xf32>
    %73 = vector.extract_strided_slice %0 {offsets = [0, 16], sizes = [8, 240], strides = [1, 1]} : vector<8x256xf32> to vector<8x240xf32>
    %74 = vector.extract_strided_slice %0 {offsets = [0, 0], sizes = [8, 16], strides = [1, 1]} : vector<8x256xf32> to vector<8x16xf32>
    %75 = tpu.concatenate %73, %74 in 1 : vector<8x240xf32>, vector<8x16xf32> -> vector<8x256xf32>
    %c7 = arith.constant 7 : index
    %c0_42 = arith.constant 0 : index
    %c0_43 = arith.constant 0 : index
    %76 = vector.load %arg8[%c7, %c0_42, %c0_43] : memref<9x1x256xf32, #tpu.memory_space<vmem>>, vector<1x1x256xf32>
    %77 = vector.shape_cast %76 : vector<1x1x256xf32> to vector<1x256xf32>
    %78 = vector.broadcast %77 : vector<1x256xf32> to vector<8x256xf32>
    %79 = arith.mulf %75, %78 : vector<8x256xf32>
    %c7_44 = arith.constant 7 : index
    %c0_45 = arith.constant 0 : index
    %c0_46 = arith.constant 0 : index
    %80 = vector.load %arg2[%c7_44, %c0_45, %c0_46] : memref<9x32x8xf32, #tpu.memory_space<vmem>>, vector<1x32x8xf32>
    %81 = vector.shape_cast %80 : vector<1x32x8xf32> to vector<32x8xf32>
    %cst_47 = arith.constant dense<0.000000e+00> : vector<32x256xf32>
    %82 = tpu.matmul %81, %79, %cst_47 {dimension_numbers = #tpu.dot_dimension_numbers<[1], [0], [0], [1], [0, 0, 1, 1], [], []>} : vector<32x8xf32>, vector<8x256xf32>, vector<32x256xf32> -> vector<32x256xf32>
    %83 = arith.addf %72, %82 : vector<32x256xf32>
    %84 = vector.extract_strided_slice %0 {offsets = [0, 17], sizes = [8, 239], strides = [1, 1]} : vector<8x256xf32> to vector<8x239xf32>
    %85 = vector.extract_strided_slice %0 {offsets = [0, 0], sizes = [8, 17], strides = [1, 1]} : vector<8x256xf32> to vector<8x17xf32>
    %86 = tpu.concatenate %84, %85 in 1 : vector<8x239xf32>, vector<8x17xf32> -> vector<8x256xf32>
    %c8 = arith.constant 8 : index
    %c0_48 = arith.constant 0 : index
    %c0_49 = arith.constant 0 : index
    %87 = vector.load %arg8[%c8, %c0_48, %c0_49] : memref<9x1x256xf32, #tpu.memory_space<vmem>>, vector<1x1x256xf32>
    %88 = vector.shape_cast %87 : vector<1x1x256xf32> to vector<1x256xf32>
    %89 = vector.broadcast %88 : vector<1x256xf32> to vector<8x256xf32>
    %90 = arith.mulf %86, %89 : vector<8x256xf32>
    %c8_50 = arith.constant 8 : index
    %c0_51 = arith.constant 0 : index
    %c0_52 = arith.constant 0 : index
    %91 = vector.load %arg2[%c8_50, %c0_51, %c0_52] : memref<9x32x8xf32, #tpu.memory_space<vmem>>, vector<1x32x8xf32>
    %92 = vector.shape_cast %91 : vector<1x32x8xf32> to vector<32x8xf32>
    %cst_53 = arith.constant dense<0.000000e+00> : vector<32x256xf32>
    %93 = tpu.matmul %92, %90, %cst_53 {dimension_numbers = #tpu.dot_dimension_numbers<[1], [0], [0], [1], [0, 0, 1, 1], [], []>} : vector<32x8xf32>, vector<8x256xf32>, vector<32x256xf32> -> vector<32x256xf32>
    %94 = arith.addf %83, %93 : vector<32x256xf32>
    %c0_54 = arith.constant 0 : index
    %c0_55 = arith.constant 0 : index
    %95 = vector.load %arg3[%c0_54, %c0_55] : memref<32x1xf32, #tpu.memory_space<vmem>>, vector<32x1xf32>
    %96 = vector.broadcast %95 : vector<32x1xf32> to vector<32x256xf32>
    %97 = arith.addf %94, %96 : vector<32x256xf32>
    %cst_56 = arith.constant 0.000000e+00 : f32
    %98 = vector.broadcast %cst_56 : f32 to vector<32x256xf32>
    %99 = arith.cmpf oge, %97, %98 : vector<32x256xf32>
    %100 = vector.broadcast %1 : f32 to vector<32x256xf32>
    %101 = arith.mulf %100, %97 : vector<32x256xf32>
    %102 = arith.select %99, %97, %101 : vector<32x256xi1>, vector<32x256xf32>
    %c1_57 = arith.constant 1 : index
    %103 = memref.load %arg1[%c1_57] : memref<3xf32, #tpu.memory_space<smem>>
    %cst_58 = arith.constant 0.000000e+00 : f32
    %104 = vector.broadcast %cst_58 : f32 to vector<8x256xf32>
    %105 = vector.extract_strided_slice %102 {offsets = [0, 239], sizes = [32, 17], strides = [1, 1]} : vector<32x256xf32> to vector<32x17xf32>
    %106 = vector.extract_strided_slice %102 {offsets = [0, 0], sizes = [32, 239], strides = [1, 1]} : vector<32x256xf32> to vector<32x239xf32>
    %107 = tpu.concatenate %105, %106 in 1 : vector<32x17xf32>, vector<32x239xf32> -> vector<32x256xf32>
    %c0_59 = arith.constant 0 : index
    %c0_60 = arith.constant 0 : index
    %c0_61 = arith.constant 0 : index
    %108 = vector.load %arg8[%c0_59, %c0_60, %c0_61] : memref<9x1x256xf32, #tpu.memory_space<vmem>>, vector<1x1x256xf32>
    %109 = vector.shape_cast %108 : vector<1x1x256xf32> to vector<1x256xf32>
    %110 = vector.broadcast %109 : vector<1x256xf32> to vector<32x256xf32>
    %111 = arith.mulf %107, %110 : vector<32x256xf32>
    %c0_62 = arith.constant 0 : index
    %c0_63 = arith.constant 0 : index
    %c0_64 = arith.constant 0 : index
    %112 = vector.load %arg4[%c0_62, %c0_63, %c0_64] : memref<9x8x32xf32, #tpu.memory_space<vmem>>, vector<1x8x32xf32>
    %113 = vector.shape_cast %112 : vector<1x8x32xf32> to vector<8x32xf32>
    %cst_65 = arith.constant dense<0.000000e+00> : vector<8x256xf32>
    %114 = tpu.matmul %113, %111, %cst_65 {dimension_numbers = #tpu.dot_dimension_numbers<[1], [0], [0], [1], [0, 0, 1, 1], [], []>} : vector<8x32xf32>, vector<32x256xf32>, vector<8x256xf32> -> vector<8x256xf32>
    %115 = arith.addf %104, %114 : vector<8x256xf32>
    %116 = vector.extract_strided_slice %102 {offsets = [0, 240], sizes = [32, 16], strides = [1, 1]} : vector<32x256xf32> to vector<32x16xf32>
    %117 = vector.extract_strided_slice %102 {offsets = [0, 0], sizes = [32, 240], strides = [1, 1]} : vector<32x256xf32> to vector<32x240xf32>
    %118 = tpu.concatenate %116, %117 in 1 : vector<32x16xf32>, vector<32x240xf32> -> vector<32x256xf32>
    %c1_66 = arith.constant 1 : index
    %c0_67 = arith.constant 0 : index
    %c0_68 = arith.constant 0 : index
    %119 = vector.load %arg8[%c1_66, %c0_67, %c0_68] : memref<9x1x256xf32, #tpu.memory_space<vmem>>, vector<1x1x256xf32>
    %120 = vector.shape_cast %119 : vector<1x1x256xf32> to vector<1x256xf32>
    %121 = vector.broadcast %120 : vector<1x256xf32> to vector<32x256xf32>
    %122 = arith.mulf %118, %121 : vector<32x256xf32>
    %c1_69 = arith.constant 1 : index
    %c0_70 = arith.constant 0 : index
    %c0_71 = arith.constant 0 : index
    %123 = vector.load %arg4[%c1_69, %c0_70, %c0_71] : memref<9x8x32xf32, #tpu.memory_space<vmem>>, vector<1x8x32xf32>
    %124 = vector.shape_cast %123 : vector<1x8x32xf32> to vector<8x32xf32>
    %cst_72 = arith.constant dense<0.000000e+00> : vector<8x256xf32>
    %125 = tpu.matmul %124, %122, %cst_72 {dimension_numbers = #tpu.dot_dimension_numbers<[1], [0], [0], [1], [0, 0, 1, 1], [], []>} : vector<8x32xf32>, vector<32x256xf32>, vector<8x256xf32> -> vector<8x256xf32>
    %126 = arith.addf %115, %125 : vector<8x256xf32>
    %127 = vector.extract_strided_slice %102 {offsets = [0, 241], sizes = [32, 15], strides = [1, 1]} : vector<32x256xf32> to vector<32x15xf32>
    %128 = vector.extract_strided_slice %102 {offsets = [0, 0], sizes = [32, 241], strides = [1, 1]} : vector<32x256xf32> to vector<32x241xf32>
    %129 = tpu.concatenate %127, %128 in 1 : vector<32x15xf32>, vector<32x241xf32> -> vector<32x256xf32>
    %c2_73 = arith.constant 2 : index
    %c0_74 = arith.constant 0 : index
    %c0_75 = arith.constant 0 : index
    %130 = vector.load %arg8[%c2_73, %c0_74, %c0_75] : memref<9x1x256xf32, #tpu.memory_space<vmem>>, vector<1x1x256xf32>
    %131 = vector.shape_cast %130 : vector<1x1x256xf32> to vector<1x256xf32>
    %132 = vector.broadcast %131 : vector<1x256xf32> to vector<32x256xf32>
    %133 = arith.mulf %129, %132 : vector<32x256xf32>
    %c2_76 = arith.constant 2 : index
    %c0_77 = arith.constant 0 : index
    %c0_78 = arith.constant 0 : index
    %134 = vector.load %arg4[%c2_76, %c0_77, %c0_78] : memref<9x8x32xf32, #tpu.memory_space<vmem>>, vector<1x8x32xf32>
    %135 = vector.shape_cast %134 : vector<1x8x32xf32> to vector<8x32xf32>
    %cst_79 = arith.constant dense<0.000000e+00> : vector<8x256xf32>
    %136 = tpu.matmul %135, %133, %cst_79 {dimension_numbers = #tpu.dot_dimension_numbers<[1], [0], [0], [1], [0, 0, 1, 1], [], []>} : vector<8x32xf32>, vector<32x256xf32>, vector<8x256xf32> -> vector<8x256xf32>
    %137 = arith.addf %126, %136 : vector<8x256xf32>
    %138 = vector.extract_strided_slice %102 {offsets = [0, 255], sizes = [32, 1], strides = [1, 1]} : vector<32x256xf32> to vector<32x1xf32>
    %139 = vector.extract_strided_slice %102 {offsets = [0, 0], sizes = [32, 255], strides = [1, 1]} : vector<32x256xf32> to vector<32x255xf32>
    %140 = tpu.concatenate %138, %139 in 1 : vector<32x1xf32>, vector<32x255xf32> -> vector<32x256xf32>
    %c3_80 = arith.constant 3 : index
    %c0_81 = arith.constant 0 : index
    %c0_82 = arith.constant 0 : index
    %141 = vector.load %arg8[%c3_80, %c0_81, %c0_82] : memref<9x1x256xf32, #tpu.memory_space<vmem>>, vector<1x1x256xf32>
    %142 = vector.shape_cast %141 : vector<1x1x256xf32> to vector<1x256xf32>
    %143 = vector.broadcast %142 : vector<1x256xf32> to vector<32x256xf32>
    %144 = arith.mulf %140, %143 : vector<32x256xf32>
    %c3_83 = arith.constant 3 : index
    %c0_84 = arith.constant 0 : index
    %c0_85 = arith.constant 0 : index
    %145 = vector.load %arg4[%c3_83, %c0_84, %c0_85] : memref<9x8x32xf32, #tpu.memory_space<vmem>>, vector<1x8x32xf32>
    %146 = vector.shape_cast %145 : vector<1x8x32xf32> to vector<8x32xf32>
    %cst_86 = arith.constant dense<0.000000e+00> : vector<8x256xf32>
    %147 = tpu.matmul %146, %144, %cst_86 {dimension_numbers = #tpu.dot_dimension_numbers<[1], [0], [0], [1], [0, 0, 1, 1], [], []>} : vector<8x32xf32>, vector<32x256xf32>, vector<8x256xf32> -> vector<8x256xf32>
    %148 = arith.addf %137, %147 : vector<8x256xf32>
    %c4_87 = arith.constant 4 : index
    %c0_88 = arith.constant 0 : index
    %c0_89 = arith.constant 0 : index
    %149 = vector.load %arg4[%c4_87, %c0_88, %c0_89] : memref<9x8x32xf32, #tpu.memory_space<vmem>>, vector<1x8x32xf32>
    %150 = vector.shape_cast %149 : vector<1x8x32xf32> to vector<8x32xf32>
    %cst_90 = arith.constant dense<0.000000e+00> : vector<8x256xf32>
    %151 = tpu.matmul %150, %102, %cst_90 {dimension_numbers = #tpu.dot_dimension_numbers<[1], [0], [0], [1], [0, 0, 1, 1], [], []>} : vector<8x32xf32>, vector<32x256xf32>, vector<8x256xf32> -> vector<8x256xf32>
    %152 = arith.addf %148, %151 : vector<8x256xf32>
    %153 = vector.extract_strided_slice %102 {offsets = [0, 1], sizes = [32, 255], strides = [1, 1]} : vector<32x256xf32> to vector<32x255xf32>
    %154 = vector.extract_strided_slice %102 {offsets = [0, 0], sizes = [32, 1], strides = [1, 1]} : vector<32x256xf32> to vector<32x1xf32>
    %155 = tpu.concatenate %153, %154 in 1 : vector<32x255xf32>, vector<32x1xf32> -> vector<32x256xf32>
    %c5_91 = arith.constant 5 : index
    %c0_92 = arith.constant 0 : index
    %c0_93 = arith.constant 0 : index
    %156 = vector.load %arg8[%c5_91, %c0_92, %c0_93] : memref<9x1x256xf32, #tpu.memory_space<vmem>>, vector<1x1x256xf32>
    %157 = vector.shape_cast %156 : vector<1x1x256xf32> to vector<1x256xf32>
    %158 = vector.broadcast %157 : vector<1x256xf32> to vector<32x256xf32>
    %159 = arith.mulf %155, %158 : vector<32x256xf32>
    %c5_94 = arith.constant 5 : index
    %c0_95 = arith.constant 0 : index
    %c0_96 = arith.constant 0 : index
    %160 = vector.load %arg4[%c5_94, %c0_95, %c0_96] : memref<9x8x32xf32, #tpu.memory_space<vmem>>, vector<1x8x32xf32>
    %161 = vector.shape_cast %160 : vector<1x8x32xf32> to vector<8x32xf32>
    %cst_97 = arith.constant dense<0.000000e+00> : vector<8x256xf32>
    %162 = tpu.matmul %161, %159, %cst_97 {dimension_numbers = #tpu.dot_dimension_numbers<[1], [0], [0], [1], [0, 0, 1, 1], [], []>} : vector<8x32xf32>, vector<32x256xf32>, vector<8x256xf32> -> vector<8x256xf32>
    %163 = arith.addf %152, %162 : vector<8x256xf32>
    %164 = vector.extract_strided_slice %102 {offsets = [0, 15], sizes = [32, 241], strides = [1, 1]} : vector<32x256xf32> to vector<32x241xf32>
    %165 = vector.extract_strided_slice %102 {offsets = [0, 0], sizes = [32, 15], strides = [1, 1]} : vector<32x256xf32> to vector<32x15xf32>
    %166 = tpu.concatenate %164, %165 in 1 : vector<32x241xf32>, vector<32x15xf32> -> vector<32x256xf32>
    %c6_98 = arith.constant 6 : index
    %c0_99 = arith.constant 0 : index
    %c0_100 = arith.constant 0 : index
    %167 = vector.load %arg8[%c6_98, %c0_99, %c0_100] : memref<9x1x256xf32, #tpu.memory_space<vmem>>, vector<1x1x256xf32>
    %168 = vector.shape_cast %167 : vector<1x1x256xf32> to vector<1x256xf32>
    %169 = vector.broadcast %168 : vector<1x256xf32> to vector<32x256xf32>
    %170 = arith.mulf %166, %169 : vector<32x256xf32>
    %c6_101 = arith.constant 6 : index
    %c0_102 = arith.constant 0 : index
    %c0_103 = arith.constant 0 : index
    %171 = vector.load %arg4[%c6_101, %c0_102, %c0_103] : memref<9x8x32xf32, #tpu.memory_space<vmem>>, vector<1x8x32xf32>
    %172 = vector.shape_cast %171 : vector<1x8x32xf32> to vector<8x32xf32>
    %cst_104 = arith.constant dense<0.000000e+00> : vector<8x256xf32>
    %173 = tpu.matmul %172, %170, %cst_104 {dimension_numbers = #tpu.dot_dimension_numbers<[1], [0], [0], [1], [0, 0, 1, 1], [], []>} : vector<8x32xf32>, vector<32x256xf32>, vector<8x256xf32> -> vector<8x256xf32>
    %174 = arith.addf %163, %173 : vector<8x256xf32>
    %175 = vector.extract_strided_slice %102 {offsets = [0, 16], sizes = [32, 240], strides = [1, 1]} : vector<32x256xf32> to vector<32x240xf32>
    %176 = vector.extract_strided_slice %102 {offsets = [0, 0], sizes = [32, 16], strides = [1, 1]} : vector<32x256xf32> to vector<32x16xf32>
    %177 = tpu.concatenate %175, %176 in 1 : vector<32x240xf32>, vector<32x16xf32> -> vector<32x256xf32>
    %c7_105 = arith.constant 7 : index
    %c0_106 = arith.constant 0 : index
    %c0_107 = arith.constant 0 : index
    %178 = vector.load %arg8[%c7_105, %c0_106, %c0_107] : memref<9x1x256xf32, #tpu.memory_space<vmem>>, vector<1x1x256xf32>
    %179 = vector.shape_cast %178 : vector<1x1x256xf32> to vector<1x256xf32>
    %180 = vector.broadcast %179 : vector<1x256xf32> to vector<32x256xf32>
    %181 = arith.mulf %177, %180 : vector<32x256xf32>
    %c7_108 = arith.constant 7 : index
    %c0_109 = arith.constant 0 : index
    %c0_110 = arith.constant 0 : index
    %182 = vector.load %arg4[%c7_108, %c0_109, %c0_110] : memref<9x8x32xf32, #tpu.memory_space<vmem>>, vector<1x8x32xf32>
    %183 = vector.shape_cast %182 : vector<1x8x32xf32> to vector<8x32xf32>
    %cst_111 = arith.constant dense<0.000000e+00> : vector<8x256xf32>
    %184 = tpu.matmul %183, %181, %cst_111 {dimension_numbers = #tpu.dot_dimension_numbers<[1], [0], [0], [1], [0, 0, 1, 1], [], []>} : vector<8x32xf32>, vector<32x256xf32>, vector<8x256xf32> -> vector<8x256xf32>
    %185 = arith.addf %174, %184 : vector<8x256xf32>
    %186 = vector.extract_strided_slice %102 {offsets = [0, 17], sizes = [32, 239], strides = [1, 1]} : vector<32x256xf32> to vector<32x239xf32>
    %187 = vector.extract_strided_slice %102 {offsets = [0, 0], sizes = [32, 17], strides = [1, 1]} : vector<32x256xf32> to vector<32x17xf32>
    %188 = tpu.concatenate %186, %187 in 1 : vector<32x239xf32>, vector<32x17xf32> -> vector<32x256xf32>
    %c8_112 = arith.constant 8 : index
    %c0_113 = arith.constant 0 : index
    %c0_114 = arith.constant 0 : index
    %189 = vector.load %arg8[%c8_112, %c0_113, %c0_114] : memref<9x1x256xf32, #tpu.memory_space<vmem>>, vector<1x1x256xf32>
    %190 = vector.shape_cast %189 : vector<1x1x256xf32> to vector<1x256xf32>
    %191 = vector.broadcast %190 : vector<1x256xf32> to vector<32x256xf32>
    %192 = arith.mulf %188, %191 : vector<32x256xf32>
    %c8_115 = arith.constant 8 : index
    %c0_116 = arith.constant 0 : index
    %c0_117 = arith.constant 0 : index
    %193 = vector.load %arg4[%c8_115, %c0_116, %c0_117] : memref<9x8x32xf32, #tpu.memory_space<vmem>>, vector<1x8x32xf32>
    %194 = vector.shape_cast %193 : vector<1x8x32xf32> to vector<8x32xf32>
    %cst_118 = arith.constant dense<0.000000e+00> : vector<8x256xf32>
    %195 = tpu.matmul %194, %192, %cst_118 {dimension_numbers = #tpu.dot_dimension_numbers<[1], [0], [0], [1], [0, 0, 1, 1], [], []>} : vector<8x32xf32>, vector<32x256xf32>, vector<8x256xf32> -> vector<8x256xf32>
    %196 = arith.addf %185, %195 : vector<8x256xf32>
    %c0_119 = arith.constant 0 : index
    %c0_120 = arith.constant 0 : index
    %197 = vector.load %arg5[%c0_119, %c0_120] : memref<8x1xf32, #tpu.memory_space<vmem>>, vector<8x1xf32>
    %198 = vector.broadcast %197 : vector<8x1xf32> to vector<8x256xf32>
    %199 = arith.addf %196, %198 : vector<8x256xf32>
    %cst_121 = arith.constant 0.000000e+00 : f32
    %200 = vector.broadcast %cst_121 : f32 to vector<8x256xf32>
    %201 = arith.cmpf oge, %199, %200 : vector<8x256xf32>
    %202 = vector.broadcast %103 : f32 to vector<8x256xf32>
    %203 = arith.mulf %202, %199 : vector<8x256xf32>
    %204 = arith.select %201, %199, %203 : vector<8x256xi1>, vector<8x256xf32>
    %205 = arith.subf %204, %0 : vector<8x256xf32>
    %c2_122 = arith.constant 2 : index
    %206 = memref.load %arg1[%c2_122] : memref<3xf32, #tpu.memory_space<smem>>
    %cst_123 = arith.constant 0.000000e+00 : f32
    %207 = vector.broadcast %cst_123 : f32 to vector<32x256xf32>
    %208 = vector.extract_strided_slice %205 {offsets = [0, 239], sizes = [8, 17], strides = [1, 1]} : vector<8x256xf32> to vector<8x17xf32>
    %209 = vector.extract_strided_slice %205 {offsets = [0, 0], sizes = [8, 239], strides = [1, 1]} : vector<8x256xf32> to vector<8x239xf32>
    %210 = tpu.concatenate %208, %209 in 1 : vector<8x17xf32>, vector<8x239xf32> -> vector<8x256xf32>
    %c0_124 = arith.constant 0 : index
    %c0_125 = arith.constant 0 : index
    %c0_126 = arith.constant 0 : index
    %211 = vector.load %arg8[%c0_124, %c0_125, %c0_126] : memref<9x1x256xf32, #tpu.memory_space<vmem>>, vector<1x1x256xf32>
    %212 = vector.shape_cast %211 : vector<1x1x256xf32> to vector<1x256xf32>
    %213 = vector.broadcast %212 : vector<1x256xf32> to vector<8x256xf32>
    %214 = arith.mulf %210, %213 : vector<8x256xf32>
    %c0_127 = arith.constant 0 : index
    %c0_128 = arith.constant 0 : index
    %c0_129 = arith.constant 0 : index
    %215 = vector.load %arg6[%c0_127, %c0_128, %c0_129] : memref<9x32x8xf32, #tpu.memory_space<vmem>>, vector<1x32x8xf32>
    %216 = vector.shape_cast %215 : vector<1x32x8xf32> to vector<32x8xf32>
    %cst_130 = arith.constant dense<0.000000e+00> : vector<32x256xf32>
    %217 = tpu.matmul %216, %214, %cst_130 {dimension_numbers = #tpu.dot_dimension_numbers<[1], [0], [0], [1], [0, 0, 1, 1], [], []>} : vector<32x8xf32>, vector<8x256xf32>, vector<32x256xf32> -> vector<32x256xf32>
    %218 = arith.addf %207, %217 : vector<32x256xf32>
    %219 = vector.extract_strided_slice %205 {offsets = [0, 240], sizes = [8, 16], strides = [1, 1]} : vector<8x256xf32> to vector<8x16xf32>
    %220 = vector.extract_strided_slice %205 {offsets = [0, 0], sizes = [8, 240], strides = [1, 1]} : vector<8x256xf32> to vector<8x240xf32>
    %221 = tpu.concatenate %219, %220 in 1 : vector<8x16xf32>, vector<8x240xf32> -> vector<8x256xf32>
    %c1_131 = arith.constant 1 : index
    %c0_132 = arith.constant 0 : index
    %c0_133 = arith.constant 0 : index
    %222 = vector.load %arg8[%c1_131, %c0_132, %c0_133] : memref<9x1x256xf32, #tpu.memory_space<vmem>>, vector<1x1x256xf32>
    %223 = vector.shape_cast %222 : vector<1x1x256xf32> to vector<1x256xf32>
    %224 = vector.broadcast %223 : vector<1x256xf32> to vector<8x256xf32>
    %225 = arith.mulf %221, %224 : vector<8x256xf32>
    %c1_134 = arith.constant 1 : index
    %c0_135 = arith.constant 0 : index
    %c0_136 = arith.constant 0 : index
    %226 = vector.load %arg6[%c1_134, %c0_135, %c0_136] : memref<9x32x8xf32, #tpu.memory_space<vmem>>, vector<1x32x8xf32>
    %227 = vector.shape_cast %226 : vector<1x32x8xf32> to vector<32x8xf32>
    %cst_137 = arith.constant dense<0.000000e+00> : vector<32x256xf32>
    %228 = tpu.matmul %227, %225, %cst_137 {dimension_numbers = #tpu.dot_dimension_numbers<[1], [0], [0], [1], [0, 0, 1, 1], [], []>} : vector<32x8xf32>, vector<8x256xf32>, vector<32x256xf32> -> vector<32x256xf32>
    %229 = arith.addf %218, %228 : vector<32x256xf32>
    %230 = vector.extract_strided_slice %205 {offsets = [0, 241], sizes = [8, 15], strides = [1, 1]} : vector<8x256xf32> to vector<8x15xf32>
    %231 = vector.extract_strided_slice %205 {offsets = [0, 0], sizes = [8, 241], strides = [1, 1]} : vector<8x256xf32> to vector<8x241xf32>
    %232 = tpu.concatenate %230, %231 in 1 : vector<8x15xf32>, vector<8x241xf32> -> vector<8x256xf32>
    %c2_138 = arith.constant 2 : index
    %c0_139 = arith.constant 0 : index
    %c0_140 = arith.constant 0 : index
    %233 = vector.load %arg8[%c2_138, %c0_139, %c0_140] : memref<9x1x256xf32, #tpu.memory_space<vmem>>, vector<1x1x256xf32>
    %234 = vector.shape_cast %233 : vector<1x1x256xf32> to vector<1x256xf32>
    %235 = vector.broadcast %234 : vector<1x256xf32> to vector<8x256xf32>
    %236 = arith.mulf %232, %235 : vector<8x256xf32>
    %c2_141 = arith.constant 2 : index
    %c0_142 = arith.constant 0 : index
    %c0_143 = arith.constant 0 : index
    %237 = vector.load %arg6[%c2_141, %c0_142, %c0_143] : memref<9x32x8xf32, #tpu.memory_space<vmem>>, vector<1x32x8xf32>
    %238 = vector.shape_cast %237 : vector<1x32x8xf32> to vector<32x8xf32>
    %cst_144 = arith.constant dense<0.000000e+00> : vector<32x256xf32>
    %239 = tpu.matmul %238, %236, %cst_144 {dimension_numbers = #tpu.dot_dimension_numbers<[1], [0], [0], [1], [0, 0, 1, 1], [], []>} : vector<32x8xf32>, vector<8x256xf32>, vector<32x256xf32> -> vector<32x256xf32>
    %240 = arith.addf %229, %239 : vector<32x256xf32>
    %241 = vector.extract_strided_slice %205 {offsets = [0, 255], sizes = [8, 1], strides = [1, 1]} : vector<8x256xf32> to vector<8x1xf32>
    %242 = vector.extract_strided_slice %205 {offsets = [0, 0], sizes = [8, 255], strides = [1, 1]} : vector<8x256xf32> to vector<8x255xf32>
    %243 = tpu.concatenate %241, %242 in 1 : vector<8x1xf32>, vector<8x255xf32> -> vector<8x256xf32>
    %c3_145 = arith.constant 3 : index
    %c0_146 = arith.constant 0 : index
    %c0_147 = arith.constant 0 : index
    %244 = vector.load %arg8[%c3_145, %c0_146, %c0_147] : memref<9x1x256xf32, #tpu.memory_space<vmem>>, vector<1x1x256xf32>
    %245 = vector.shape_cast %244 : vector<1x1x256xf32> to vector<1x256xf32>
    %246 = vector.broadcast %245 : vector<1x256xf32> to vector<8x256xf32>
    %247 = arith.mulf %243, %246 : vector<8x256xf32>
    %c3_148 = arith.constant 3 : index
    %c0_149 = arith.constant 0 : index
    %c0_150 = arith.constant 0 : index
    %248 = vector.load %arg6[%c3_148, %c0_149, %c0_150] : memref<9x32x8xf32, #tpu.memory_space<vmem>>, vector<1x32x8xf32>
    %249 = vector.shape_cast %248 : vector<1x32x8xf32> to vector<32x8xf32>
    %cst_151 = arith.constant dense<0.000000e+00> : vector<32x256xf32>
    %250 = tpu.matmul %249, %247, %cst_151 {dimension_numbers = #tpu.dot_dimension_numbers<[1], [0], [0], [1], [0, 0, 1, 1], [], []>} : vector<32x8xf32>, vector<8x256xf32>, vector<32x256xf32> -> vector<32x256xf32>
    %251 = arith.addf %240, %250 : vector<32x256xf32>
    %c4_152 = arith.constant 4 : index
    %c0_153 = arith.constant 0 : index
    %c0_154 = arith.constant 0 : index
    %252 = vector.load %arg6[%c4_152, %c0_153, %c0_154] : memref<9x32x8xf32, #tpu.memory_space<vmem>>, vector<1x32x8xf32>
    %253 = vector.shape_cast %252 : vector<1x32x8xf32> to vector<32x8xf32>
    %cst_155 = arith.constant dense<0.000000e+00> : vector<32x256xf32>
    %254 = tpu.matmul %253, %205, %cst_155 {dimension_numbers = #tpu.dot_dimension_numbers<[1], [0], [0], [1], [0, 0, 1, 1], [], []>} : vector<32x8xf32>, vector<8x256xf32>, vector<32x256xf32> -> vector<32x256xf32>
    %255 = arith.addf %251, %254 : vector<32x256xf32>
    %256 = vector.extract_strided_slice %205 {offsets = [0, 1], sizes = [8, 255], strides = [1, 1]} : vector<8x256xf32> to vector<8x255xf32>
    %257 = vector.extract_strided_slice %205 {offsets = [0, 0], sizes = [8, 1], strides = [1, 1]} : vector<8x256xf32> to vector<8x1xf32>
    %258 = tpu.concatenate %256, %257 in 1 : vector<8x255xf32>, vector<8x1xf32> -> vector<8x256xf32>
    %c5_156 = arith.constant 5 : index
    %c0_157 = arith.constant 0 : index
    %c0_158 = arith.constant 0 : index
    %259 = vector.load %arg8[%c5_156, %c0_157, %c0_158] : memref<9x1x256xf32, #tpu.memory_space<vmem>>, vector<1x1x256xf32>
    %260 = vector.shape_cast %259 : vector<1x1x256xf32> to vector<1x256xf32>
    %261 = vector.broadcast %260 : vector<1x256xf32> to vector<8x256xf32>
    %262 = arith.mulf %258, %261 : vector<8x256xf32>
    %c5_159 = arith.constant 5 : index
    %c0_160 = arith.constant 0 : index
    %c0_161 = arith.constant 0 : index
    %263 = vector.load %arg6[%c5_159, %c0_160, %c0_161] : memref<9x32x8xf32, #tpu.memory_space<vmem>>, vector<1x32x8xf32>
    %264 = vector.shape_cast %263 : vector<1x32x8xf32> to vector<32x8xf32>
    %cst_162 = arith.constant dense<0.000000e+00> : vector<32x256xf32>
    %265 = tpu.matmul %264, %262, %cst_162 {dimension_numbers = #tpu.dot_dimension_numbers<[1], [0], [0], [1], [0, 0, 1, 1], [], []>} : vector<32x8xf32>, vector<8x256xf32>, vector<32x256xf32> -> vector<32x256xf32>
    %266 = arith.addf %255, %265 : vector<32x256xf32>
    %267 = vector.extract_strided_slice %205 {offsets = [0, 15], sizes = [8, 241], strides = [1, 1]} : vector<8x256xf32> to vector<8x241xf32>
    %268 = vector.extract_strided_slice %205 {offsets = [0, 0], sizes = [8, 15], strides = [1, 1]} : vector<8x256xf32> to vector<8x15xf32>
    %269 = tpu.concatenate %267, %268 in 1 : vector<8x241xf32>, vector<8x15xf32> -> vector<8x256xf32>
    %c6_163 = arith.constant 6 : index
    %c0_164 = arith.constant 0 : index
    %c0_165 = arith.constant 0 : index
    %270 = vector.load %arg8[%c6_163, %c0_164, %c0_165] : memref<9x1x256xf32, #tpu.memory_space<vmem>>, vector<1x1x256xf32>
    %271 = vector.shape_cast %270 : vector<1x1x256xf32> to vector<1x256xf32>
    %272 = vector.broadcast %271 : vector<1x256xf32> to vector<8x256xf32>
    %273 = arith.mulf %269, %272 : vector<8x256xf32>
    %c6_166 = arith.constant 6 : index
    %c0_167 = arith.constant 0 : index
    %c0_168 = arith.constant 0 : index
    %274 = vector.load %arg6[%c6_166, %c0_167, %c0_168] : memref<9x32x8xf32, #tpu.memory_space<vmem>>, vector<1x32x8xf32>
    %275 = vector.shape_cast %274 : vector<1x32x8xf32> to vector<32x8xf32>
    %cst_169 = arith.constant dense<0.000000e+00> : vector<32x256xf32>
    %276 = tpu.matmul %275, %273, %cst_169 {dimension_numbers = #tpu.dot_dimension_numbers<[1], [0], [0], [1], [0, 0, 1, 1], [], []>} : vector<32x8xf32>, vector<8x256xf32>, vector<32x256xf32> -> vector<32x256xf32>
    %277 = arith.addf %266, %276 : vector<32x256xf32>
    %278 = vector.extract_strided_slice %205 {offsets = [0, 16], sizes = [8, 240], strides = [1, 1]} : vector<8x256xf32> to vector<8x240xf32>
    %279 = vector.extract_strided_slice %205 {offsets = [0, 0], sizes = [8, 16], strides = [1, 1]} : vector<8x256xf32> to vector<8x16xf32>
    %280 = tpu.concatenate %278, %279 in 1 : vector<8x240xf32>, vector<8x16xf32> -> vector<8x256xf32>
    %c7_170 = arith.constant 7 : index
    %c0_171 = arith.constant 0 : index
    %c0_172 = arith.constant 0 : index
    %281 = vector.load %arg8[%c7_170, %c0_171, %c0_172] : memref<9x1x256xf32, #tpu.memory_space<vmem>>, vector<1x1x256xf32>
    %282 = vector.shape_cast %281 : vector<1x1x256xf32> to vector<1x256xf32>
    %283 = vector.broadcast %282 : vector<1x256xf32> to vector<8x256xf32>
    %284 = arith.mulf %280, %283 : vector<8x256xf32>
    %c7_173 = arith.constant 7 : index
    %c0_174 = arith.constant 0 : index
    %c0_175 = arith.constant 0 : index
    %285 = vector.load %arg6[%c7_173, %c0_174, %c0_175] : memref<9x32x8xf32, #tpu.memory_space<vmem>>, vector<1x32x8xf32>
    %286 = vector.shape_cast %285 : vector<1x32x8xf32> to vector<32x8xf32>
    %cst_176 = arith.constant dense<0.000000e+00> : vector<32x256xf32>
    %287 = tpu.matmul %286, %284, %cst_176 {dimension_numbers = #tpu.dot_dimension_numbers<[1], [0], [0], [1], [0, 0, 1, 1], [], []>} : vector<32x8xf32>, vector<8x256xf32>, vector<32x256xf32> -> vector<32x256xf32>
    %288 = arith.addf %277, %287 : vector<32x256xf32>
    %289 = vector.extract_strided_slice %205 {offsets = [0, 17], sizes = [8, 239], strides = [1, 1]} : vector<8x256xf32> to vector<8x239xf32>
    %290 = vector.extract_strided_slice %205 {offsets = [0, 0], sizes = [8, 17], strides = [1, 1]} : vector<8x256xf32> to vector<8x17xf32>
    %291 = tpu.concatenate %289, %290 in 1 : vector<8x239xf32>, vector<8x17xf32> -> vector<8x256xf32>
    %c8_177 = arith.constant 8 : index
    %c0_178 = arith.constant 0 : index
    %c0_179 = arith.constant 0 : index
    %292 = vector.load %arg8[%c8_177, %c0_178, %c0_179] : memref<9x1x256xf32, #tpu.memory_space<vmem>>, vector<1x1x256xf32>
    %293 = vector.shape_cast %292 : vector<1x1x256xf32> to vector<1x256xf32>
    %294 = vector.broadcast %293 : vector<1x256xf32> to vector<8x256xf32>
    %295 = arith.mulf %291, %294 : vector<8x256xf32>
    %c8_180 = arith.constant 8 : index
    %c0_181 = arith.constant 0 : index
    %c0_182 = arith.constant 0 : index
    %296 = vector.load %arg6[%c8_180, %c0_181, %c0_182] : memref<9x32x8xf32, #tpu.memory_space<vmem>>, vector<1x32x8xf32>
    %297 = vector.shape_cast %296 : vector<1x32x8xf32> to vector<32x8xf32>
    %cst_183 = arith.constant dense<0.000000e+00> : vector<32x256xf32>
    %298 = tpu.matmul %297, %295, %cst_183 {dimension_numbers = #tpu.dot_dimension_numbers<[1], [0], [0], [1], [0, 0, 1, 1], [], []>} : vector<32x8xf32>, vector<8x256xf32>, vector<32x256xf32> -> vector<32x256xf32>
    %299 = arith.addf %288, %298 : vector<32x256xf32>
    %c0_184 = arith.constant 0 : index
    %c0_185 = arith.constant 0 : index
    %300 = vector.load %arg7[%c0_184, %c0_185] : memref<32x1xf32, #tpu.memory_space<vmem>>, vector<32x1xf32>
    %301 = vector.broadcast %300 : vector<32x1xf32> to vector<32x256xf32>
    %302 = arith.addf %299, %301 : vector<32x256xf32>
    %cst_186 = arith.constant 0.000000e+00 : f32
    %303 = vector.broadcast %cst_186 : f32 to vector<32x256xf32>
    %304 = arith.cmpf oge, %302, %303 : vector<32x256xf32>
    %305 = vector.broadcast %206 : f32 to vector<32x256xf32>
    %306 = arith.mulf %305, %302 : vector<32x256xf32>
    %307 = arith.select %304, %302, %306 : vector<32x256xi1>, vector<32x256xf32>
    %308 = arith.addf %307, %102 : vector<32x256xf32>
    %c0_187 = arith.constant 0 : index
    %c0_188 = arith.constant 0 : index
    %309 = vector.load %arg10[%c0_187, %c0_188] : memref<32x256xf32, #tpu.memory_space<vmem>>, vector<32x256xf32>
    tpu.vector_store %arg10[%c0_187, %c0_188], %308 {strides = array<i32>} : memref<32x256xf32, #tpu.memory_space<vmem>>, vector<32x256xf32>,
    return
  }
  func.func @transform_0(%arg0: i32) -> i32 {
    %c0_i32 = arith.constant 0 : i32
    %c0_i32_0 = arith.constant 0 : i32
    return %c0_i32 : i32
  }
  func.func @transform_1(%arg0: i32) -> (i32, i32, i32) {
    %c0_i32 = arith.constant 0 : i32
    %c0_i32_0 = arith.constant 0 : i32
    %c0_i32_1 = arith.constant 0 : i32
    %c0_i32_2 = arith.constant 0 : i32
    return %c0_i32, %c0_i32_0, %c0_i32_1 : i32, i32, i32
  }
  func.func @transform_2(%arg0: i32) -> (i32, i32) {
    %c0_i32 = arith.constant 0 : i32
    %c0_i32_0 = arith.constant 0 : i32
    %c0_i32_1 = arith.constant 0 : i32
    return %c0_i32, %c0_i32_0 : i32, i32
  }
  func.func @transform_3(%arg0: i32) -> (i32, i32, i32) {
    %c0_i32 = arith.constant 0 : i32
    %c0_i32_0 = arith.constant 0 : i32
    %c0_i32_1 = arith.constant 0 : i32
    %c0_i32_2 = arith.constant 0 : i32
    return %c0_i32, %c0_i32_0, %c0_i32_1 : i32, i32, i32
  }
  func.func @transform_4(%arg0: i32) -> (i32, i32) {
    %c0_i32 = arith.constant 0 : i32
    %c0_i32_0 = arith.constant 0 : i32
    %c0_i32_1 = arith.constant 0 : i32
    return %c0_i32, %c0_i32_0 : i32, i32
  }
  func.func @transform_5(%arg0: i32) -> (i32, i32, i32) {
    %c0_i32 = arith.constant 0 : i32
    %c0_i32_0 = arith.constant 0 : i32
    %c0_i32_1 = arith.constant 0 : i32
    %c0_i32_2 = arith.constant 0 : i32
    return %c0_i32, %c0_i32_0, %c0_i32_1 : i32, i32, i32
  }
  func.func @transform_6(%arg0: i32) -> (i32, i32) {
    %c0_i32 = arith.constant 0 : i32
    %c0_i32_0 = arith.constant 0 : i32
    %c0_i32_1 = arith.constant 0 : i32
    return %c0_i32, %c0_i32_0 : i32, i32
  }
  func.func @transform_7(%arg0: i32) -> (i32, i32, i32) {
    %c0_i32 = arith.constant 0 : i32
    %c0_i32_0 = arith.constant 0 : i32
    %c0_i32_1 = arith.constant 0 : i32
    %c0_i32_2 = arith.constant 0 : i32
    return %c0_i32, %c0_i32_0, %c0_i32_1 : i32, i32, i32
  }
  func.func @transform_8(%arg0: i32) -> (i32, i32) {
    %c0_i32 = arith.constant 0 : i32
    %c0_i32_0 = arith.constant 0 : i32
    return %c0_i32, %arg0 : i32, i32
  }
  func.func @transform_9(%arg0: i32) -> (i32, i32) {
    %c0_i32 = arith.constant 0 : i32
    %c0_i32_0 = arith.constant 0 : i32
    return %c0_i32, %arg0 : i32, i32
  }
}

module attributes {stable_mosaic.version = 11 : i64} {
  func.func @kernel(%arg0: i32, %arg1: memref<3xf32, #tpu.memory_space<smem>>, %arg2: memref<9x8x32xf32, #tpu.memory_space<vmem>>, %arg3: memref<8x1xf32, #tpu.memory_space<vmem>>, %arg4: memref<9x32x8xf32, #tpu.memory_space<vmem>>, %arg5: memref<32x1xf32, #tpu.memory_space<vmem>>, %arg6: memref<9x8x32xf32, #tpu.memory_space<vmem>>, %arg7: memref<8x1xf32, #tpu.memory_space<vmem>>, %arg8: memref<9x1x256xf32, #tpu.memory_space<vmem>>, %arg9: memref<32x256xf32, #tpu.memory_space<vmem>>, %arg10: memref<8x256xf32, #tpu.memory_space<vmem>>) attributes {dimension_semantics = [#tpu.dimension_semantics<parallel>], iteration_bounds = array<i64: 2>, scalar_prefetch = 0 : i64, scratch_operands = 0 : i64, tpu.core_type = #tpu.core_type<tc>, window_params = [{transform_indices = @transform_0, window_bounds = array<i64: 3>}, {pipeline_mode = #tpu.pipeline_mode<synchronous>, transform_indices = @transform_1, window_bounds = array<i64: 9, 8, 32>}, {pipeline_mode = #tpu.pipeline_mode<synchronous>, transform_indices = @transform_2, window_bounds = array<i64: 8, 1>}, {pipeline_mode = #tpu.pipeline_mode<synchronous>, transform_indices = @transform_3, window_bounds = array<i64: 9, 32, 8>}, {pipeline_mode = #tpu.pipeline_mode<synchronous>, transform_indices = @transform_4, window_bounds = array<i64: 32, 1>}, {pipeline_mode = #tpu.pipeline_mode<synchronous>, transform_indices = @transform_5, window_bounds = array<i64: 9, 8, 32>}, {pipeline_mode = #tpu.pipeline_mode<synchronous>, transform_indices = @transform_6, window_bounds = array<i64: 8, 1>}, {pipeline_mode = #tpu.pipeline_mode<synchronous>, transform_indices = @transform_7, window_bounds = array<i64: 9, 1, 256>}, {transform_indices = @transform_8, window_bounds = array<i64: 32, 256>}, {transform_indices = @transform_9, window_bounds = array<i64: 8, 256>}]} {
    %c0 = arith.constant 0 : index
    %c0_0 = arith.constant 0 : index
    %0 = vector.load %arg9[%c0, %c0_0] : memref<32x256xf32, #tpu.memory_space<vmem>>, vector<32x256xf32>
    %c0_1 = arith.constant 0 : index
    %1 = memref.load %arg1[%c0_1] : memref<3xf32, #tpu.memory_space<smem>>
    %cst = arith.constant 0.000000e+00 : f32
    %2 = vector.broadcast %cst : f32 to vector<8x256xf32>
    %3 = vector.extract_strided_slice %0 {offsets = [0, 239], sizes = [32, 17], strides = [1, 1]} : vector<32x256xf32> to vector<32x17xf32>
    %4 = vector.extract_strided_slice %0 {offsets = [0, 0], sizes = [32, 239], strides = [1, 1]} : vector<32x256xf32> to vector<32x239xf32>
    %5 = tpu.concatenate %3, %4 in 1 : vector<32x17xf32>, vector<32x239xf32> -> vector<32x256xf32>
    %c0_2 = arith.constant 0 : index
    %c0_3 = arith.constant 0 : index
    %c0_4 = arith.constant 0 : index
    %6 = vector.load %arg8[%c0_2, %c0_3, %c0_4] : memref<9x1x256xf32, #tpu.memory_space<vmem>>, vector<1x1x256xf32>
    %7 = vector.shape_cast %6 : vector<1x1x256xf32> to vector<1x256xf32>
    %8 = vector.broadcast %7 : vector<1x256xf32> to vector<32x256xf32>
    %9 = arith.mulf %5, %8 : vector<32x256xf32>
    %c0_5 = arith.constant 0 : index
    %c0_6 = arith.constant 0 : index
    %c0_7 = arith.constant 0 : index
    %10 = vector.load %arg2[%c0_5, %c0_6, %c0_7] : memref<9x8x32xf32, #tpu.memory_space<vmem>>, vector<1x8x32xf32>
    %11 = vector.shape_cast %10 : vector<1x8x32xf32> to vector<8x32xf32>
    %cst_8 = arith.constant dense<0.000000e+00> : vector<8x256xf32>
    %12 = tpu.matmul %11, %9, %cst_8 {dimension_numbers = #tpu.dot_dimension_numbers<[1], [0], [0], [1], [0, 0, 1, 1], [], []>} : vector<8x32xf32>, vector<32x256xf32>, vector<8x256xf32> -> vector<8x256xf32>
    %13 = arith.addf %2, %12 : vector<8x256xf32>
    %14 = vector.extract_strided_slice %0 {offsets = [0, 240], sizes = [32, 16], strides = [1, 1]} : vector<32x256xf32> to vector<32x16xf32>
    %15 = vector.extract_strided_slice %0 {offsets = [0, 0], sizes = [32, 240], strides = [1, 1]} : vector<32x256xf32> to vector<32x240xf32>
    %16 = tpu.concatenate %14, %15 in 1 : vector<32x16xf32>, vector<32x240xf32> -> vector<32x256xf32>
    %c1 = arith.constant 1 : index
    %c0_9 = arith.constant 0 : index
    %c0_10 = arith.constant 0 : index
    %17 = vector.load %arg8[%c1, %c0_9, %c0_10] : memref<9x1x256xf32, #tpu.memory_space<vmem>>, vector<1x1x256xf32>
    %18 = vector.shape_cast %17 : vector<1x1x256xf32> to vector<1x256xf32>
    %19 = vector.broadcast %18 : vector<1x256xf32> to vector<32x256xf32>
    %20 = arith.mulf %16, %19 : vector<32x256xf32>
    %c1_11 = arith.constant 1 : index
    %c0_12 = arith.constant 0 : index
    %c0_13 = arith.constant 0 : index
    %21 = vector.load %arg2[%c1_11, %c0_12, %c0_13] : memref<9x8x32xf32, #tpu.memory_space<vmem>>, vector<1x8x32xf32>
    %22 = vector.shape_cast %21 : vector<1x8x32xf32> to vector<8x32xf32>
    %cst_14 = arith.constant dense<0.000000e+00> : vector<8x256xf32>
    %23 = tpu.matmul %22, %20, %cst_14 {dimension_numbers = #tpu.dot_dimension_numbers<[1], [0], [0], [1], [0, 0, 1, 1], [], []>} : vector<8x32xf32>, vector<32x256xf32>, vector<8x256xf32> -> vector<8x256xf32>
    %24 = arith.addf %13, %23 : vector<8x256xf32>
    %25 = vector.extract_strided_slice %0 {offsets = [0, 241], sizes = [32, 15], strides = [1, 1]} : vector<32x256xf32> to vector<32x15xf32>
    %26 = vector.extract_strided_slice %0 {offsets = [0, 0], sizes = [32, 241], strides = [1, 1]} : vector<32x256xf32> to vector<32x241xf32>
    %27 = tpu.concatenate %25, %26 in 1 : vector<32x15xf32>, vector<32x241xf32> -> vector<32x256xf32>
    %c2 = arith.constant 2 : index
    %c0_15 = arith.constant 0 : index
    %c0_16 = arith.constant 0 : index
    %28 = vector.load %arg8[%c2, %c0_15, %c0_16] : memref<9x1x256xf32, #tpu.memory_space<vmem>>, vector<1x1x256xf32>
    %29 = vector.shape_cast %28 : vector<1x1x256xf32> to vector<1x256xf32>
    %30 = vector.broadcast %29 : vector<1x256xf32> to vector<32x256xf32>
    %31 = arith.mulf %27, %30 : vector<32x256xf32>
    %c2_17 = arith.constant 2 : index
    %c0_18 = arith.constant 0 : index
    %c0_19 = arith.constant 0 : index
    %32 = vector.load %arg2[%c2_17, %c0_18, %c0_19] : memref<9x8x32xf32, #tpu.memory_space<vmem>>, vector<1x8x32xf32>
    %33 = vector.shape_cast %32 : vector<1x8x32xf32> to vector<8x32xf32>
    %cst_20 = arith.constant dense<0.000000e+00> : vector<8x256xf32>
    %34 = tpu.matmul %33, %31, %cst_20 {dimension_numbers = #tpu.dot_dimension_numbers<[1], [0], [0], [1], [0, 0, 1, 1], [], []>} : vector<8x32xf32>, vector<32x256xf32>, vector<8x256xf32> -> vector<8x256xf32>
    %35 = arith.addf %24, %34 : vector<8x256xf32>
    %36 = vector.extract_strided_slice %0 {offsets = [0, 255], sizes = [32, 1], strides = [1, 1]} : vector<32x256xf32> to vector<32x1xf32>
    %37 = vector.extract_strided_slice %0 {offsets = [0, 0], sizes = [32, 255], strides = [1, 1]} : vector<32x256xf32> to vector<32x255xf32>
    %38 = tpu.concatenate %36, %37 in 1 : vector<32x1xf32>, vector<32x255xf32> -> vector<32x256xf32>
    %c3 = arith.constant 3 : index
    %c0_21 = arith.constant 0 : index
    %c0_22 = arith.constant 0 : index
    %39 = vector.load %arg8[%c3, %c0_21, %c0_22] : memref<9x1x256xf32, #tpu.memory_space<vmem>>, vector<1x1x256xf32>
    %40 = vector.shape_cast %39 : vector<1x1x256xf32> to vector<1x256xf32>
    %41 = vector.broadcast %40 : vector<1x256xf32> to vector<32x256xf32>
    %42 = arith.mulf %38, %41 : vector<32x256xf32>
    %c3_23 = arith.constant 3 : index
    %c0_24 = arith.constant 0 : index
    %c0_25 = arith.constant 0 : index
    %43 = vector.load %arg2[%c3_23, %c0_24, %c0_25] : memref<9x8x32xf32, #tpu.memory_space<vmem>>, vector<1x8x32xf32>
    %44 = vector.shape_cast %43 : vector<1x8x32xf32> to vector<8x32xf32>
    %cst_26 = arith.constant dense<0.000000e+00> : vector<8x256xf32>
    %45 = tpu.matmul %44, %42, %cst_26 {dimension_numbers = #tpu.dot_dimension_numbers<[1], [0], [0], [1], [0, 0, 1, 1], [], []>} : vector<8x32xf32>, vector<32x256xf32>, vector<8x256xf32> -> vector<8x256xf32>
    %46 = arith.addf %35, %45 : vector<8x256xf32>
    %c4 = arith.constant 4 : index
    %c0_27 = arith.constant 0 : index
    %c0_28 = arith.constant 0 : index
    %47 = vector.load %arg2[%c4, %c0_27, %c0_28] : memref<9x8x32xf32, #tpu.memory_space<vmem>>, vector<1x8x32xf32>
    %48 = vector.shape_cast %47 : vector<1x8x32xf32> to vector<8x32xf32>
    %cst_29 = arith.constant dense<0.000000e+00> : vector<8x256xf32>
    %49 = tpu.matmul %48, %0, %cst_29 {dimension_numbers = #tpu.dot_dimension_numbers<[1], [0], [0], [1], [0, 0, 1, 1], [], []>} : vector<8x32xf32>, vector<32x256xf32>, vector<8x256xf32> -> vector<8x256xf32>
    %50 = arith.addf %46, %49 : vector<8x256xf32>
    %51 = vector.extract_strided_slice %0 {offsets = [0, 1], sizes = [32, 255], strides = [1, 1]} : vector<32x256xf32> to vector<32x255xf32>
    %52 = vector.extract_strided_slice %0 {offsets = [0, 0], sizes = [32, 1], strides = [1, 1]} : vector<32x256xf32> to vector<32x1xf32>
    %53 = tpu.concatenate %51, %52 in 1 : vector<32x255xf32>, vector<32x1xf32> -> vector<32x256xf32>
    %c5 = arith.constant 5 : index
    %c0_30 = arith.constant 0 : index
    %c0_31 = arith.constant 0 : index
    %54 = vector.load %arg8[%c5, %c0_30, %c0_31] : memref<9x1x256xf32, #tpu.memory_space<vmem>>, vector<1x1x256xf32>
    %55 = vector.shape_cast %54 : vector<1x1x256xf32> to vector<1x256xf32>
    %56 = vector.broadcast %55 : vector<1x256xf32> to vector<32x256xf32>
    %57 = arith.mulf %53, %56 : vector<32x256xf32>
    %c5_32 = arith.constant 5 : index
    %c0_33 = arith.constant 0 : index
    %c0_34 = arith.constant 0 : index
    %58 = vector.load %arg2[%c5_32, %c0_33, %c0_34] : memref<9x8x32xf32, #tpu.memory_space<vmem>>, vector<1x8x32xf32>
    %59 = vector.shape_cast %58 : vector<1x8x32xf32> to vector<8x32xf32>
    %cst_35 = arith.constant dense<0.000000e+00> : vector<8x256xf32>
    %60 = tpu.matmul %59, %57, %cst_35 {dimension_numbers = #tpu.dot_dimension_numbers<[1], [0], [0], [1], [0, 0, 1, 1], [], []>} : vector<8x32xf32>, vector<32x256xf32>, vector<8x256xf32> -> vector<8x256xf32>
    %61 = arith.addf %50, %60 : vector<8x256xf32>
    %62 = vector.extract_strided_slice %0 {offsets = [0, 15], sizes = [32, 241], strides = [1, 1]} : vector<32x256xf32> to vector<32x241xf32>
    %63 = vector.extract_strided_slice %0 {offsets = [0, 0], sizes = [32, 15], strides = [1, 1]} : vector<32x256xf32> to vector<32x15xf32>
    %64 = tpu.concatenate %62, %63 in 1 : vector<32x241xf32>, vector<32x15xf32> -> vector<32x256xf32>
    %c6 = arith.constant 6 : index
    %c0_36 = arith.constant 0 : index
    %c0_37 = arith.constant 0 : index
    %65 = vector.load %arg8[%c6, %c0_36, %c0_37] : memref<9x1x256xf32, #tpu.memory_space<vmem>>, vector<1x1x256xf32>
    %66 = vector.shape_cast %65 : vector<1x1x256xf32> to vector<1x256xf32>
    %67 = vector.broadcast %66 : vector<1x256xf32> to vector<32x256xf32>
    %68 = arith.mulf %64, %67 : vector<32x256xf32>
    %c6_38 = arith.constant 6 : index
    %c0_39 = arith.constant 0 : index
    %c0_40 = arith.constant 0 : index
    %69 = vector.load %arg2[%c6_38, %c0_39, %c0_40] : memref<9x8x32xf32, #tpu.memory_space<vmem>>, vector<1x8x32xf32>
    %70 = vector.shape_cast %69 : vector<1x8x32xf32> to vector<8x32xf32>
    %cst_41 = arith.constant dense<0.000000e+00> : vector<8x256xf32>
    %71 = tpu.matmul %70, %68, %cst_41 {dimension_numbers = #tpu.dot_dimension_numbers<[1], [0], [0], [1], [0, 0, 1, 1], [], []>} : vector<8x32xf32>, vector<32x256xf32>, vector<8x256xf32> -> vector<8x256xf32>
    %72 = arith.addf %61, %71 : vector<8x256xf32>
    %73 = vector.extract_strided_slice %0 {offsets = [0, 16], sizes = [32, 240], strides = [1, 1]} : vector<32x256xf32> to vector<32x240xf32>
    %74 = vector.extract_strided_slice %0 {offsets = [0, 0], sizes = [32, 16], strides = [1, 1]} : vector<32x256xf32> to vector<32x16xf32>
    %75 = tpu.concatenate %73, %74 in 1 : vector<32x240xf32>, vector<32x16xf32> -> vector<32x256xf32>
    %c7 = arith.constant 7 : index
    %c0_42 = arith.constant 0 : index
    %c0_43 = arith.constant 0 : index
    %76 = vector.load %arg8[%c7, %c0_42, %c0_43] : memref<9x1x256xf32, #tpu.memory_space<vmem>>, vector<1x1x256xf32>
    %77 = vector.shape_cast %76 : vector<1x1x256xf32> to vector<1x256xf32>
    %78 = vector.broadcast %77 : vector<1x256xf32> to vector<32x256xf32>
    %79 = arith.mulf %75, %78 : vector<32x256xf32>
    %c7_44 = arith.constant 7 : index
    %c0_45 = arith.constant 0 : index
    %c0_46 = arith.constant 0 : index
    %80 = vector.load %arg2[%c7_44, %c0_45, %c0_46] : memref<9x8x32xf32, #tpu.memory_space<vmem>>, vector<1x8x32xf32>
    %81 = vector.shape_cast %80 : vector<1x8x32xf32> to vector<8x32xf32>
    %cst_47 = arith.constant dense<0.000000e+00> : vector<8x256xf32>
    %82 = tpu.matmul %81, %79, %cst_47 {dimension_numbers = #tpu.dot_dimension_numbers<[1], [0], [0], [1], [0, 0, 1, 1], [], []>} : vector<8x32xf32>, vector<32x256xf32>, vector<8x256xf32> -> vector<8x256xf32>
    %83 = arith.addf %72, %82 : vector<8x256xf32>
    %84 = vector.extract_strided_slice %0 {offsets = [0, 17], sizes = [32, 239], strides = [1, 1]} : vector<32x256xf32> to vector<32x239xf32>
    %85 = vector.extract_strided_slice %0 {offsets = [0, 0], sizes = [32, 17], strides = [1, 1]} : vector<32x256xf32> to vector<32x17xf32>
    %86 = tpu.concatenate %84, %85 in 1 : vector<32x239xf32>, vector<32x17xf32> -> vector<32x256xf32>
    %c8 = arith.constant 8 : index
    %c0_48 = arith.constant 0 : index
    %c0_49 = arith.constant 0 : index
    %87 = vector.load %arg8[%c8, %c0_48, %c0_49] : memref<9x1x256xf32, #tpu.memory_space<vmem>>, vector<1x1x256xf32>
    %88 = vector.shape_cast %87 : vector<1x1x256xf32> to vector<1x256xf32>
    %89 = vector.broadcast %88 : vector<1x256xf32> to vector<32x256xf32>
    %90 = arith.mulf %86, %89 : vector<32x256xf32>
    %c8_50 = arith.constant 8 : index
    %c0_51 = arith.constant 0 : index
    %c0_52 = arith.constant 0 : index
    %91 = vector.load %arg2[%c8_50, %c0_51, %c0_52] : memref<9x8x32xf32, #tpu.memory_space<vmem>>, vector<1x8x32xf32>
    %92 = vector.shape_cast %91 : vector<1x8x32xf32> to vector<8x32xf32>
    %cst_53 = arith.constant dense<0.000000e+00> : vector<8x256xf32>
    %93 = tpu.matmul %92, %90, %cst_53 {dimension_numbers = #tpu.dot_dimension_numbers<[1], [0], [0], [1], [0, 0, 1, 1], [], []>} : vector<8x32xf32>, vector<32x256xf32>, vector<8x256xf32> -> vector<8x256xf32>
    %94 = arith.addf %83, %93 : vector<8x256xf32>
    %c0_54 = arith.constant 0 : index
    %c0_55 = arith.constant 0 : index
    %95 = vector.load %arg3[%c0_54, %c0_55] : memref<8x1xf32, #tpu.memory_space<vmem>>, vector<8x1xf32>
    %96 = vector.broadcast %95 : vector<8x1xf32> to vector<8x256xf32>
    %97 = arith.addf %94, %96 : vector<8x256xf32>
    %cst_56 = arith.constant 0.000000e+00 : f32
    %98 = vector.broadcast %cst_56 : f32 to vector<8x256xf32>
    %99 = arith.cmpf oge, %97, %98 : vector<8x256xf32>
    %100 = vector.broadcast %1 : f32 to vector<8x256xf32>
    %101 = arith.mulf %100, %97 : vector<8x256xf32>
    %102 = arith.select %99, %97, %101 : vector<8x256xi1>, vector<8x256xf32>
    %c1_57 = arith.constant 1 : index
    %103 = memref.load %arg1[%c1_57] : memref<3xf32, #tpu.memory_space<smem>>
    %cst_58 = arith.constant 0.000000e+00 : f32
    %104 = vector.broadcast %cst_58 : f32 to vector<32x256xf32>
    %105 = vector.extract_strided_slice %102 {offsets = [0, 239], sizes = [8, 17], strides = [1, 1]} : vector<8x256xf32> to vector<8x17xf32>
    %106 = vector.extract_strided_slice %102 {offsets = [0, 0], sizes = [8, 239], strides = [1, 1]} : vector<8x256xf32> to vector<8x239xf32>
    %107 = tpu.concatenate %105, %106 in 1 : vector<8x17xf32>, vector<8x239xf32> -> vector<8x256xf32>
    %c0_59 = arith.constant 0 : index
    %c0_60 = arith.constant 0 : index
    %c0_61 = arith.constant 0 : index
    %108 = vector.load %arg8[%c0_59, %c0_60, %c0_61] : memref<9x1x256xf32, #tpu.memory_space<vmem>>, vector<1x1x256xf32>
    %109 = vector.shape_cast %108 : vector<1x1x256xf32> to vector<1x256xf32>
    %110 = vector.broadcast %109 : vector<1x256xf32> to vector<8x256xf32>
    %111 = arith.mulf %107, %110 : vector<8x256xf32>
    %c0_62 = arith.constant 0 : index
    %c0_63 = arith.constant 0 : index
    %c0_64 = arith.constant 0 : index
    %112 = vector.load %arg4[%c0_62, %c0_63, %c0_64] : memref<9x32x8xf32, #tpu.memory_space<vmem>>, vector<1x32x8xf32>
    %113 = vector.shape_cast %112 : vector<1x32x8xf32> to vector<32x8xf32>
    %cst_65 = arith.constant dense<0.000000e+00> : vector<32x256xf32>
    %114 = tpu.matmul %113, %111, %cst_65 {dimension_numbers = #tpu.dot_dimension_numbers<[1], [0], [0], [1], [0, 0, 1, 1], [], []>} : vector<32x8xf32>, vector<8x256xf32>, vector<32x256xf32> -> vector<32x256xf32>
    %115 = arith.addf %104, %114 : vector<32x256xf32>
    %116 = vector.extract_strided_slice %102 {offsets = [0, 240], sizes = [8, 16], strides = [1, 1]} : vector<8x256xf32> to vector<8x16xf32>
    %117 = vector.extract_strided_slice %102 {offsets = [0, 0], sizes = [8, 240], strides = [1, 1]} : vector<8x256xf32> to vector<8x240xf32>
    %118 = tpu.concatenate %116, %117 in 1 : vector<8x16xf32>, vector<8x240xf32> -> vector<8x256xf32>
    %c1_66 = arith.constant 1 : index
    %c0_67 = arith.constant 0 : index
    %c0_68 = arith.constant 0 : index
    %119 = vector.load %arg8[%c1_66, %c0_67, %c0_68] : memref<9x1x256xf32, #tpu.memory_space<vmem>>, vector<1x1x256xf32>
    %120 = vector.shape_cast %119 : vector<1x1x256xf32> to vector<1x256xf32>
    %121 = vector.broadcast %120 : vector<1x256xf32> to vector<8x256xf32>
    %122 = arith.mulf %118, %121 : vector<8x256xf32>
    %c1_69 = arith.constant 1 : index
    %c0_70 = arith.constant 0 : index
    %c0_71 = arith.constant 0 : index
    %123 = vector.load %arg4[%c1_69, %c0_70, %c0_71] : memref<9x32x8xf32, #tpu.memory_space<vmem>>, vector<1x32x8xf32>
    %124 = vector.shape_cast %123 : vector<1x32x8xf32> to vector<32x8xf32>
    %cst_72 = arith.constant dense<0.000000e+00> : vector<32x256xf32>
    %125 = tpu.matmul %124, %122, %cst_72 {dimension_numbers = #tpu.dot_dimension_numbers<[1], [0], [0], [1], [0, 0, 1, 1], [], []>} : vector<32x8xf32>, vector<8x256xf32>, vector<32x256xf32> -> vector<32x256xf32>
    %126 = arith.addf %115, %125 : vector<32x256xf32>
    %127 = vector.extract_strided_slice %102 {offsets = [0, 241], sizes = [8, 15], strides = [1, 1]} : vector<8x256xf32> to vector<8x15xf32>
    %128 = vector.extract_strided_slice %102 {offsets = [0, 0], sizes = [8, 241], strides = [1, 1]} : vector<8x256xf32> to vector<8x241xf32>
    %129 = tpu.concatenate %127, %128 in 1 : vector<8x15xf32>, vector<8x241xf32> -> vector<8x256xf32>
    %c2_73 = arith.constant 2 : index
    %c0_74 = arith.constant 0 : index
    %c0_75 = arith.constant 0 : index
    %130 = vector.load %arg8[%c2_73, %c0_74, %c0_75] : memref<9x1x256xf32, #tpu.memory_space<vmem>>, vector<1x1x256xf32>
    %131 = vector.shape_cast %130 : vector<1x1x256xf32> to vector<1x256xf32>
    %132 = vector.broadcast %131 : vector<1x256xf32> to vector<8x256xf32>
    %133 = arith.mulf %129, %132 : vector<8x256xf32>
    %c2_76 = arith.constant 2 : index
    %c0_77 = arith.constant 0 : index
    %c0_78 = arith.constant 0 : index
    %134 = vector.load %arg4[%c2_76, %c0_77, %c0_78] : memref<9x32x8xf32, #tpu.memory_space<vmem>>, vector<1x32x8xf32>
    %135 = vector.shape_cast %134 : vector<1x32x8xf32> to vector<32x8xf32>
    %cst_79 = arith.constant dense<0.000000e+00> : vector<32x256xf32>
    %136 = tpu.matmul %135, %133, %cst_79 {dimension_numbers = #tpu.dot_dimension_numbers<[1], [0], [0], [1], [0, 0, 1, 1], [], []>} : vector<32x8xf32>, vector<8x256xf32>, vector<32x256xf32> -> vector<32x256xf32>
    %137 = arith.addf %126, %136 : vector<32x256xf32>
    %138 = vector.extract_strided_slice %102 {offsets = [0, 255], sizes = [8, 1], strides = [1, 1]} : vector<8x256xf32> to vector<8x1xf32>
    %139 = vector.extract_strided_slice %102 {offsets = [0, 0], sizes = [8, 255], strides = [1, 1]} : vector<8x256xf32> to vector<8x255xf32>
    %140 = tpu.concatenate %138, %139 in 1 : vector<8x1xf32>, vector<8x255xf32> -> vector<8x256xf32>
    %c3_80 = arith.constant 3 : index
    %c0_81 = arith.constant 0 : index
    %c0_82 = arith.constant 0 : index
    %141 = vector.load %arg8[%c3_80, %c0_81, %c0_82] : memref<9x1x256xf32, #tpu.memory_space<vmem>>, vector<1x1x256xf32>
    %142 = vector.shape_cast %141 : vector<1x1x256xf32> to vector<1x256xf32>
    %143 = vector.broadcast %142 : vector<1x256xf32> to vector<8x256xf32>
    %144 = arith.mulf %140, %143 : vector<8x256xf32>
    %c3_83 = arith.constant 3 : index
    %c0_84 = arith.constant 0 : index
    %c0_85 = arith.constant 0 : index
    %145 = vector.load %arg4[%c3_83, %c0_84, %c0_85] : memref<9x32x8xf32, #tpu.memory_space<vmem>>, vector<1x32x8xf32>
    %146 = vector.shape_cast %145 : vector<1x32x8xf32> to vector<32x8xf32>
    %cst_86 = arith.constant dense<0.000000e+00> : vector<32x256xf32>
    %147 = tpu.matmul %146, %144, %cst_86 {dimension_numbers = #tpu.dot_dimension_numbers<[1], [0], [0], [1], [0, 0, 1, 1], [], []>} : vector<32x8xf32>, vector<8x256xf32>, vector<32x256xf32> -> vector<32x256xf32>
    %148 = arith.addf %137, %147 : vector<32x256xf32>
    %c4_87 = arith.constant 4 : index
    %c0_88 = arith.constant 0 : index
    %c0_89 = arith.constant 0 : index
    %149 = vector.load %arg4[%c4_87, %c0_88, %c0_89] : memref<9x32x8xf32, #tpu.memory_space<vmem>>, vector<1x32x8xf32>
    %150 = vector.shape_cast %149 : vector<1x32x8xf32> to vector<32x8xf32>
    %cst_90 = arith.constant dense<0.000000e+00> : vector<32x256xf32>
    %151 = tpu.matmul %150, %102, %cst_90 {dimension_numbers = #tpu.dot_dimension_numbers<[1], [0], [0], [1], [0, 0, 1, 1], [], []>} : vector<32x8xf32>, vector<8x256xf32>, vector<32x256xf32> -> vector<32x256xf32>
    %152 = arith.addf %148, %151 : vector<32x256xf32>
    %153 = vector.extract_strided_slice %102 {offsets = [0, 1], sizes = [8, 255], strides = [1, 1]} : vector<8x256xf32> to vector<8x255xf32>
    %154 = vector.extract_strided_slice %102 {offsets = [0, 0], sizes = [8, 1], strides = [1, 1]} : vector<8x256xf32> to vector<8x1xf32>
    %155 = tpu.concatenate %153, %154 in 1 : vector<8x255xf32>, vector<8x1xf32> -> vector<8x256xf32>
    %c5_91 = arith.constant 5 : index
    %c0_92 = arith.constant 0 : index
    %c0_93 = arith.constant 0 : index
    %156 = vector.load %arg8[%c5_91, %c0_92, %c0_93] : memref<9x1x256xf32, #tpu.memory_space<vmem>>, vector<1x1x256xf32>
    %157 = vector.shape_cast %156 : vector<1x1x256xf32> to vector<1x256xf32>
    %158 = vector.broadcast %157 : vector<1x256xf32> to vector<8x256xf32>
    %159 = arith.mulf %155, %158 : vector<8x256xf32>
    %c5_94 = arith.constant 5 : index
    %c0_95 = arith.constant 0 : index
    %c0_96 = arith.constant 0 : index
    %160 = vector.load %arg4[%c5_94, %c0_95, %c0_96] : memref<9x32x8xf32, #tpu.memory_space<vmem>>, vector<1x32x8xf32>
    %161 = vector.shape_cast %160 : vector<1x32x8xf32> to vector<32x8xf32>
    %cst_97 = arith.constant dense<0.000000e+00> : vector<32x256xf32>
    %162 = tpu.matmul %161, %159, %cst_97 {dimension_numbers = #tpu.dot_dimension_numbers<[1], [0], [0], [1], [0, 0, 1, 1], [], []>} : vector<32x8xf32>, vector<8x256xf32>, vector<32x256xf32> -> vector<32x256xf32>
    %163 = arith.addf %152, %162 : vector<32x256xf32>
    %164 = vector.extract_strided_slice %102 {offsets = [0, 15], sizes = [8, 241], strides = [1, 1]} : vector<8x256xf32> to vector<8x241xf32>
    %165 = vector.extract_strided_slice %102 {offsets = [0, 0], sizes = [8, 15], strides = [1, 1]} : vector<8x256xf32> to vector<8x15xf32>
    %166 = tpu.concatenate %164, %165 in 1 : vector<8x241xf32>, vector<8x15xf32> -> vector<8x256xf32>
    %c6_98 = arith.constant 6 : index
    %c0_99 = arith.constant 0 : index
    %c0_100 = arith.constant 0 : index
    %167 = vector.load %arg8[%c6_98, %c0_99, %c0_100] : memref<9x1x256xf32, #tpu.memory_space<vmem>>, vector<1x1x256xf32>
    %168 = vector.shape_cast %167 : vector<1x1x256xf32> to vector<1x256xf32>
    %169 = vector.broadcast %168 : vector<1x256xf32> to vector<8x256xf32>
    %170 = arith.mulf %166, %169 : vector<8x256xf32>
    %c6_101 = arith.constant 6 : index
    %c0_102 = arith.constant 0 : index
    %c0_103 = arith.constant 0 : index
    %171 = vector.load %arg4[%c6_101, %c0_102, %c0_103] : memref<9x32x8xf32, #tpu.memory_space<vmem>>, vector<1x32x8xf32>
    %172 = vector.shape_cast %171 : vector<1x32x8xf32> to vector<32x8xf32>
    %cst_104 = arith.constant dense<0.000000e+00> : vector<32x256xf32>
    %173 = tpu.matmul %172, %170, %cst_104 {dimension_numbers = #tpu.dot_dimension_numbers<[1], [0], [0], [1], [0, 0, 1, 1], [], []>} : vector<32x8xf32>, vector<8x256xf32>, vector<32x256xf32> -> vector<32x256xf32>
    %174 = arith.addf %163, %173 : vector<32x256xf32>
    %175 = vector.extract_strided_slice %102 {offsets = [0, 16], sizes = [8, 240], strides = [1, 1]} : vector<8x256xf32> to vector<8x240xf32>
    %176 = vector.extract_strided_slice %102 {offsets = [0, 0], sizes = [8, 16], strides = [1, 1]} : vector<8x256xf32> to vector<8x16xf32>
    %177 = tpu.concatenate %175, %176 in 1 : vector<8x240xf32>, vector<8x16xf32> -> vector<8x256xf32>
    %c7_105 = arith.constant 7 : index
    %c0_106 = arith.constant 0 : index
    %c0_107 = arith.constant 0 : index
    %178 = vector.load %arg8[%c7_105, %c0_106, %c0_107] : memref<9x1x256xf32, #tpu.memory_space<vmem>>, vector<1x1x256xf32>
    %179 = vector.shape_cast %178 : vector<1x1x256xf32> to vector<1x256xf32>
    %180 = vector.broadcast %179 : vector<1x256xf32> to vector<8x256xf32>
    %181 = arith.mulf %177, %180 : vector<8x256xf32>
    %c7_108 = arith.constant 7 : index
    %c0_109 = arith.constant 0 : index
    %c0_110 = arith.constant 0 : index
    %182 = vector.load %arg4[%c7_108, %c0_109, %c0_110] : memref<9x32x8xf32, #tpu.memory_space<vmem>>, vector<1x32x8xf32>
    %183 = vector.shape_cast %182 : vector<1x32x8xf32> to vector<32x8xf32>
    %cst_111 = arith.constant dense<0.000000e+00> : vector<32x256xf32>
    %184 = tpu.matmul %183, %181, %cst_111 {dimension_numbers = #tpu.dot_dimension_numbers<[1], [0], [0], [1], [0, 0, 1, 1], [], []>} : vector<32x8xf32>, vector<8x256xf32>, vector<32x256xf32> -> vector<32x256xf32>
    %185 = arith.addf %174, %184 : vector<32x256xf32>
    %186 = vector.extract_strided_slice %102 {offsets = [0, 17], sizes = [8, 239], strides = [1, 1]} : vector<8x256xf32> to vector<8x239xf32>
    %187 = vector.extract_strided_slice %102 {offsets = [0, 0], sizes = [8, 17], strides = [1, 1]} : vector<8x256xf32> to vector<8x17xf32>
    %188 = tpu.concatenate %186, %187 in 1 : vector<8x239xf32>, vector<8x17xf32> -> vector<8x256xf32>
    %c8_112 = arith.constant 8 : index
    %c0_113 = arith.constant 0 : index
    %c0_114 = arith.constant 0 : index
    %189 = vector.load %arg8[%c8_112, %c0_113, %c0_114] : memref<9x1x256xf32, #tpu.memory_space<vmem>>, vector<1x1x256xf32>
    %190 = vector.shape_cast %189 : vector<1x1x256xf32> to vector<1x256xf32>
    %191 = vector.broadcast %190 : vector<1x256xf32> to vector<8x256xf32>
    %192 = arith.mulf %188, %191 : vector<8x256xf32>
    %c8_115 = arith.constant 8 : index
    %c0_116 = arith.constant 0 : index
    %c0_117 = arith.constant 0 : index
    %193 = vector.load %arg4[%c8_115, %c0_116, %c0_117] : memref<9x32x8xf32, #tpu.memory_space<vmem>>, vector<1x32x8xf32>
    %194 = vector.shape_cast %193 : vector<1x32x8xf32> to vector<32x8xf32>
    %cst_118 = arith.constant dense<0.000000e+00> : vector<32x256xf32>
    %195 = tpu.matmul %194, %192, %cst_118 {dimension_numbers = #tpu.dot_dimension_numbers<[1], [0], [0], [1], [0, 0, 1, 1], [], []>} : vector<32x8xf32>, vector<8x256xf32>, vector<32x256xf32> -> vector<32x256xf32>
    %196 = arith.addf %185, %195 : vector<32x256xf32>
    %c0_119 = arith.constant 0 : index
    %c0_120 = arith.constant 0 : index
    %197 = vector.load %arg5[%c0_119, %c0_120] : memref<32x1xf32, #tpu.memory_space<vmem>>, vector<32x1xf32>
    %198 = vector.broadcast %197 : vector<32x1xf32> to vector<32x256xf32>
    %199 = arith.addf %196, %198 : vector<32x256xf32>
    %cst_121 = arith.constant 0.000000e+00 : f32
    %200 = vector.broadcast %cst_121 : f32 to vector<32x256xf32>
    %201 = arith.cmpf oge, %199, %200 : vector<32x256xf32>
    %202 = vector.broadcast %103 : f32 to vector<32x256xf32>
    %203 = arith.mulf %202, %199 : vector<32x256xf32>
    %204 = arith.select %201, %199, %203 : vector<32x256xi1>, vector<32x256xf32>
    %205 = arith.subf %204, %0 : vector<32x256xf32>
    %c2_122 = arith.constant 2 : index
    %206 = memref.load %arg1[%c2_122] : memref<3xf32, #tpu.memory_space<smem>>
    %cst_123 = arith.constant 0.000000e+00 : f32
    %207 = vector.broadcast %cst_123 : f32 to vector<8x256xf32>
    %208 = vector.extract_strided_slice %205 {offsets = [0, 239], sizes = [32, 17], strides = [1, 1]} : vector<32x256xf32> to vector<32x17xf32>
    %209 = vector.extract_strided_slice %205 {offsets = [0, 0], sizes = [32, 239], strides = [1, 1]} : vector<32x256xf32> to vector<32x239xf32>
    %210 = tpu.concatenate %208, %209 in 1 : vector<32x17xf32>, vector<32x239xf32> -> vector<32x256xf32>
    %c0_124 = arith.constant 0 : index
    %c0_125 = arith.constant 0 : index
    %c0_126 = arith.constant 0 : index
    %211 = vector.load %arg8[%c0_124, %c0_125, %c0_126] : memref<9x1x256xf32, #tpu.memory_space<vmem>>, vector<1x1x256xf32>
    %212 = vector.shape_cast %211 : vector<1x1x256xf32> to vector<1x256xf32>
    %213 = vector.broadcast %212 : vector<1x256xf32> to vector<32x256xf32>
    %214 = arith.mulf %210, %213 : vector<32x256xf32>
    %c0_127 = arith.constant 0 : index
    %c0_128 = arith.constant 0 : index
    %c0_129 = arith.constant 0 : index
    %215 = vector.load %arg6[%c0_127, %c0_128, %c0_129] : memref<9x8x32xf32, #tpu.memory_space<vmem>>, vector<1x8x32xf32>
    %216 = vector.shape_cast %215 : vector<1x8x32xf32> to vector<8x32xf32>
    %cst_130 = arith.constant dense<0.000000e+00> : vector<8x256xf32>
    %217 = tpu.matmul %216, %214, %cst_130 {dimension_numbers = #tpu.dot_dimension_numbers<[1], [0], [0], [1], [0, 0, 1, 1], [], []>} : vector<8x32xf32>, vector<32x256xf32>, vector<8x256xf32> -> vector<8x256xf32>
    %218 = arith.addf %207, %217 : vector<8x256xf32>
    %219 = vector.extract_strided_slice %205 {offsets = [0, 240], sizes = [32, 16], strides = [1, 1]} : vector<32x256xf32> to vector<32x16xf32>
    %220 = vector.extract_strided_slice %205 {offsets = [0, 0], sizes = [32, 240], strides = [1, 1]} : vector<32x256xf32> to vector<32x240xf32>
    %221 = tpu.concatenate %219, %220 in 1 : vector<32x16xf32>, vector<32x240xf32> -> vector<32x256xf32>
    %c1_131 = arith.constant 1 : index
    %c0_132 = arith.constant 0 : index
    %c0_133 = arith.constant 0 : index
    %222 = vector.load %arg8[%c1_131, %c0_132, %c0_133] : memref<9x1x256xf32, #tpu.memory_space<vmem>>, vector<1x1x256xf32>
    %223 = vector.shape_cast %222 : vector<1x1x256xf32> to vector<1x256xf32>
    %224 = vector.broadcast %223 : vector<1x256xf32> to vector<32x256xf32>
    %225 = arith.mulf %221, %224 : vector<32x256xf32>
    %c1_134 = arith.constant 1 : index
    %c0_135 = arith.constant 0 : index
    %c0_136 = arith.constant 0 : index
    %226 = vector.load %arg6[%c1_134, %c0_135, %c0_136] : memref<9x8x32xf32, #tpu.memory_space<vmem>>, vector<1x8x32xf32>
    %227 = vector.shape_cast %226 : vector<1x8x32xf32> to vector<8x32xf32>
    %cst_137 = arith.constant dense<0.000000e+00> : vector<8x256xf32>
    %228 = tpu.matmul %227, %225, %cst_137 {dimension_numbers = #tpu.dot_dimension_numbers<[1], [0], [0], [1], [0, 0, 1, 1], [], []>} : vector<8x32xf32>, vector<32x256xf32>, vector<8x256xf32> -> vector<8x256xf32>
    %229 = arith.addf %218, %228 : vector<8x256xf32>
    %230 = vector.extract_strided_slice %205 {offsets = [0, 241], sizes = [32, 15], strides = [1, 1]} : vector<32x256xf32> to vector<32x15xf32>
    %231 = vector.extract_strided_slice %205 {offsets = [0, 0], sizes = [32, 241], strides = [1, 1]} : vector<32x256xf32> to vector<32x241xf32>
    %232 = tpu.concatenate %230, %231 in 1 : vector<32x15xf32>, vector<32x241xf32> -> vector<32x256xf32>
    %c2_138 = arith.constant 2 : index
    %c0_139 = arith.constant 0 : index
    %c0_140 = arith.constant 0 : index
    %233 = vector.load %arg8[%c2_138, %c0_139, %c0_140] : memref<9x1x256xf32, #tpu.memory_space<vmem>>, vector<1x1x256xf32>
    %234 = vector.shape_cast %233 : vector<1x1x256xf32> to vector<1x256xf32>
    %235 = vector.broadcast %234 : vector<1x256xf32> to vector<32x256xf32>
    %236 = arith.mulf %232, %235 : vector<32x256xf32>
    %c2_141 = arith.constant 2 : index
    %c0_142 = arith.constant 0 : index
    %c0_143 = arith.constant 0 : index
    %237 = vector.load %arg6[%c2_141, %c0_142, %c0_143] : memref<9x8x32xf32, #tpu.memory_space<vmem>>, vector<1x8x32xf32>
    %238 = vector.shape_cast %237 : vector<1x8x32xf32> to vector<8x32xf32>
    %cst_144 = arith.constant dense<0.000000e+00> : vector<8x256xf32>
    %239 = tpu.matmul %238, %236, %cst_144 {dimension_numbers = #tpu.dot_dimension_numbers<[1], [0], [0], [1], [0, 0, 1, 1], [], []>} : vector<8x32xf32>, vector<32x256xf32>, vector<8x256xf32> -> vector<8x256xf32>
    %240 = arith.addf %229, %239 : vector<8x256xf32>
    %241 = vector.extract_strided_slice %205 {offsets = [0, 255], sizes = [32, 1], strides = [1, 1]} : vector<32x256xf32> to vector<32x1xf32>
    %242 = vector.extract_strided_slice %205 {offsets = [0, 0], sizes = [32, 255], strides = [1, 1]} : vector<32x256xf32> to vector<32x255xf32>
    %243 = tpu.concatenate %241, %242 in 1 : vector<32x1xf32>, vector<32x255xf32> -> vector<32x256xf32>
    %c3_145 = arith.constant 3 : index
    %c0_146 = arith.constant 0 : index
    %c0_147 = arith.constant 0 : index
    %244 = vector.load %arg8[%c3_145, %c0_146, %c0_147] : memref<9x1x256xf32, #tpu.memory_space<vmem>>, vector<1x1x256xf32>
    %245 = vector.shape_cast %244 : vector<1x1x256xf32> to vector<1x256xf32>
    %246 = vector.broadcast %245 : vector<1x256xf32> to vector<32x256xf32>
    %247 = arith.mulf %243, %246 : vector<32x256xf32>
    %c3_148 = arith.constant 3 : index
    %c0_149 = arith.constant 0 : index
    %c0_150 = arith.constant 0 : index
    %248 = vector.load %arg6[%c3_148, %c0_149, %c0_150] : memref<9x8x32xf32, #tpu.memory_space<vmem>>, vector<1x8x32xf32>
    %249 = vector.shape_cast %248 : vector<1x8x32xf32> to vector<8x32xf32>
    %cst_151 = arith.constant dense<0.000000e+00> : vector<8x256xf32>
    %250 = tpu.matmul %249, %247, %cst_151 {dimension_numbers = #tpu.dot_dimension_numbers<[1], [0], [0], [1], [0, 0, 1, 1], [], []>} : vector<8x32xf32>, vector<32x256xf32>, vector<8x256xf32> -> vector<8x256xf32>
    %251 = arith.addf %240, %250 : vector<8x256xf32>
    %c4_152 = arith.constant 4 : index
    %c0_153 = arith.constant 0 : index
    %c0_154 = arith.constant 0 : index
    %252 = vector.load %arg6[%c4_152, %c0_153, %c0_154] : memref<9x8x32xf32, #tpu.memory_space<vmem>>, vector<1x8x32xf32>
    %253 = vector.shape_cast %252 : vector<1x8x32xf32> to vector<8x32xf32>
    %cst_155 = arith.constant dense<0.000000e+00> : vector<8x256xf32>
    %254 = tpu.matmul %253, %205, %cst_155 {dimension_numbers = #tpu.dot_dimension_numbers<[1], [0], [0], [1], [0, 0, 1, 1], [], []>} : vector<8x32xf32>, vector<32x256xf32>, vector<8x256xf32> -> vector<8x256xf32>
    %255 = arith.addf %251, %254 : vector<8x256xf32>
    %256 = vector.extract_strided_slice %205 {offsets = [0, 1], sizes = [32, 255], strides = [1, 1]} : vector<32x256xf32> to vector<32x255xf32>
    %257 = vector.extract_strided_slice %205 {offsets = [0, 0], sizes = [32, 1], strides = [1, 1]} : vector<32x256xf32> to vector<32x1xf32>
    %258 = tpu.concatenate %256, %257 in 1 : vector<32x255xf32>, vector<32x1xf32> -> vector<32x256xf32>
    %c5_156 = arith.constant 5 : index
    %c0_157 = arith.constant 0 : index
    %c0_158 = arith.constant 0 : index
    %259 = vector.load %arg8[%c5_156, %c0_157, %c0_158] : memref<9x1x256xf32, #tpu.memory_space<vmem>>, vector<1x1x256xf32>
    %260 = vector.shape_cast %259 : vector<1x1x256xf32> to vector<1x256xf32>
    %261 = vector.broadcast %260 : vector<1x256xf32> to vector<32x256xf32>
    %262 = arith.mulf %258, %261 : vector<32x256xf32>
    %c5_159 = arith.constant 5 : index
    %c0_160 = arith.constant 0 : index
    %c0_161 = arith.constant 0 : index
    %263 = vector.load %arg6[%c5_159, %c0_160, %c0_161] : memref<9x8x32xf32, #tpu.memory_space<vmem>>, vector<1x8x32xf32>
    %264 = vector.shape_cast %263 : vector<1x8x32xf32> to vector<8x32xf32>
    %cst_162 = arith.constant dense<0.000000e+00> : vector<8x256xf32>
    %265 = tpu.matmul %264, %262, %cst_162 {dimension_numbers = #tpu.dot_dimension_numbers<[1], [0], [0], [1], [0, 0, 1, 1], [], []>} : vector<8x32xf32>, vector<32x256xf32>, vector<8x256xf32> -> vector<8x256xf32>
    %266 = arith.addf %255, %265 : vector<8x256xf32>
    %267 = vector.extract_strided_slice %205 {offsets = [0, 15], sizes = [32, 241], strides = [1, 1]} : vector<32x256xf32> to vector<32x241xf32>
    %268 = vector.extract_strided_slice %205 {offsets = [0, 0], sizes = [32, 15], strides = [1, 1]} : vector<32x256xf32> to vector<32x15xf32>
    %269 = tpu.concatenate %267, %268 in 1 : vector<32x241xf32>, vector<32x15xf32> -> vector<32x256xf32>
    %c6_163 = arith.constant 6 : index
    %c0_164 = arith.constant 0 : index
    %c0_165 = arith.constant 0 : index
    %270 = vector.load %arg8[%c6_163, %c0_164, %c0_165] : memref<9x1x256xf32, #tpu.memory_space<vmem>>, vector<1x1x256xf32>
    %271 = vector.shape_cast %270 : vector<1x1x256xf32> to vector<1x256xf32>
    %272 = vector.broadcast %271 : vector<1x256xf32> to vector<32x256xf32>
    %273 = arith.mulf %269, %272 : vector<32x256xf32>
    %c6_166 = arith.constant 6 : index
    %c0_167 = arith.constant 0 : index
    %c0_168 = arith.constant 0 : index
    %274 = vector.load %arg6[%c6_166, %c0_167, %c0_168] : memref<9x8x32xf32, #tpu.memory_space<vmem>>, vector<1x8x32xf32>
    %275 = vector.shape_cast %274 : vector<1x8x32xf32> to vector<8x32xf32>
    %cst_169 = arith.constant dense<0.000000e+00> : vector<8x256xf32>
    %276 = tpu.matmul %275, %273, %cst_169 {dimension_numbers = #tpu.dot_dimension_numbers<[1], [0], [0], [1], [0, 0, 1, 1], [], []>} : vector<8x32xf32>, vector<32x256xf32>, vector<8x256xf32> -> vector<8x256xf32>
    %277 = arith.addf %266, %276 : vector<8x256xf32>
    %278 = vector.extract_strided_slice %205 {offsets = [0, 16], sizes = [32, 240], strides = [1, 1]} : vector<32x256xf32> to vector<32x240xf32>
    %279 = vector.extract_strided_slice %205 {offsets = [0, 0], sizes = [32, 16], strides = [1, 1]} : vector<32x256xf32> to vector<32x16xf32>
    %280 = tpu.concatenate %278, %279 in 1 : vector<32x240xf32>, vector<32x16xf32> -> vector<32x256xf32>
    %c7_170 = arith.constant 7 : index
    %c0_171 = arith.constant 0 : index
    %c0_172 = arith.constant 0 : index
    %281 = vector.load %arg8[%c7_170, %c0_171, %c0_172] : memref<9x1x256xf32, #tpu.memory_space<vmem>>, vector<1x1x256xf32>
    %282 = vector.shape_cast %281 : vector<1x1x256xf32> to vector<1x256xf32>
    %283 = vector.broadcast %282 : vector<1x256xf32> to vector<32x256xf32>
    %284 = arith.mulf %280, %283 : vector<32x256xf32>
    %c7_173 = arith.constant 7 : index
    %c0_174 = arith.constant 0 : index
    %c0_175 = arith.constant 0 : index
    %285 = vector.load %arg6[%c7_173, %c0_174, %c0_175] : memref<9x8x32xf32, #tpu.memory_space<vmem>>, vector<1x8x32xf32>
    %286 = vector.shape_cast %285 : vector<1x8x32xf32> to vector<8x32xf32>
    %cst_176 = arith.constant dense<0.000000e+00> : vector<8x256xf32>
    %287 = tpu.matmul %286, %284, %cst_176 {dimension_numbers = #tpu.dot_dimension_numbers<[1], [0], [0], [1], [0, 0, 1, 1], [], []>} : vector<8x32xf32>, vector<32x256xf32>, vector<8x256xf32> -> vector<8x256xf32>
    %288 = arith.addf %277, %287 : vector<8x256xf32>
    %289 = vector.extract_strided_slice %205 {offsets = [0, 17], sizes = [32, 239], strides = [1, 1]} : vector<32x256xf32> to vector<32x239xf32>
    %290 = vector.extract_strided_slice %205 {offsets = [0, 0], sizes = [32, 17], strides = [1, 1]} : vector<32x256xf32> to vector<32x17xf32>
    %291 = tpu.concatenate %289, %290 in 1 : vector<32x239xf32>, vector<32x17xf32> -> vector<32x256xf32>
    %c8_177 = arith.constant 8 : index
    %c0_178 = arith.constant 0 : index
    %c0_179 = arith.constant 0 : index
    %292 = vector.load %arg8[%c8_177, %c0_178, %c0_179] : memref<9x1x256xf32, #tpu.memory_space<vmem>>, vector<1x1x256xf32>
    %293 = vector.shape_cast %292 : vector<1x1x256xf32> to vector<1x256xf32>
    %294 = vector.broadcast %293 : vector<1x256xf32> to vector<32x256xf32>
    %295 = arith.mulf %291, %294 : vector<32x256xf32>
    %c8_180 = arith.constant 8 : index
    %c0_181 = arith.constant 0 : index
    %c0_182 = arith.constant 0 : index
    %296 = vector.load %arg6[%c8_180, %c0_181, %c0_182] : memref<9x8x32xf32, #tpu.memory_space<vmem>>, vector<1x8x32xf32>
    %297 = vector.shape_cast %296 : vector<1x8x32xf32> to vector<8x32xf32>
    %cst_183 = arith.constant dense<0.000000e+00> : vector<8x256xf32>
    %298 = tpu.matmul %297, %295, %cst_183 {dimension_numbers = #tpu.dot_dimension_numbers<[1], [0], [0], [1], [0, 0, 1, 1], [], []>} : vector<8x32xf32>, vector<32x256xf32>, vector<8x256xf32> -> vector<8x256xf32>
    %299 = arith.addf %288, %298 : vector<8x256xf32>
    %c0_184 = arith.constant 0 : index
    %c0_185 = arith.constant 0 : index
    %300 = vector.load %arg7[%c0_184, %c0_185] : memref<8x1xf32, #tpu.memory_space<vmem>>, vector<8x1xf32>
    %301 = vector.broadcast %300 : vector<8x1xf32> to vector<8x256xf32>
    %302 = arith.addf %299, %301 : vector<8x256xf32>
    %cst_186 = arith.constant 0.000000e+00 : f32
    %303 = vector.broadcast %cst_186 : f32 to vector<8x256xf32>
    %304 = arith.cmpf oge, %302, %303 : vector<8x256xf32>
    %305 = vector.broadcast %206 : f32 to vector<8x256xf32>
    %306 = arith.mulf %305, %302 : vector<8x256xf32>
    %307 = arith.select %304, %302, %306 : vector<8x256xi1>, vector<8x256xf32>
    %308 = arith.addf %307, %102 : vector<8x256xf32>
    %c0_187 = arith.constant 0 : index
    %c0_188 = arith.constant 0 : index
    %309 = vector.load %arg10[%c0_187, %c0_188] : memref<8x256xf32, #tpu.memory_space<vmem>>, vector<8x256xf32>
    tpu.vector_store %arg10[%c0_187, %c0_188], %308 {strides = array<i32>} : memref<8x256xf32, #tpu.memory_space<vmem>>, vector<8x256xf32>,
    return
  }
  func.func @transform_0(%arg0: i32) -> i32 {
    %c0_i32 = arith.constant 0 : i32
    %c0_i32_0 = arith.constant 0 : i32
    return %c0_i32 : i32
  }
  func.func @transform_1(%arg0: i32) -> (i32, i32, i32) {
    %c0_i32 = arith.constant 0 : i32
    %c0_i32_0 = arith.constant 0 : i32
    %c0_i32_1 = arith.constant 0 : i32
    %c0_i32_2 = arith.constant 0 : i32
    return %c0_i32, %c0_i32_0, %c0_i32_1 : i32, i32, i32
  }
  func.func @transform_2(%arg0: i32) -> (i32, i32) {
    %c0_i32 = arith.constant 0 : i32
    %c0_i32_0 = arith.constant 0 : i32
    %c0_i32_1 = arith.constant 0 : i32
    return %c0_i32, %c0_i32_0 : i32, i32
  }
  func.func @transform_3(%arg0: i32) -> (i32, i32, i32) {
    %c0_i32 = arith.constant 0 : i32
    %c0_i32_0 = arith.constant 0 : i32
    %c0_i32_1 = arith.constant 0 : i32
    %c0_i32_2 = arith.constant 0 : i32
    return %c0_i32, %c0_i32_0, %c0_i32_1 : i32, i32, i32
  }
  func.func @transform_4(%arg0: i32) -> (i32, i32) {
    %c0_i32 = arith.constant 0 : i32
    %c0_i32_0 = arith.constant 0 : i32
    %c0_i32_1 = arith.constant 0 : i32
    return %c0_i32, %c0_i32_0 : i32, i32
  }
  func.func @transform_5(%arg0: i32) -> (i32, i32, i32) {
    %c0_i32 = arith.constant 0 : i32
    %c0_i32_0 = arith.constant 0 : i32
    %c0_i32_1 = arith.constant 0 : i32
    %c0_i32_2 = arith.constant 0 : i32
    return %c0_i32, %c0_i32_0, %c0_i32_1 : i32, i32, i32
  }
  func.func @transform_6(%arg0: i32) -> (i32, i32) {
    %c0_i32 = arith.constant 0 : i32
    %c0_i32_0 = arith.constant 0 : i32
    %c0_i32_1 = arith.constant 0 : i32
    return %c0_i32, %c0_i32_0 : i32, i32
  }
  func.func @transform_7(%arg0: i32) -> (i32, i32, i32) {
    %c0_i32 = arith.constant 0 : i32
    %c0_i32_0 = arith.constant 0 : i32
    %c0_i32_1 = arith.constant 0 : i32
    %c0_i32_2 = arith.constant 0 : i32
    return %c0_i32, %c0_i32_0, %c0_i32_1 : i32, i32, i32
  }
  func.func @transform_8(%arg0: i32) -> (i32, i32) {
    %c0_i32 = arith.constant 0 : i32
    %c0_i32_0 = arith.constant 0 : i32
    return %c0_i32, %arg0 : i32, i32
  }
  func.func @transform_9(%arg0: i32) -> (i32, i32) {
    %c0_i32 = arith.constant 0 : i32
    %c0_i32_0 = arith.constant 0 : i32
    return %c0_i32, %arg0 : i32, i32
  }
}

</mosaic_0001>

<bundles_post_ra>
// kernel: pbpn_block.3
= control target key start
LH: loop header
LB: loop body
LE: loop exit
PB: predicated region body
PF: predicated region fallthrough
CT: control target
= control target key end

     0   :  { %14 = vsyncpa [#allocation3], 0  ;;  %s4419_s30 = smov 0   ;;  %s4421_s10 = smov 0   ;;  %s5627_s0 = inlined_call_operand.vmem [shape: f32[3], index: 0, kind: input, shape index: {}]   ;;  %s5628_s1 = inlined_call_operand.vmem [shape: f32[9,8,32], index: 1, kind: input, shape index: {}]   ;;  %s5629_s2 = inlined_call_operand.vmem [shape: f32[8,1], index: 2, kind: input, shape index: {}]   ;;  %s5630_s3 = inlined_call_operand.vmem [shape: f32[9,32,8], index: 3, kind: input, shape index: {}]   ;;  %s5631_s4 = inlined_call_operand.vmem [shape: f32[32,1], index: 4, kind: input, shape index: {}]   ;;  %s5632_s5 = inlined_call_operand.vmem [shape: f32[9,8,32], index: 5, kind: input, shape index: {}]   ;;  %s5633_s6 = inlined_call_operand.vmem [shape: f32[8,1], index: 6, kind: input, shape index: {}]   ;;  %s5634_s7 = inlined_call_operand.vmem [shape: f32[9,1,256], index: 7, kind: input, shape index: {}]   ;;  %s5635_s8 = inlined_call_operand.vmem [shape: f32[32,512], index: 8, kind: input, shape index: {}]   ;;  %s5636_s9 = inlined_call_operand.vmem [shape: f32[8,512], index: 9, kind: output, shape index: {}]  }
   0x1   :  { %s4423_s11 = smov 0  }
   0x2 LB: > { %s3893_s12 = sadd.s32 4294967295, %s4356_s11   ;;  %s4436_s13 = sadd.s32 1, %s4356_s11   ;;  %s4356_s11 = sphi %s4423_s11, %s5660_s11   ;;  %s4352_s10 = sphi %s4421_s10, %s5659_s10   ;;  %s4348_s30 = sphi %s4419_s30, %s5658_s30  }
   0x3   : > { %s192_s14 = ssub.s32 %s4356_s11, %s4436_s13  ;;  %s195_s15 = sadd.s32 1, %s4352_s10 }
   0x4   : > { %p193_p0 = scmp.eq.s32.totalorder %s192_s14, 0  ;;  %p202_p1 = scmp.ne.s32.totalorder %s4352_s10, %s4348_s30 }
   0x5   : > { %p203_p2 = scmp.eq.s32.totalorder %s4356_s11, 0  ;;  %p3895_p3 = scmp.ge.s32.totalorder %s4356_s11, 1 }
   0x6   : > { %s4446_s16 = scalar_select %p193_p0, %s4352_s10, %s195_s15  }
   0x7   : > { %p4448_p4 = por %p203_p2, %p202_p1  ;;  %p245_p5 = scmp.lt.s32.totalorder %s4356_s11, 3 }
   0x8   : > { %p4455_p6 = scmp.eq.s32.totalorder %s3893_s12, 0  ;;  %s258_s22 = sshll.u32 %s5627_s0, 4  ;;  %s259_s22 = int_to_ptr.vmem [resolvable:$true] %s258_s22 }
   0x9   : > { %p4459_p7 = pnand %p3895_p3, %p245_p5  ;;  %s4315_s23 = scalar_lea.vmem %s259_s22, 16 }
   0xa   : > { %p4316_p10 = scmp.ne.s32.totalorder %s259_s22, %s4315_s23  ;;  %p4323_p0 = scmp.lt.s32.totalorder %s259_s22, %s259_s22 }
   0xb   : > { %p4264_p8 = pneg %p4459_p7  ;;  %p4324_p1 = scmp.lt.s32.totalorder %s4315_s23, %s4315_s23 }
   0xd   : > { %p4265_p9 = pnand %p4455_p6, %p4264_p8  ;;  %p4325_p2 = por %p4324_p1, %p4323_p0 }
   0xf   : > { %p4317_p11 = pneg %p4265_p9 }
  0x11   : > { %p4318_p12 = pnand %p4317_p11, %p4316_p10 }
  0x13   : > { %p4319_p13 = pneg %p4318_p12 }
  0x15   : > { %p4326_p3 = pnand %p4325_p2, %p4319_p13 }
  0x17   : > { %4329 = shalt.err (!%p4326_p3)
}
  0x18   : > { %s4358_s24 = smov [#allocation2]   ;;  %p3897_p5 = scmp.ge.s32.totalorder %s4356_s11, 2 }
  0x19   : > { %4267 = dma.vmem_to_smem (!%p4265_p9), %s259_s22, 16, %s4358_s24, [#allocation3]  }
  0x1a   : > { %286 = sbr.rel (%p3897_p5) target bundleno = 41 (0x29), region = 48 }
  0x21   : > { %289 = sbr.rel (!%p4448_p4) target bundleno = 41 (0x29), region = 52  ;;  %s291_s25 = sand.u32 (%p4448_p4), 1, %s4352_s10  }
  0x22   : > { %s4019_s26 = sshll.u32 (%p4448_p4), %s4356_s11, 4  ;;  %s3898_s27 = sshll.u32 (%p4448_p4), %s291_s25, 6 }
  0x23   : > { %s296_s14 = scalar_lea.vmem (%p4448_p4), %s5635_s8, %s4019_s26  ;;  %s293_s15 = scalar_lea.vmem (%p4448_p4), [#allocation4], %s3898_s27 }
  0x24   : > { %v309_v0 = vld [vmem:[%s296_s14] sm:$0xff] (%p4448_p4)  ;;  %v311_v1 = vld [vmem:[%s296_s14 + $0x8] sm:$0xff] (%p4448_p4) }
  0x25   : > { %v313_v2 = vld [vmem:[%s296_s14 + $0x20] sm:$0xff] (%p4448_p4)  ;;  %310 = vst [vmem:[%s293_s15] sm:$0xff] (%p4448_p4), %v309_v0  ;;  %312 = vst [vmem:[%s293_s15 + $0x8] sm:$0xff] (%p4448_p4), %v311_v1  ;;  %v315_v3 = vld [vmem:[%s296_s14 + $0x28] sm:$0xff] (%p4448_p4) }
  0x26   : > { %314 = vst [vmem:[%s293_s15 + $0x10] sm:$0xff] (%p4448_p4), %v313_v2  ;;  %v317_v4 = vld [vmem:[%s296_s14 + $0x40] sm:$0xff] (%p4448_p4)  ;;  %v319_v5 = vld [vmem:[%s296_s14 + $0x48] sm:$0xff] (%p4448_p4)  ;;  %316 = vst [vmem:[%s293_s15 + $0x18] sm:$0xff] (%p4448_p4), %v315_v3 }
  0x27   : > { %318 = vst [vmem:[%s293_s15 + $0x20] sm:$0xff] (%p4448_p4), %v317_v4  ;;  %320 = vst [vmem:[%s293_s15 + $0x28] sm:$0xff] (%p4448_p4), %v319_v5  ;;  %v321_v6 = vld [vmem:[%s296_s14 + $0x60] sm:$0xff] (%p4448_p4)  ;;  %v323_v7 = vld [vmem:[%s296_s14 + $0x68] sm:$0xff] (%p4448_p4) }
  0x28   : > { %322 = vst [vmem:[%s293_s15 + $0x30] sm:$0xff] %v321_v6  ;;  %324 = vst [vmem:[%s293_s15 + $0x38] sm:$0xff] %v323_v7 }
  0x29 PF: > { %333 = sbr.rel (%p4459_p7) target bundleno = 1461 (0x5b5), region = 75 }
  0x30   : > { %4343 = dma.done.wait (%p4455_p6), [#allocation3], 16  }
  0x31   : > { %4345 = vsyncadd (%p4455_p6), [#allocation3], 4294967280  ;;  %s340_s17 = sand.u32 1, %s4348_s30  }
  0x32   : > { %s3903_s20 = sshll.u32 %s340_s17, 6 }
  0x33   : > { %s4485_s21 = scalar_lea.vmem [#allocation4], %s3903_s20 }
  0x34   : > { %346 = sfence }
  0x35   : > { %v4488_v8 = vld [vmem:[%s4485_s21 + $0x8] sm:$0xff]  ;;  %v4491_v9 = vld [vmem:[%s4485_s21] sm:$0xff]  ;;  %s4359_s18 = smov 16   ;;  %v4498_v10 = vld [vmem:[%s4485_s21 + $0x18] sm:$0xff]  ;;  %v5637_v16 = vmov 0.0   ;;  %s4361_s30 = smov 17   ;;  %v439_v17 = vlaneseq }
  0x36   : > { %458 = vrot.lane.b32.xlu0 %v4488_v8, %s4359_s18  ;;  %470 = vrot.lane.b32.xlu1 %v4491_v9, %s4359_s18  ;;  %v4501_v11 = vld [vmem:[%s4485_s21 + $0x10] sm:$0xff]  ;;  %v4508_v12 = vld [vmem:[%s4485_s21 + $0x28] sm:$0xff]  ;;  %s4362_s19 = smov 15   ;;  %s4363_s22 = smov 1   ;;  %vm478_vm0 = vcmask 130048   ;;  %v4368_v36 = vmov 0  }
  0x37   : > { %v4511_v13 = vld [vmem:[%s4485_s21 + $0x38] sm:$0xff]  ;;  %v4518_v14 = vld [vmem:[%s4485_s21 + $0x20] sm:$0xff]  ;;  %v4521_v15 = vld [vmem:[%s4485_s21 + $0x30] sm:$0xff]  ;;  %586 = vmatprep.mubr.f32.mxu0 %v5637_v16  ;;  %1687 = vmatprep.mubr.f32.mxu1 %v5637_v16  ;;  %s4364_s23 = smov 127   ;;  %s4365_s24 = smov 113   ;;  %v440_v18 = vshrl.u32 %v439_v17, 7 }
  0x38   : > { %s4366_s25 = smov 112   ;;  %s4367_s26 = smov 111   ;;  %v3906_v20 = vld [vmem:[%s5634_s7 + $0x2] sm:$0x3]  ;;  %4305 = vset.pattern.permute.xlu0 %v4368_v36  ;;  %4306 = vset.pattern.permute.xlu1 %v4368_v36  ;;  %v437_v52 = vld [vmem:[%s5634_s7] sm:$0x3] }
  0x39   : > { %v4625_v19 = vsub.s32 1, %v440_v18  ;;  %v4634_v21 = vsub.s32 0, %v440_v18  ;;  %v1561_v41 = vld [vmem:[%s5629_s2] sm:$0xff]  ;;  %vm420_vm1 = vcmask 138240   ;;  %v3907_v59 = vld [vmem:[%s5628_s1 + $0x8] sm:$0xff]  ;;  %vm518_vm2 = vcmask 261120  }
  0x3a   : > { %460 = vrot.lane.b32.xlu0 %v4498_v10, %s4359_s18  ;;  %472 = vrot.lane.b32.xlu1 %v4501_v11, %s4359_s18  ;;  %vm687_vm3 = vcmask 121856   ;;  %vm823_vm4 = vcmask 7168   ;;  %vm1033_vm5 = vcmask 1039360   ;;  %vm1169_vm6 = vcmask 924672   ;;  %s391_s28 = sld [smem:[#allocation2]]  ;;  %s3930_s17 = sld [smem:[#allocation2 + $0x1]] }
  0x3b   : > { %v4637_v24 = vrot.slane %v3906_v20, %v4625_v19  ;;  %v4645_v26 = vrot.slane %v3906_v20, %v4634_v21  ;;  %v4677_v57 = vrot.slane %v437_v52, %v4634_v21  ;;  %v4680_v58 = vrot.slane %v437_v52, %v4625_v19 }
  0x3c   : > { %vm1305_vm7 = vcmask 916480   ;;  %vm1441_vm8 = vcmask 908288   ;;  %vm1610_vm11 = vcmask 64512  }
  0x3e   : > { %462 = vrot.lane.b32.xlu0 %v4508_v12, %s4359_s18  ;;  %464 = vrot.lane.b32.xlu1 %v4511_v13, %s4359_s18 }
  0x42   : > { %474 = vrot.lane.b32.xlu0 %v4518_v14, %s4359_s18  ;;  %476 = vrot.lane.b32.xlu1 %v4521_v15, %s4359_s18 }
  0x46   : > { %396 = vrot.lane.b32.xlu0 %v4488_v8, %s4361_s30  ;;  %398 = vrot.lane.b32.xlu1 %v4498_v10, %s4361_s30 }
  0x4a   : > { %412 = vrot.lane.b32.xlu0 %v4491_v9, %s4361_s30  ;;  %414 = vrot.lane.b32.xlu1 %v4501_v11, %s4361_s30 }
  0x4e   : > { %400 = vrot.lane.b32.xlu0 %v4508_v12, %s4361_s30  ;;  %402 = vrot.lane.b32.xlu1 %v4511_v13, %s4361_s30 }
  0x52   : > { %416 = vrot.lane.b32.xlu0 %v4518_v14, %s4361_s30  ;;  %418 = vrot.lane.b32.xlu1 %v4521_v15, %s4361_s30 }
  0x56   : > { %667 = vrot.lane.b32.xlu0 %v4488_v8, %s4362_s19  ;;  %669 = vrot.lane.b32.xlu1 %v4498_v10, %s4362_s19 }
  0x5a   : > { %679 = vrot.lane.b32.xlu0 %v4491_v9, %s4362_s19  ;;  %681 = vrot.lane.b32.xlu1 %v4501_v11, %s4362_s19 }
  0x5e   : > { %671 = vrot.lane.b32.xlu0 %v4508_v12, %s4362_s19  ;;  %673 = vrot.lane.b32.xlu1 %v4511_v13, %s4362_s19 }
  0x62   : > { %683 = vrot.lane.b32.xlu0 %v4518_v14, %s4362_s19  ;;  %685 = vrot.lane.b32.xlu1 %v4521_v15, %s4362_s19 }
  0x66   : > { %803 = vrot.lane.b32.xlu0 %v4488_v8, %s4363_s22  ;;  %805 = vrot.lane.b32.xlu1 %v4498_v10, %s4363_s22 }
  0x6a   : > { %815 = vrot.lane.b32.xlu0 %v4491_v9, %s4363_s22  ;;  %817 = vrot.lane.b32.xlu1 %v4501_v11, %s4363_s22 }
  0x6e   : > { %807 = vrot.lane.b32.xlu0 %v4508_v12, %s4363_s22  ;;  %809 = vrot.lane.b32.xlu1 %v4511_v13, %s4363_s22 }
  0x72   : > { %819 = vrot.lane.b32.xlu0 %v4518_v14, %s4363_s22  ;;  %821 = vrot.lane.b32.xlu1 %v4521_v15, %s4363_s22 }
  0x76   : > { %1017 = vrot.lane.b32.xlu0 %v4491_v9, %s4364_s23  ;;  %1019 = vrot.lane.b32.xlu1 %v4488_v8, %s4364_s23 }
  0x7a   : > { %1021 = vrot.lane.b32.xlu0 %v4501_v11, %s4364_s23  ;;  %1023 = vrot.lane.b32.xlu1 %v4498_v10, %s4364_s23 }
  0x7e   : > { %1025 = vrot.lane.b32.xlu0 %v4518_v14, %s4364_s23  ;;  %1027 = vrot.lane.b32.xlu1 %v4508_v12, %s4364_s23 }
  0x82   : > { %1029 = vrot.lane.b32.xlu0 %v4521_v15, %s4364_s23  ;;  %1031 = vrot.lane.b32.xlu1 %v4511_v13, %s4364_s23 }
  0x86   : > { %1153 = vrot.lane.b32.xlu0 %v4491_v9, %s4365_s24  ;;  %1155 = vrot.lane.b32.xlu1 %v4488_v8, %s4365_s24 }
  0x8a   : > { %1157 = vrot.lane.b32.xlu0 %v4501_v11, %s4365_s24  ;;  %1159 = vrot.lane.b32.xlu1 %v4498_v10, %s4365_s24 }
  0x8e   : > { %1161 = vrot.lane.b32.xlu0 %v4518_v14, %s4365_s24  ;;  %1163 = vrot.lane.b32.xlu1 %v4508_v12, %s4365_s24 }
  0x92   : > { %1165 = vrot.lane.b32.xlu0 %v4521_v15, %s4365_s24  ;;  %1167 = vrot.lane.b32.xlu1 %v4511_v13, %s4365_s24 }
  0x96   : > { %1289 = vrot.lane.b32.xlu0 %v4491_v9, %s4366_s25  ;;  %1291 = vrot.lane.b32.xlu1 %v4488_v8, %s4366_s25 }
  0x9a   : > { %1293 = vrot.lane.b32.xlu0 %v4501_v11, %s4366_s25  ;;  %1295 = vrot.lane.b32.xlu1 %v4498_v10, %s4366_s25 }
  0x9e   : > { %1297 = vrot.lane.b32.xlu0 %v4518_v14, %s4366_s25  ;;  %1299 = vrot.lane.b32.xlu1 %v4508_v12, %s4366_s25 }
  0xa2   : > { %1301 = vrot.lane.b32.xlu0 %v4521_v15, %s4366_s25  ;;  %1303 = vrot.lane.b32.xlu1 %v4511_v13, %s4366_s25 }
  0xa6   : > { %1425 = vrot.lane.b32.xlu0 %v4491_v9, %s4367_s26  ;;  %1427 = vrot.lane.b32.xlu1 %v4488_v8, %s4367_s26 }
  0xa8   : > { %v459_v22 = vpop.permute.xlu0 %458  ;;  %v471_v23 = vpop.permute.xlu1 %470 }
  0xa9   : > { %v479_v25 = vsel %vm478_vm0, %v471_v23, %v459_v22  ;;  %v491_v27 = vsel %vm478_vm0, %v459_v22, %v471_v23 }
  0xaa   : > { %1429 = vrot.lane.b32.xlu0 %v4501_v11, %s4367_s26  ;;  %1431 = vrot.lane.b32.xlu1 %v4498_v10, %s4367_s26  ;;  %v509_v32 = vmul.f32 %v4637_v24, %v479_v25  ;;  %v508_v34 = vmul.f32 %v4645_v26, %v491_v27 }
  0xac   : > { %v461_v28 = vpop.permute.xlu0 %460  ;;  %v473_v29 = vpop.permute.xlu1 %472 }
  0xad   : > { %v492_v30 = vsel %vm478_vm0, %v461_v28, %v473_v29  ;;  %v480_v31 = vsel %vm478_vm0, %v473_v29, %v461_v28 }
  0xae   : > { %1433 = vrot.lane.b32.xlu0 %v4518_v14, %s4367_s26  ;;  %1435 = vrot.lane.b32.xlu1 %v4508_v12, %s4367_s26  ;;  %v511_v33 = vmul.f32 %v4637_v24, %v480_v31  ;;  %v510_v35 = vmul.f32 %v4645_v26, %v492_v30 }
  0xb0   : > { %v463_v37 = vpop.permute.xlu0 %462  ;;  %v465_v38 = vpop.permute.xlu1 %464  ;;  %v4020_v39 = vpack.c.bf16 %v511_v33, %v509_v32  ;;  %v4022_v40 = vpack.c.bf16 %v510_v35, %v508_v34  ;;  %v3910_v33 = vld [vmem:[%s5634_s7 + $0x4] sm:$0x3] }
  0xb2   : > { %1437 = vrot.lane.b32.xlu0 %v4521_v15, %s4367_s26  ;;  %1439 = vrot.lane.b32.xlu1 %v4511_v13, %s4367_s26 }
  0xb3   : > { %4021 = vmatprep.subr.bf16.mxu0 %v4020_v39  ;;  %v4710_v39 = vrot.slane %v3910_v33, %v4625_v19 }
  0xb4   : > { %4023 = vmatpush1.bf16.msra.mxu0 %v4022_v40  ;;  %v475_v42 = vpop.permute.xlu0 %474  ;;  %v477_v43 = vpop.permute.xlu1 %476  ;;  %v457_v40 = vld [vmem:[%s5628_s1] sm:$0xff] }
  0xb5   : > { %v481_v44 = vsel %vm478_vm0, %v475_v42, %v463_v37  ;;  %v493_v45 = vsel %vm478_vm0, %v463_v37, %v475_v42  ;;  %v482_v46 = vsel %vm478_vm0, %v477_v43, %v465_v38  ;;  %v494_v47 = vsel %vm478_vm0, %v465_v38, %v477_v43 }
  0xb6   : > { %v512_v48 = vmul.f32 %v4645_v26, %v493_v45  ;;  %v513_v49 = vmul.f32 %v4637_v24, %v481_v44  ;;  %v514_v50 = vmul.f32 %v4645_v26, %v494_v47  ;;  %v515_v51 = vmul.f32 %v4637_v24, %v482_v46  ;;  %1564 = vperm.xlu0 %4305, %v1561_v41  }
  0xb7   : > { %v4707_v38 = vrot.slane %v3910_v33, %v4634_v21 }
  0xb8   : > { %v397_v53 = vpop.permute.xlu0 %396  ;;  %v399_v54 = vpop.permute.xlu1 %398  ;;  %v4024_v55 = vpack.c.bf16 %v515_v51, %v513_v49  ;;  %v4026_v56 = vpack.c.bf16 %v514_v50, %v512_v48 }
  0xba   : > { %4025 = vmatprep.subr.bf16.mxu0 %v4024_v55 }
  0xbb   : > { %4027 = vmatpush1.bf16.msra.mxu0 %v4026_v56 }
  0xbc   : > { %v413_v60 = vpop.permute.xlu0 %412  ;;  %v415_v61 = vpop.permute.xlu1 %414 }
  0xbd   : > { %v421_v62 = vsel %vm420_vm1, %v413_v60, %v397_v53  ;;  %v433_v63 = vsel %vm420_vm1, %v397_v53, %v413_v60  ;;  %v422_v0 = vsel %vm420_vm1, %v415_v61, %v399_v54  ;;  %v434_v1 = vsel %vm420_vm1, %v399_v54, %v415_v61 }
  0xbe   : > { %v449_v2 = vmul.f32 %v4677_v57, %v433_v63  ;;  %v450_v3 = vmul.f32 %v4680_v58, %v421_v62  ;;  %v451_v4 = vmul.f32 %v4677_v57, %v434_v1  ;;  %v452_v5 = vmul.f32 %v4680_v58, %v422_v0  ;;  %3908 = vmatmul.mubr.msk.f32.vlgmr.msra.gmra.mrb[0].mxu0 %vm518_vm2, %v3907_v59 }
  0xbf   : > { %660 = vmatprep.mubr.f32.mxu0 %v5637_v16 }
  0xc0   : > { %v4030_v6 = vpack.c.bf16 %v451_v4, %v449_v2  ;;  %v401_v7 = vpop.permute.xlu0 %400  ;;  %v403_v17 = vpop.permute.xlu1 %402  ;;  %v4028_v18 = vpack.c.bf16 %v452_v5, %v450_v3  ;;  %v3913_v3 = vld [vmem:[%s5634_s7 + $0x6] sm:$0x3] }
  0xc2   : > { %4029 = vmatprep.subr.bf16.mxu0 %v4028_v18  ;;  %v4740_v18 = vrot.slane %v3913_v3, %v4625_v19 }
  0xc3   : > { %4031 = vmatpush1.bf16.msra.mxu0 %v4030_v6 }
  0xc4   : > { %v417_v20 = vpop.permute.xlu0 %416  ;;  %v419_v22 = vpop.permute.xlu1 %418 }
  0xc5   : > { %v423_v23 = vsel %vm420_vm1, %v417_v20, %v401_v7  ;;  %v435_v25 = vsel %vm420_vm1, %v401_v7, %v417_v20  ;;  %v424_v27 = vsel %vm420_vm1, %v419_v22, %v403_v17  ;;  %v436_v28 = vsel %vm420_vm1, %v403_v17, %v419_v22  ;;  %v3911_v20 = vld [vmem:[%s5628_s1 + $0x10] sm:$0xff] }
  0xc6   : > { %v453_v29 = vmul.f32 %v4677_v57, %v435_v25  ;;  %v454_v30 = vmul.f32 %v4680_v58, %v423_v23  ;;  %v455_v31 = vmul.f32 %v4677_v57, %v436_v28  ;;  %v456_v32 = vmul.f32 %v4680_v58, %v424_v27 }
  0xc7   : > { %v4737_v17 = vrot.slane %v3913_v3, %v4634_v21 }
  0xc8   : > { %v4034_v34 = vpack.c.bf16 %v455_v31, %v453_v29  ;;  %v668_v35 = vpop.permute.xlu0 %667  ;;  %v670_v36 = vpop.permute.xlu1 %669  ;;  %v4032_v37 = vpack.c.bf16 %v456_v32, %v454_v30 }
  0xca   : > { %4033 = vmatprep.subr.bf16.mxu0 %v4032_v37 }
  0xcb   : > { %4035 = vmatpush1.bf16.msra.mxu0 %v4034_v34 }
  0xcc   : > { %v680_v41 = vpop.permute.xlu0 %679  ;;  %v682_v42 = vpop.permute.xlu1 %681 }
  0xcd   : > { %v688_v43 = vsel %vm687_vm3, %v680_v41, %v668_v35  ;;  %v700_v44 = vsel %vm687_vm3, %v668_v35, %v680_v41  ;;  %v689_v45 = vsel %vm687_vm3, %v682_v42, %v670_v36  ;;  %v701_v46 = vsel %vm687_vm3, %v670_v36, %v682_v42 }
  0xce   : > { %v717_v47 = vmul.f32 %v4707_v38, %v700_v44  ;;  %v718_v48 = vmul.f32 %v4710_v39, %v688_v43  ;;  %v719_v49 = vmul.f32 %v4707_v38, %v701_v46  ;;  %v720_v50 = vmul.f32 %v4710_v39, %v689_v45  ;;  %3909 = vmatmul.mubr.msk.f32.vlgmr.msra.gmra.mrb[0].mxu0 %vm518_vm2, %v457_v40 }
  0xcf   : > { %794 = vmatprep.mubr.f32.mxu0 %v5637_v16 }
  0xd0   : > { %v4038_v51 = vpack.c.bf16 %v719_v49, %v717_v47  ;;  %v672_v52 = vpop.permute.xlu0 %671  ;;  %v674_v53 = vpop.permute.xlu1 %673  ;;  %v4036_v54 = vpack.c.bf16 %v720_v50, %v718_v48 }
  0xd2   : > { %4037 = vmatprep.subr.bf16.mxu0 %v4036_v54  ;;  %v4052_v54 = vpack.c.bf16 %v4498_v10, %v4488_v8  ;;  %v4056_v8 = vpack.c.bf16 %v4511_v13, %v4508_v12 }
  0xd3   : > { %4039 = vmatpush1.bf16.msra.mxu0 %v4038_v51 }
  0xd4   : > { %v684_v55 = vpop.permute.xlu0 %683  ;;  %v686_v56 = vpop.permute.xlu1 %685 }
  0xd5   : > { %v690_v59 = vsel %vm687_vm3, %v684_v55, %v672_v52  ;;  %v702_v60 = vsel %vm687_vm3, %v672_v52, %v684_v55  ;;  %v691_v61 = vsel %vm687_vm3, %v686_v56, %v674_v53  ;;  %v703_v62 = vsel %vm687_vm3, %v674_v53, %v686_v56  ;;  %v3918_v55 = vld [vmem:[%s5634_s7 + $0xa] sm:$0x3]  ;;  %v3914_v56 = vld [vmem:[%s5628_s1 + $0x18] sm:$0xff] }
  0xd6   : > { %v721_v63 = vmul.f32 %v4707_v38, %v702_v60  ;;  %v722_v0 = vmul.f32 %v4710_v39, %v690_v59  ;;  %v723_v1 = vmul.f32 %v4707_v38, %v703_v62  ;;  %v724_v2 = vmul.f32 %v4710_v39, %v691_v61 }
  0xd7   : > { %v4054_v59 = vpack.c.bf16 %v4501_v11, %v4491_v9  ;;  %v4774_v60 = vrot.slane %v3918_v55, %v4625_v19  ;;  %v4784_v9 = vrot.slane %v3918_v55, %v4634_v21  ;;  %v4058_v11 = vpack.c.bf16 %v4521_v15, %v4518_v14  ;;  %v3916_v14 = vld [vmem:[%s5628_s1 + $0x20] sm:$0xff] }
  0xd8   : > { %v4042_v4 = vpack.c.bf16 %v723_v1, %v721_v63  ;;  %v804_v5 = vpop.permute.xlu0 %803  ;;  %v806_v6 = vpop.permute.xlu1 %805  ;;  %v4040_v7 = vpack.c.bf16 %v724_v2, %v722_v0 }
  0xda   : > { %4041 = vmatprep.subr.bf16.mxu0 %v4040_v7 }
  0xdb   : > { %4043 = vmatpush1.bf16.msra.mxu0 %v4042_v4 }
  0xdc   : > { %v816_v22 = vpop.permute.xlu0 %815  ;;  %v818_v23 = vpop.permute.xlu1 %817 }
  0xdd   : > { %v824_v25 = vsel %vm823_vm4, %v816_v22, %v804_v5  ;;  %v836_v27 = vsel %vm823_vm4, %v804_v5, %v816_v22  ;;  %v825_v28 = vsel %vm823_vm4, %v818_v23, %v806_v6  ;;  %v837_v29 = vsel %vm823_vm4, %v806_v6, %v818_v23 }
  0xde   : > { %v853_v30 = vmul.f32 %v4737_v17, %v836_v27  ;;  %v854_v31 = vmul.f32 %v4740_v18, %v824_v25  ;;  %v855_v32 = vmul.f32 %v4737_v17, %v837_v29  ;;  %v856_v33 = vmul.f32 %v4740_v18, %v825_v28  ;;  %3912 = vmatmul.mubr.msk.f32.vlgmr.msra.gmra.mrb[0].mxu0 %vm518_vm2, %v3911_v20 }
  0xdf   : > { %930 = vmatprep.mubr.f32.mxu0 %v5637_v16 }
  0xe0   : > { %v4046_v34 = vpack.c.bf16 %v855_v32, %v853_v30  ;;  %v808_v35 = vpop.permute.xlu0 %807  ;;  %v810_v36 = vpop.permute.xlu1 %809  ;;  %v4044_v37 = vpack.c.bf16 %v856_v33, %v854_v31  ;;  %v3921_v32 = vld [vmem:[%s5634_s7 + $0xc] sm:$0x3] }
  0xe2   : > { %4045 = vmatprep.subr.bf16.mxu0 %v4044_v37  ;;  %v4810_v37 = vrot.slane %v3921_v32, %v4634_v21 }
  0xe3   : > { %4047 = vmatpush1.bf16.msra.mxu0 %v4046_v34 }
  0xe4   : > { %v820_v40 = vpop.permute.xlu0 %819  ;;  %v822_v41 = vpop.permute.xlu1 %821 }
  0xe5   : > { %v826_v42 = vsel %vm823_vm4, %v820_v40, %v808_v35  ;;  %v838_v43 = vsel %vm823_vm4, %v808_v35, %v820_v40  ;;  %v827_v44 = vsel %vm823_vm4, %v822_v41, %v810_v36  ;;  %v839_v45 = vsel %vm823_vm4, %v810_v36, %v822_v41 }
  0xe6   : > { %v857_v46 = vmul.f32 %v4737_v17, %v838_v43  ;;  %v858_v47 = vmul.f32 %v4740_v18, %v826_v42  ;;  %v859_v48 = vmul.f32 %v4737_v17, %v839_v45  ;;  %v860_v49 = vmul.f32 %v4740_v18, %v827_v44  ;;  %v3919_v43 = vld [vmem:[%s5628_s1 + $0x28] sm:$0xff] }
  0xe7   : > { %v4813_v40 = vrot.slane %v3921_v32, %v4625_v19 }
  0xe8   : > { %v4050_v50 = vpack.c.bf16 %v859_v48, %v857_v46  ;;  %v1018_v51 = vpop.permute.xlu0 %1017  ;;  %v1020_v52 = vpop.permute.xlu1 %1019  ;;  %v4048_v53 = vpack.c.bf16 %v860_v49, %v858_v47 }
  0xe9   : > { %v1050_v10 = vsel %vm1033_vm5, %v1020_v52, %v1018_v51  ;;  %v1034_v12 = vsel %vm1033_vm5, %v1018_v51, %v1020_v52 }
  0xea   : > { %4049 = vmatprep.subr.bf16.mxu0 %v4048_v53  ;;  %v1068_v13 = vmul.f32 %v4774_v60, %v1050_v10  ;;  %v1067_v6 = vmul.f32 %v4784_v9, %v1034_v12  ;;  %v3924_v12 = vld [vmem:[%s5634_s7 + $0xe] sm:$0x3] }
  0xeb   : > { %4051 = vmatpush1.bf16.msra.mxu0 %v4050_v50 }
  0xec   : > { %v1022_v61 = vpop.permute.xlu0 %1021  ;;  %v1024_v62 = vpop.permute.xlu1 %1023  ;;  %4053 = vmatprep.subr.bf16.mxu0 %v4052_v54 }
  0xed   : > { %v1051_v63 = vsel %vm1033_vm5, %v1024_v62, %v1022_v61  ;;  %v1035_v0 = vsel %vm1033_vm5, %v1022_v61, %v1024_v62 }
  0xee   : > { %v1070_v1 = vmul.f32 %v4774_v60, %v1051_v63  ;;  %3915 = vmatmul.mubr.msk.f32.vlgmr.msra.gmra.mrb[0].mxu0 %vm518_vm2, %v3914_v56  ;;  %v1069_v4 = vmul.f32 %v4784_v9, %v1035_v0 }
  0xef   : > { %4055 = vmatpush1.bf16.msra.mxu0 %v4054_v59  ;;  %1008 = vmatprep.mubr.f32.mxu0 %v5637_v16 }
  0xf0   : > { %v1026_v2 = vpop.permute.xlu0 %1025  ;;  %v1028_v3 = vpop.permute.xlu1 %1027  ;;  %4057 = vmatprep.subr.bf16.mxu0 %v4056_v8  ;;  %v4060_v5 = vpack.c.bf16 %v1070_v1, %v1068_v13  ;;  %v4062_v23 = vpack.c.bf16 %v1069_v4, %v1067_v6  ;;  %v4843_v6 = vrot.slane %v3924_v12, %v4625_v19 }
  0xf1   : > { %v1036_v7 = vsel %vm1033_vm5, %v1026_v2, %v1028_v3  ;;  %v1052_v20 = vsel %vm1033_vm5, %v1028_v3, %v1026_v2 }
  0xf2   : > { %v1071_v28 = vmul.f32 %v4784_v9, %v1036_v7  ;;  %v1072_v29 = vmul.f32 %v4774_v60, %v1052_v20 }
  0xf3   : > { %4059 = vmatpush1.bf16.msra.mxu0 %v4058_v11 }
  0xf4   : > { %v1030_v15 = vpop.permute.xlu0 %1029  ;;  %v1032_v22 = vpop.permute.xlu1 %1031  ;;  %4061 = vmatprep.subr.bf16.mxu0 %v4060_v5  ;;  %v4840_v5 = vrot.slane %v3924_v12, %v4634_v21 }
  0xf5   : > { %v1037_v25 = vsel %vm1033_vm5, %v1030_v15, %v1032_v22  ;;  %v1053_v27 = vsel %vm1033_vm5, %v1032_v22, %v1030_v15 }
  0xf6   : > { %v1073_v30 = vmul.f32 %v4784_v9, %v1037_v25  ;;  %v1074_v31 = vmul.f32 %v4774_v60, %v1053_v27  ;;  %3917 = vmatmul.mubr.msk.f32.vlgmr.msra.gmra.mrb[0].mxu0 %vm518_vm2, %v3916_v14  ;;  %v3922_v14 = vld [vmem:[%s5628_s1 + $0x30] sm:$0xff] }
  0xf7   : > { %4063 = vmatpush1.bf16.msra.mxu0 %v4062_v23  ;;  %1144 = vmatprep.mubr.f32.mxu0 %v5637_v16 }
  0xf8   : > { %v4066_v33 = vpack.c.bf16 %v1073_v30, %v1071_v28  ;;  %v1154_v34 = vpop.permute.xlu0 %1153  ;;  %v1156_v35 = vpop.permute.xlu1 %1155  ;;  %v4064_v36 = vpack.c.bf16 %v1074_v31, %v1072_v29 }
  0xf9   : > { %v1170_v41 = vsel %vm1169_vm6, %v1154_v34, %v1156_v35  ;;  %v1186_v42 = vsel %vm1169_vm6, %v1156_v35, %v1154_v34 }
  0xfa   : > { %4065 = vmatprep.subr.bf16.mxu0 %v4064_v36  ;;  %v1203_v48 = vmul.f32 %v4810_v37, %v1170_v41  ;;  %v1204_v49 = vmul.f32 %v4813_v40, %v1186_v42 }
  0xfb   : > { %4067 = vmatpush1.bf16.msra.mxu0 %v4066_v33 }
  0xfc   : > { %v1158_v44 = vpop.permute.xlu0 %1157  ;;  %v1160_v45 = vpop.permute.xlu1 %1159 }
  0xfd   : > { %v1171_v46 = vsel %vm1169_vm6, %v1158_v44, %v1160_v45  ;;  %v1187_v47 = vsel %vm1169_vm6, %v1160_v45, %v1158_v44 }
  0xfe   : > { %v1205_v50 = vmul.f32 %v4810_v37, %v1171_v46  ;;  %v1206_v51 = vmul.f32 %v4813_v40, %v1187_v47  ;;  %3920 = vmatmul.mubr.msk.f32.vlgmr.msra.gmra.mrb[0].mxu0 %vm518_vm2, %v3919_v43 }
  0xff   : > { %1280 = vmatprep.mubr.f32.mxu0 %v5637_v16 }
 0x100   : > { %v4070_v52 = vpack.c.bf16 %v1205_v50, %v1203_v48  ;;  %v1162_v53 = vpop.permute.xlu0 %1161  ;;  %v1164_v54 = vpop.permute.xlu1 %1163  ;;  %v4068_v55 = vpack.c.bf16 %v1206_v51, %v1204_v49  ;;  %v3927_v49 = vld [vmem:[%s5634_s7 + $0x10] sm:$0x3] }
 0x101   : > { %v1172_v56 = vsel %vm1169_vm6, %v1162_v53, %v1164_v54  ;;  %v1188_v59 = vsel %vm1169_vm6, %v1164_v54, %v1162_v53  ;;  %v4870_v54 = vrot.slane %v3927_v49, %v4634_v21 }
 0x102   : > { %4069 = vmatprep.subr.bf16.mxu0 %v4068_v55  ;;  %v1207_v63 = vmul.f32 %v4810_v37, %v1172_v56  ;;  %v1208_v0 = vmul.f32 %v4813_v40, %v1188_v59  ;;  %v4873_v55 = vrot.slane %v3927_v49, %v4625_v19 }
 0x103   : > { %4071 = vmatpush1.bf16.msra.mxu0 %v4070_v52  ;;  %5648 = vst [vmem:[#allocation6_spill] sm:$0xff] %v4870_v54 }
 0x104   : > { %v1166_v61 = vpop.permute.xlu0 %1165  ;;  %v1168_v62 = vpop.permute.xlu1 %1167  ;;  %5649 = vst [vmem:[#allocation7_spill] sm:$0xff] %v4873_v55 }
 0x105   : > { %v1173_v8 = vsel %vm1169_vm6, %v1166_v61, %v1168_v62  ;;  %v1189_v10 = vsel %vm1169_vm6, %v1168_v62, %v1166_v61  ;;  %v3925_v61 = vld [vmem:[%s5628_s1 + $0x38] sm:$0xff] }
 0x106   : > { %v1209_v1 = vmul.f32 %v4810_v37, %v1173_v8  ;;  %v1210_v11 = vmul.f32 %v4813_v40, %v1189_v10 }
 0x108   : > { %v4074_v13 = vpack.c.bf16 %v1209_v1, %v1207_v63  ;;  %v1290_v2 = vpop.permute.xlu0 %1289  ;;  %v1292_v3 = vpop.permute.xlu1 %1291  ;;  %v4072_v4 = vpack.c.bf16 %v1210_v11, %v1208_v0 }
 0x109   : > { %v1306_v7 = vsel %vm1305_vm7, %v1290_v2, %v1292_v3  ;;  %v1322_v20 = vsel %vm1305_vm7, %v1292_v3, %v1290_v2 }
 0x10a   : > { %4073 = vmatprep.subr.bf16.mxu0 %v4072_v4  ;;  %v1339_v27 = vmul.f32 %v4840_v5, %v1306_v7  ;;  %v1340_v28 = vmul.f32 %v4843_v6, %v1322_v20 }
 0x10b   : > { %4075 = vmatpush1.bf16.msra.mxu0 %v4074_v13 }
 0x10c   : > { %v1294_v15 = vpop.permute.xlu0 %1293  ;;  %v1296_v22 = vpop.permute.xlu1 %1295 }
 0x10d   : > { %v1307_v23 = vsel %vm1305_vm7, %v1294_v15, %v1296_v22  ;;  %v1323_v25 = vsel %vm1305_vm7, %v1296_v22, %v1294_v15 }
 0x10e   : > { %v1341_v29 = vmul.f32 %v4840_v5, %v1307_v23  ;;  %v1342_v30 = vmul.f32 %v4843_v6, %v1323_v25  ;;  %3923 = vmatmul.mubr.msk.f32.vlgmr.msra.gmra.mrb[0].mxu0 %vm518_vm2, %v3922_v14 }
 0x10f   : > { %1416 = vmatprep.mubr.f32.mxu0 %v5637_v16 }
 0x110   : > { %v4078_v31 = vpack.c.bf16 %v1341_v29, %v1339_v27  ;;  %v1298_v32 = vpop.permute.xlu0 %1297  ;;  %v1300_v33 = vpop.permute.xlu1 %1299  ;;  %v4076_v34 = vpack.c.bf16 %v1342_v30, %v1340_v28  ;;  %v3928_v30 = vld [vmem:[%s5628_s1 + $0x40] sm:$0xff] }
 0x111   : > { %v1308_v35 = vsel %vm1305_vm7, %v1298_v32, %v1300_v33  ;;  %v1324_v36 = vsel %vm1305_vm7, %v1300_v33, %v1298_v32  ;;  %v1571_v33 = vstv %s391_s28 }
 0x112   : > { %4077 = vmatprep.subr.bf16.mxu0 %v4076_v34  ;;  %v1343_v45 = vmul.f32 %v4840_v5, %v1308_v35  ;;  %v1344_v46 = vmul.f32 %v4843_v6, %v1324_v36 }
 0x113   : > { %4079 = vmatpush1.bf16.msra.mxu0 %v4078_v31 }
 0x114   : > { %v1302_v41 = vpop.permute.xlu0 %1301  ;;  %v1304_v42 = vpop.permute.xlu1 %1303 }
 0x115   : > { %v1309_v43 = vsel %vm1305_vm7, %v1302_v41, %v1304_v42  ;;  %v1325_v44 = vsel %vm1305_vm7, %v1304_v42, %v1302_v41 }
 0x116   : > { %v1345_v47 = vmul.f32 %v4840_v5, %v1309_v43  ;;  %v1346_v48 = vmul.f32 %v4843_v6, %v1325_v44 }
 0x118   : > { %v4082_v50 = vpack.c.bf16 %v1345_v47, %v1343_v45  ;;  %v1426_v51 = vpop.permute.xlu0 %1425  ;;  %v1428_v52 = vpop.permute.xlu1 %1427  ;;  %v4080_v53 = vpack.c.bf16 %v1346_v48, %v1344_v46  ;;  %v2677_v45 = vld [vmem:[%s5631_s4] sm:$0xff]  ;;  %v2679_v46 = vld [vmem:[%s5631_s4 + $0x10] sm:$0xff] }
 0x119   : > { %v1442_v56 = vsel %vm1441_vm8, %v1426_v51, %v1428_v52  ;;  %v1458_v59 = vsel %vm1441_vm8, %v1428_v52, %v1426_v51 }
 0x11a   : > { %4081 = vmatprep.subr.bf16.mxu0 %v4080_v53  ;;  %v1475_v63 = vmul.f32 %v4870_v54, %v1442_v56  ;;  %v1476_v19 = vmul.f32 %v4873_v55, %v1458_v59  ;;  %v3931_v56 = vld [vmem:[%s5630_s3 + $0x20] sm:$0xff] }
 0x11b   : > { %4083 = vmatpush1.bf16.msra.mxu0 %v4082_v50 }
 0x11c   : > { %v1430_v62 = vpop.permute.xlu0 %1429  ;;  %v1432_v8 = vpop.permute.xlu1 %1431 }
 0x11d   : > { %v1443_v10 = vsel %vm1441_vm8, %v1430_v62, %v1432_v8  ;;  %v1459_v21 = vsel %vm1441_vm8, %v1432_v8, %v1430_v62 }
 0x11e   : > { %v1477_v0 = vmul.f32 %v4870_v54, %v1443_v10  ;;  %v1478_v1 = vmul.f32 %v4873_v55, %v1459_v21  ;;  %3926 = vmatmul.mubr.msk.f32.vlgmr.msra.gmra.mrb[0].mxu0 %vm518_vm2, %v3925_v61  ;;  %v3932_v21 = vld [vmem:[%s5630_s3 + $0x28] sm:$0xff] }
 0x11f   : > { %1552 = vmatprep.mubr.f32.mxu0 %v5637_v16 }
 0x120   : > { %v4086_v11 = vpack.c.bf16 %v1477_v0, %v1475_v63  ;;  %v1434_v12 = vpop.permute.xlu0 %1433  ;;  %v1436_v13 = vpop.permute.xlu1 %1435  ;;  %v4084_v2 = vpack.c.bf16 %v1478_v1, %v1476_v19 }
 0x121   : > { %v1444_v3 = vsel %vm1441_vm8, %v1434_v12, %v1436_v13  ;;  %v1460_v4 = vsel %vm1441_vm8, %v1436_v13, %v1434_v12  ;;  %v3934_v12 = vld [vmem:[%s5630_s3 + $0x38] sm:$0xff] }
 0x122   : > { %4085 = vmatprep.subr.bf16.mxu0 %v4084_v2  ;;  %v1479_v22 = vmul.f32 %v4870_v54, %v1444_v3  ;;  %v1480_v23 = vmul.f32 %v4873_v55, %v1460_v4  ;;  %v2678_v4 = vld [vmem:[%s5631_s4 + $0x8] sm:$0xff] }
 0x123   : > { %4087 = vmatpush1.bf16.msra.mxu0 %v4086_v11  ;;  %v3933_v11 = vld [vmem:[%s5630_s3 + $0x30] sm:$0xff] }
 0x124   : > { %v1438_v7 = vpop.permute.xlu0 %1437  ;;  %v1440_v20 = vpop.permute.xlu1 %1439 }
 0x125   : > { %v1445_v14 = vsel %vm1441_vm8, %v1438_v7, %v1440_v20  ;;  %v1461_v15 = vsel %vm1441_vm8, %v1440_v20, %v1438_v7  ;;  %v1590_v20 = vld [vmem:[%s5630_s3] sm:$0xff] }
 0x126   : > { %v1481_v25 = vmul.f32 %v4870_v54, %v1445_v14  ;;  %v1482_v27 = vmul.f32 %v4873_v55, %v1461_v15  ;;  %v2680_v15 = vld [vmem:[%s5631_s4 + $0x18] sm:$0xff] }
 0x128   : > { %v4090_v28 = vpack.c.bf16 %v1481_v25, %v1479_v22  ;;  %v4088_v29 = vpack.c.bf16 %v1482_v27, %v1480_v23  ;;  %v1591_v23 = vld [vmem:[%s5630_s3 + $0x8] sm:$0xff]  ;;  %v1592_v25 = vld [vmem:[%s5630_s3 + $0x10] sm:$0xff]  ;;  %v1593_v27 = vld [vmem:[%s5630_s3 + $0x18] sm:$0xff] }
 0x12a   : > { %4089 = vmatprep.subr.bf16.mxu0 %v4088_v29  ;;  %v3943_v29 = vld [vmem:[%s5630_s3 + $0x40] sm:$0xff] }
 0x12b   : > { %4091 = vmatpush1.bf16.msra.mxu0 %v4090_v28 }
 0x12e   : > { %3929 = vmatmul.mubr.msk.f32.vlgmr.msra.gmra.mrb[0].mxu0 %vm518_vm2, %v3928_v30 }
 0x12f   : > { %2909 = vmatprep.mubr.f32.mxu0 %v5637_v16 }
 0x135   : > { %v1565_v31 = vpop.permute.xlu0 %1564 }
 0x201   : > { %v1554_v32 = vpop.f32.mrb[0].mxu0 }
 0x202   : > { %v1556_v34 = vpop.f32.mrb[1].mxu0  ;;  %v1567_v35 = vadd.f32 %v1565_v31, %v1554_v32  ;;  %v3945_v32 = vld [vmem:[%s5630_s3 + $0x50] sm:$0xff] }
 0x203   : > { %v1568_v36 = vadd.f32 %v1565_v31, %v1556_v34  ;;  %v3944_v31 = vld [vmem:[%s5630_s3 + $0x48] sm:$0xff] }
 0x204   : > { %v1572_v42 = vmul.f32 %v1571_v33, %v1567_v35  ;;  %vm1569_vm10 = vcmp.ge.f32.partialorder %v1567_v35, 0.0 }
 0x205   : > { %vm1570_vm9 = vcmp.ge.f32.partialorder %v1568_v36, 0.0  ;;  %v1573_v41 = vmul.f32 %v1571_v33, %v1568_v36  ;;  %v3946_v33 = vld [vmem:[%s5630_s3 + $0x58] sm:$0xff] }
 0x206   : > { %v4907_v44 = vsel %vm1569_vm10, %v1567_v35, %v1572_v42 }
 0x207   : > { %v4901_v43 = vsel %vm1570_vm9, %v1568_v36, %v1573_v41  ;;  %5651 = vst [vmem:[#allocation9_spill] sm:$0xff] %v4907_v44  ;;  %v3951_v41 = vld [vmem:[%s5630_s3 + $0x60] sm:$0xff] }
 0x208   : > { %5650 = vst [vmem:[#allocation8_spill] sm:$0xff] %v4901_v43  ;;  %1578 = vrot.lane.b32.xlu0 %v4901_v43, %s4361_s30  ;;  %1594 = vrot.lane.b32.xlu1 %v4901_v43, %s4359_s18 }
 0x20c   : > { %1813 = vrot.lane.b32.xlu0 %v4901_v43, %s4362_s19  ;;  %1597 = vrot.lane.b32.xlu1 %v4907_v44, %s4359_s18 }
 0x210   : > { %1938 = vrot.lane.b32.xlu0 %v4901_v43, %s4363_s22  ;;  %1582 = vrot.lane.b32.xlu1 %v4907_v44, %s4361_s30 }
 0x214   : > { %2177 = vrot.lane.b32.xlu0 %v4907_v44, %s4364_s23  ;;  %1816 = vrot.lane.b32.xlu1 %v4907_v44, %s4362_s19 }
 0x218   : > { %2302 = vrot.lane.b32.xlu0 %v4907_v44, %s4365_s24  ;;  %1941 = vrot.lane.b32.xlu1 %v4907_v44, %s4363_s22 }
 0x21c   : > { %2427 = vrot.lane.b32.xlu0 %v4907_v44, %s4366_s25  ;;  %2179 = vrot.lane.b32.xlu1 %v4901_v43, %s4364_s23 }
 0x220   : > { %2552 = vrot.lane.b32.xlu0 %v4907_v44, %s4367_s26  ;;  %2304 = vrot.lane.b32.xlu1 %v4901_v43, %s4365_s24 }
 0x224   : > { %2683 = vperm.xlu0 %4305, %v2677_v45   ;;  %2429 = vrot.lane.b32.xlu1 %v4901_v43, %s4366_s25  ;;  %v3952_v45 = vld [vmem:[%s5630_s3 + $0x68] sm:$0xff] }
 0x228   : > { %2693 = vperm.xlu0 %4305, %v2679_v46   ;;  %2554 = vrot.lane.b32.xlu1 %v4901_v43, %s4367_s26  ;;  %v3953_v46 = vld [vmem:[%s5630_s3 + $0x70] sm:$0xff] }
 0x22c   : > { %2688 = vperm.xlu1 %4306, %v2678_v4  }
 0x230   : > { %2698 = vperm.xlu1 %4306, %v2680_v15  }
 0x27a   : > { %v1595_v47 = vpop.permute.xlu1 %1594  ;;  %v1579_v51 = vpop.permute.xlu0 %1578 }
 0x27e   : > { %v1598_v48 = vpop.permute.xlu1 %1597  ;;  %v1814_v63 = vpop.permute.xlu0 %1813 }
 0x27f   : > { %v1602_v49 = vsel %vm478_vm0, %v1595_v47, %v1598_v48  ;;  %v1599_v50 = vsel %vm478_vm0, %v1598_v48, %v1595_v47  ;;  %v3954_v47 = vld [vmem:[%s5630_s3 + $0x78] sm:$0xff] }
 0x280   : > { %v1604_v52 = vmul.f32 %v1599_v50, %v4637_v24  ;;  %v1603_v53 = vmul.f32 %v1602_v49, %v4645_v26 }
 0x282   : > { %1623 = vmatprep.subr.mxu1 %v1604_v52  ;;  %v1583_v59 = vpop.permute.xlu1 %1582  ;;  %v1939_v2 = vpop.permute.xlu0 %1938  ;;  %v3959_v52 = vld [vmem:[%s5630_s3 + $0x80] sm:$0xff] }
 0x283   : > { %v1584_v61 = vsel %vm420_vm1, %v1583_v59, %v1579_v51  ;;  %v1587_v62 = vsel %vm420_vm1, %v1579_v51, %v1583_v59  ;;  %1624 = vmatpush1.msra.mxu1 %v1603_v53  ;;  %v3960_v59 = vld [vmem:[%s5630_s3 + $0x88] sm:$0xff] }
 0x284   : > { %v1588_v8 = vmul.f32 %v1587_v62, %v4677_v57  ;;  %v1589_v10 = vmul.f32 %v1584_v61, %v4680_v58  ;;  %3935 = vmatmul.mubr.msk.f32.vlgmr.msra.gmra.mrb[0].mxu1 %vm1610_vm11, %v3931_v56  ;;  %v3961_v61 = vld [vmem:[%s5630_s3 + $0x90] sm:$0xff]  ;;  %v3962_v62 = vld [vmem:[%s5630_s3 + $0x98] sm:$0xff] }
 0x285   : > { %1693 = vmatprep.mubr.f32.mxu1 %v5637_v16 }
 0x286   : > { %1724 = vmatprep.subr.mxu1 %v1589_v10  ;;  %v1817_v19 = vpop.permute.xlu1 %1816  ;;  %v2178_v35 = vpop.permute.xlu0 %2177 }
 0x287   : > { %v1818_v0 = vsel %vm687_vm3, %v1817_v19, %v1814_v63  ;;  %1725 = vmatpush1.msra.mxu1 %v1588_v8  ;;  %v1821_v3 = vsel %vm687_vm3, %v1814_v63, %v1817_v19  ;;  %v3967_v19 = vld [vmem:[%s5630_s3 + $0xa0] sm:$0xff] }
 0x288   : > { %v1823_v1 = vmul.f32 %v1818_v0, %v4710_v39  ;;  %3936 = vmatmul.mubr.msk.f32.gmra.mrb[2].mxu1 %vm1610_vm11, %v3932_v21  ;;  %v1822_v14 = vmul.f32 %v1821_v3, %v4707_v38 }
 0x289   : > { %1699 = vmatprep.mubr.f32.mxu1 %v5637_v16 }
 0x28a   : > { %1841 = vmatprep.subr.mxu1 %v1823_v1  ;;  %v1942_v13 = vpop.permute.xlu1 %1941  ;;  %v2303_v49 = vpop.permute.xlu0 %2302 }
 0x28b   : > { %v1943_v7 = vsel %vm823_vm4, %v1942_v13, %v1939_v2  ;;  %v1946_v28 = vsel %vm823_vm4, %v1939_v2, %v1942_v13  ;;  %v3970_v13 = vld [vmem:[%s5630_s3 + $0xb8] sm:$0xff] }
 0x28c   : > { %3937 = vmatmul.mubr.msk.f32.gmra.mrb[4].mxu1 %vm1610_vm11, %v3933_v11  ;;  %v1948_v22 = vmul.f32 %v1943_v7, %v4740_v18  ;;  %v1947_v30 = vmul.f32 %v1946_v28, %v4737_v17  ;;  %v3968_v11 = vld [vmem:[%s5630_s3 + $0xa8] sm:$0xff]  ;;  %v3983_v28 = vld [vmem:[%s5630_s3 + $0xe0] sm:$0xff] }
 0x28d   : > { %1705 = vmatprep.mubr.f32.mxu1 %v5637_v16 }
 0x28e   : > { %v2180_v34 = vpop.permute.xlu1 %2179  ;;  %v2428_v10 = vpop.permute.xlu0 %2427 }
 0x28f   : > { %v2185_v36 = vsel %vm1033_vm5, %v2180_v34, %v2178_v35  ;;  %v2181_v50 = vsel %vm1033_vm5, %v2178_v35, %v2180_v34  ;;  %v3992_v34 = vld [vmem:[%s5630_s3 + $0x108] sm:$0xff]  ;;  %v3993_v35 = vld [vmem:[%s5630_s3 + $0x110] sm:$0xff] }
 0x290   : > { %3938 = vmatmul.mubr.msk.f32.gmra.mrb[6].mxu1 %vm1610_vm11, %v3934_v12  ;;  %v2187_v42 = vmul.f32 %v2185_v36, %v4774_v60  ;;  %v2186_v53 = vmul.f32 %v2181_v50, %v4784_v9  ;;  %v3969_v12 = vld [vmem:[%s5630_s3 + $0xb0] sm:$0xff]  ;;  %v3994_v36 = vld [vmem:[%s5630_s3 + $0x118] sm:$0xff] }
 0x291   : > { %1788 = vmatprep.mubr.f32.mxu1 %v5637_v16 }
 0x292   : > { %v2305_v48 = vpop.permute.xlu1 %2304  ;;  %v2553_v3 = vpop.permute.xlu0 %2552 }
 0x293   : > { %v2310_v51 = vsel %vm1169_vm6, %v2305_v48, %v2303_v49  ;;  %v2306_v21 = vsel %vm1169_vm6, %v2303_v49, %v2305_v48 }
 0x294   : > { %3939 = vmatmul.mubr.msk.f32.vlgmr.msra.gmra.mrb[0].mxu1 %vm1610_vm11, %v1590_v20  ;;  %v2312_v56 = vmul.f32 %v2310_v51, %v4813_v40  ;;  %v2311_v0 = vmul.f32 %v2306_v21, %v4810_v37  ;;  %v3975_v20 = vld [vmem:[%s5630_s3 + $0xc0] sm:$0xff] }
 0x295   : > { %1842 = vmatpush1.msra.mxu1 %v1822_v14  ;;  %1794 = vmatprep.mubr.f32.mxu1 %v5637_v16 }
 0x296   : > { %1966 = vmatprep.subr.mxu1 %v1948_v22  ;;  %v2430_v8 = vpop.permute.xlu1 %2429  ;;  %v3976_v22 = vld [vmem:[%s5630_s3 + $0xc8] sm:$0xff] }
 0x297   : > { %v2435_v63 = vsel %vm1305_vm7, %v2430_v8, %v2428_v10  ;;  %v2431_v4 = vsel %vm1305_vm7, %v2428_v10, %v2430_v8  ;;  %v4308_v10 = vld [vmem:[%s4485_s21 + $0x8] sm:$0xff] }
 0x298   : > { %3940 = vmatmul.mubr.msk.f32.gmra.mrb[2].mxu1 %vm1610_vm11, %v1591_v23  ;;  %v2437_v1 = vmul.f32 %v2435_v63, %v4843_v6  ;;  %v2436_v14 = vmul.f32 %v2431_v4, %v4840_v5  ;;  %v3977_v23 = vld [vmem:[%s5630_s3 + $0xd0] sm:$0xff] }
 0x299   : > { %1800 = vmatprep.mubr.f32.mxu1 %v5637_v16 }
 0x29a   : > { %v2555_v2 = vpop.permute.xlu1 %2554 }
 0x29b   : > { %v2560_v7 = vsel %vm1441_vm8, %v2555_v2, %v2553_v3 }
 0x29c   : > { %3941 = vmatmul.mubr.msk.f32.gmra.mrb[4].mxu1 %vm1610_vm11, %v1592_v25  ;;  %v2562_v15 = vmul.f32 %v2560_v7, %v4873_v55  ;;  %v3978_v25 = vld [vmem:[%s5630_s3 + $0xd8] sm:$0xff] }
 0x29d   : > { %1806 = vmatprep.mubr.f32.mxu1 %v5637_v16 }
 0x2a0   : > { %3942 = vmatmul.mubr.msk.f32.gmra.mrb[6].mxu1 %vm1610_vm11, %v1593_v27  ;;  %v2556_v27 = vsel %vm1441_vm8, %v2553_v3, %v2555_v2 }
 0x2a1   : > { %1905 = vmatprep.mubr.f32.mxu1 %v5637_v16 }
 0x2a4   : > { %3947 = vmatmul.mubr.msk.f32.vlgmr.msra.gmra.mrb[0].mxu1 %vm1610_vm11, %v3943_v29  ;;  %v2561_v29 = vmul.f32 %v2556_v27, %v4870_v54 }
 0x2a5   : > { %1967 = vmatpush1.msra.mxu1 %v1947_v30  ;;  %1911 = vmatprep.mubr.f32.mxu1 %v5637_v16  ;;  %v3984_v30 = vld [vmem:[%s5630_s3 + $0xe8] sm:$0xff] }
 0x2a6   : > { %2080 = vmatprep.subr.mxu1 %v4901_v43 }
 0x2a8   : > { %3948 = vmatmul.mubr.msk.f32.gmra.mrb[2].mxu1 %vm1610_vm11, %v3944_v31  ;;  %v3985_v31 = vld [vmem:[%s5630_s3 + $0xf0] sm:$0xff] }
 0x2a9   : > { %1917 = vmatprep.mubr.f32.mxu1 %v5637_v16 }
 0x2ab   : > { %v2689_v51 = vpop.permute.xlu1 %2688 }
 0x2ac   : > { %3949 = vmatmul.mubr.msk.f32.gmra.mrb[4].mxu1 %vm1610_vm11, %v3945_v32  ;;  %v3986_v32 = vld [vmem:[%s5630_s3 + $0xf8] sm:$0xff] }
 0x2ad   : > { %1923 = vmatprep.mubr.f32.mxu1 %v5637_v16 }
 0x2b0   : > { %3950 = vmatmul.mubr.msk.f32.gmra.mrb[6].mxu1 %vm1610_vm11, %v3946_v33  ;;  %v3991_v33 = vld [vmem:[%s5630_s3 + $0x100] sm:$0xff] }
 0x2b1   : > { %2030 = vmatprep.mubr.f32.mxu1 %v5637_v16 }
 0x2b4   : > { %3955 = vmatmul.mubr.msk.f32.vlgmr.msra.gmra.mrb[0].mxu1 %vm1610_vm11, %v3951_v41  ;;  %v2684_v41 = vpop.permute.xlu0 %2683 }
 0x2b5   : > { %2081 = vmatpush1.msra.mxu1 %v4907_v44  ;;  %2036 = vmatprep.mubr.f32.mxu1 %v5637_v16 }
 0x2b6   : > { %2205 = vmatprep.subr.mxu1 %v2187_v42 }
 0x2b8   : > { %3956 = vmatmul.mubr.msk.f32.gmra.mrb[2].mxu1 %vm1610_vm11, %v3952_v45  ;;  %v5162_v45 = vstv %s3930_s17 }
 0x2b9   : > { %2042 = vmatprep.mubr.f32.mxu1 %v5637_v16 }
 0x2bc   : > { %3957 = vmatmul.mubr.msk.f32.gmra.mrb[4].mxu1 %vm1610_vm11, %v3953_v46 }
 0x2bd   : > { %2048 = vmatprep.mubr.f32.mxu1 %v5637_v16 }
 0x2c0   : > { %3958 = vmatmul.mubr.msk.f32.gmra.mrb[6].mxu1 %vm1610_vm11, %v3954_v47 }
 0x2c1   : > { %2144 = vmatprep.mubr.f32.mxu1 %v5637_v16 }
 0x2c4   : > { %3963 = vmatmul.mubr.msk.f32.vlgmr.msra.gmra.mrb[0].mxu1 %vm1610_vm11, %v3959_v52 }
 0x2c5   : > { %2206 = vmatpush1.msra.mxu1 %v2186_v53  ;;  %2150 = vmatprep.mubr.f32.mxu1 %v5637_v16 }
 0x2c6   : > { %2330 = vmatprep.subr.mxu1 %v2312_v56 }
 0x2c8   : > { %3964 = vmatmul.mubr.msk.f32.gmra.mrb[2].mxu1 %vm1610_vm11, %v3960_v59 }
 0x2c9   : > { %2156 = vmatprep.mubr.f32.mxu1 %v5637_v16 }
 0x2cc   : > { %3965 = vmatmul.mubr.msk.f32.gmra.mrb[4].mxu1 %vm1610_vm11, %v3961_v61  ;;  %v4307_v61 = vld [vmem:[%s4485_s21] sm:$0xff] }
 0x2cd   : > { %2162 = vmatprep.mubr.f32.mxu1 %v5637_v16 }
 0x2d0   : > { %3966 = vmatmul.mubr.msk.f32.gmra.mrb[6].mxu1 %vm1610_vm11, %v3962_v62 }
 0x2d1   : > { %2269 = vmatprep.mubr.f32.mxu1 %v5637_v16 }
 0x2d4   : > { %3971 = vmatmul.mubr.msk.f32.vlgmr.msra.gmra.mrb[0].mxu1 %vm1610_vm11, %v3967_v19 }
 0x2d5   : > { %2331 = vmatpush1.msra.mxu1 %v2311_v0  ;;  %2275 = vmatprep.mubr.f32.mxu1 %v5637_v16 }
 0x2d6   : > { %2455 = vmatprep.subr.mxu1 %v2437_v1 }
 0x2d8   : > { %3972 = vmatmul.mubr.msk.f32.gmra.mrb[2].mxu1 %vm1610_vm11, %v3968_v11  ;;  %v4309_v11 = vld [vmem:[%s4485_s21 + $0x10] sm:$0xff] }
 0x2d9   : > { %2281 = vmatprep.mubr.f32.mxu1 %v5637_v16 }
 0x2dc   : > { %3973 = vmatmul.mubr.msk.f32.gmra.mrb[4].mxu1 %vm1610_vm11, %v3969_v12 }
 0x2dd   : > { %2287 = vmatprep.mubr.f32.mxu1 %v5637_v16 }
 0x2e0   : > { %3974 = vmatmul.mubr.msk.f32.gmra.mrb[6].mxu1 %vm1610_vm11, %v3970_v13 }
 0x2e1   : > { %2394 = vmatprep.mubr.f32.mxu1 %v5637_v16 }
 0x2e4   : > { %3979 = vmatmul.mubr.msk.f32.vlgmr.msra.gmra.mrb[0].mxu1 %vm1610_vm11, %v3975_v20  ;;  %v4310_v20 = vld [vmem:[%s4485_s21 + $0x18] sm:$0xff] }
 0x2e5   : > { %2456 = vmatpush1.msra.mxu1 %v2436_v14  ;;  %2400 = vmatprep.mubr.f32.mxu1 %v5637_v16 }
 0x2e6   : > { %2580 = vmatprep.subr.mxu1 %v2562_v15  ;;  %v2694_v15 = vpop.permute.xlu0 %2693 }
 0x2e8   : > { %3980 = vmatmul.mubr.msk.f32.gmra.mrb[2].mxu1 %vm1610_vm11, %v3976_v22 }
 0x2e9   : > { %2406 = vmatprep.mubr.f32.mxu1 %v5637_v16 }
 0x2ec   : > { %3981 = vmatmul.mubr.msk.f32.gmra.mrb[4].mxu1 %vm1610_vm11, %v3977_v23 }
 0x2ed   : > { %2412 = vmatprep.mubr.f32.mxu1 %v5637_v16 }
 0x2f0   : > { %3982 = vmatmul.mubr.msk.f32.gmra.mrb[6].mxu1 %vm1610_vm11, %v3978_v25  ;;  %v2699_v25 = vpop.permute.xlu1 %2698 }
 0x2f1   : > { %2519 = vmatprep.mubr.f32.mxu1 %v5637_v16 }
 0x2f4   : > { %3987 = vmatmul.mubr.msk.f32.vlgmr.msra.gmra.mrb[0].mxu1 %vm1610_vm11, %v3983_v28 }
 0x2f5   : > { %2581 = vmatpush1.msra.mxu1 %v2561_v29  ;;  %2525 = vmatprep.mubr.f32.mxu1 %v5637_v16 }
 0x2f8   : > { %3988 = vmatmul.mubr.msk.f32.gmra.mrb[2].mxu1 %vm1610_vm11, %v3984_v30 }
 0x2f9   : > { %2531 = vmatprep.mubr.f32.mxu1 %v5637_v16 }
 0x2fc   : > { %3989 = vmatmul.mubr.msk.f32.gmra.mrb[4].mxu1 %vm1610_vm11, %v3985_v31 }
 0x2fd   : > { %2537 = vmatprep.mubr.f32.mxu1 %v5637_v16 }
 0x300   : > { %3990 = vmatmul.mubr.msk.f32.gmra.mrb[6].mxu1 %vm1610_vm11, %v3986_v32 }
 0x301   : > { %2644 = vmatprep.mubr.f32.mxu1 %v5637_v16 }
 0x304   : > { %3995 = vmatmul.mubr.msk.f32.vlgmr.msra.gmra.mrb[0].mxu1 %vm1610_vm11, %v3991_v33  ;;  %v4311_v33 = vld [vmem:[%s4485_s21 + $0x20] sm:$0xff] }
 0x305   : > { %2650 = vmatprep.mubr.f32.mxu1 %v5637_v16 }
 0x308   : > { %3996 = vmatmul.mubr.msk.f32.gmra.mrb[2].mxu1 %vm1610_vm11, %v3992_v34 }
 0x309   : > { %2656 = vmatprep.mubr.f32.mxu1 %v5637_v16 }
 0x30c   : > { %3997 = vmatmul.mubr.msk.f32.gmra.mrb[4].mxu1 %vm1610_vm11, %v3993_v35  ;;  %v4312_v35 = vld [vmem:[%s4485_s21 + $0x28] sm:$0xff] }
 0x30d   : > { %2662 = vmatprep.mubr.f32.mxu1 %v5637_v16 }
 0x310   : > { %3998 = vmatmul.mubr.msk.f32.gmra.mrb[6].mxu1 %vm1610_vm11, %v3994_v36 }
 0x3d7   : > { %v2646_v42 = vpop.f32.mrb[0].mxu1 }
 0x3d8   : > { %v2701_v46 = vadd.f32 %v2684_v41, %v2646_v42  ;;  %v2648_v47 = vpop.f32.mrb[1].mxu1  ;;  %v4313_v42 = vld [vmem:[%s4485_s21 + $0x30] sm:$0xff] }
 0x3d9   : > { %v2702_v48 = vadd.f32 %v2684_v41, %v2648_v47 }
 0x3da   : > { %vm2709_vm12 = vcmp.ge.f32.partialorder %v2701_v46, 0.0  ;;  %v2718_v49 = vmul.f32 %v5162_v45, %v2701_v46 }
 0x3db   : > { %vm2710_vm13 = vcmp.ge.f32.partialorder %v2702_v48, 0.0  ;;  %v2719_v50 = vmul.f32 %v5162_v45, %v2702_v48  ;;  %v2652_v52 = vpop.f32.mrb[2].mxu1 }
 0x3dc   : > { %v2726_v53 = vsel %vm2709_vm12, %v2701_v46, %v2718_v49  ;;  %v2703_v56 = vadd.f32 %v2689_v51, %v2652_v52  ;;  %v2654_v59 = vpop.f32.mrb[3].mxu1 }
 0x3dd   : > { %v5167_v62 = vsub.f32 %v2726_v53, %v4307_v61  ;;  %v2727_v8 = vsel %vm2710_vm13, %v2702_v48, %v2719_v50  ;;  %v2704_v3 = vadd.f32 %v2689_v51, %v2654_v59  ;;  %v4314_v50 = vld [vmem:[%s4485_s21 + $0x38] sm:$0xff] }
 0x3de   : > { %v5170_v21 = vsub.f32 %v2727_v8, %v4308_v10  ;;  %vm2711_vm14 = vcmp.ge.f32.partialorder %v2703_v56, 0.0  ;;  %v2720_v63 = vmul.f32 %v5162_v45, %v2703_v56  ;;  %v3800_v8 = vld [vmem:[%s5633_s6] sm:$0xff] }
 0x3df   : > { %2808 = vrot.lane.b32.xlu0 %v5167_v62, %s4359_s18  ;;  %v2658_v19 = vpop.f32.mrb[4].mxu1  ;;  %v2721_v4 = vmul.f32 %v5162_v45, %v2704_v3  ;;  %vm2712_vm15 = vcmp.ge.f32.partialorder %v2704_v3, 0.0 }
 0x3e0   : > { %v2728_v0 = vsel %vm2711_vm14, %v2703_v56, %v2720_v63  ;;  %3314 = vrot.lane.b32.xlu1 %v5170_v21, %s4364_s23  ;;  %v2660_v1 = vpop.f32.mrb[5].mxu1  ;;  %v2705_v22 = vadd.f32 %v2694_v15, %v2658_v19 }
 0x3e1   : > { %v5178_v12 = vsub.f32 %v2728_v0, %v4309_v11  ;;  %v2729_v7 = vsel %vm2712_vm15, %v2704_v3, %v2721_v4  ;;  %v2706_v23 = vadd.f32 %v2694_v15, %v2660_v1 }
 0x3e2   : > { %v5198_v14 = vsub.f32 %v2729_v7, %v4310_v20  ;;  %v2722_v27 = vmul.f32 %v5162_v45, %v2705_v22  ;;  %vm2713_vm9 = vcmp.ge.f32.partialorder %v2705_v22, 0.0 }
 0x3e3   : > { %2763 = vrot.lane.b32.xlu0 %v5167_v62, %s4361_s30  ;;  %v2664_v13 = vpop.f32.mrb[6].mxu1  ;;  %v2723_v28 = vmul.f32 %v5162_v45, %v2706_v23  ;;  %vm2714_vm10 = vcmp.ge.f32.partialorder %v2706_v23, 0.0 }
 0x3e4   : > { %v2666_v2 = vpop.f32.mrb[7].mxu1  ;;  %2810 = vrot.lane.b32.xlu1 %v5178_v12, %s4359_s18  ;;  %v2707_v29 = vadd.f32 %v2699_v25, %v2664_v13  ;;  %v2730_v30 = vsel %vm2713_vm9, %v2705_v22, %v2722_v27 }
 0x3e5   : > { %v2731_v31 = vsel %vm2714_vm10, %v2706_v23, %v2723_v28  ;;  %v5224_v34 = vsub.f32 %v2730_v30, %v4311_v33  ;;  %v2708_v47 = vadd.f32 %v2699_v25, %v2666_v2 }
 0x3e6   : > { %v2724_v32 = vmul.f32 %v5162_v45, %v2707_v29  ;;  %vm2715_vm11 = vcmp.ge.f32.partialorder %v2707_v29, 0.0  ;;  %v5227_v36 = vsub.f32 %v2731_v31, %v4312_v35 }
 0x3e7   : > { %3002 = vrot.lane.b32.xlu0 %v5167_v62, %s4362_s19  ;;  %v2725_v48 = vmul.f32 %v5162_v45, %v2708_v47  ;;  %vm2716_vm12 = vcmp.ge.f32.partialorder %v2708_v47, 0.0 }
 0x3e8   : > { %2765 = vrot.lane.b32.xlu1 %v5178_v12, %s4361_s30  ;;  %v2732_v41 = vsel %vm2715_vm11, %v2707_v29, %v2724_v32 }
 0x3e9   : > { %v5234_v46 = vsub.f32 %v2732_v41, %v4313_v42  ;;  %v2733_v49 = vsel %vm2716_vm12, %v2708_v47, %v2725_v48 }
 0x3ea   : > { %v5254_v51 = vsub.f32 %v2733_v49, %v4314_v50 }
 0x3eb   : > { %3124 = vrot.lane.b32.xlu0 %v5167_v62, %s4363_s22 }
 0x3ec   : > { %3004 = vrot.lane.b32.xlu1 %v5178_v12, %s4362_s19 }
 0x3ef   : > { %3312 = vrot.lane.b32.xlu0 %v5167_v62, %s4364_s23 }
 0x3f0   : > { %3126 = vrot.lane.b32.xlu1 %v5178_v12, %s4363_s22 }
 0x3f3   : > { %2796 = vrot.lane.b32.xlu0 %v5170_v21, %s4359_s18 }
 0x3f4   : > { %2798 = vrot.lane.b32.xlu1 %v5198_v14, %s4359_s18 }
 0x3f7   : > { %2747 = vrot.lane.b32.xlu0 %v5170_v21, %s4361_s30 }
 0x3f8   : > { %2749 = vrot.lane.b32.xlu1 %v5198_v14, %s4361_s30 }
 0x3fb   : > { %2990 = vrot.lane.b32.xlu0 %v5170_v21, %s4362_s19 }
 0x3fc   : > { %2992 = vrot.lane.b32.xlu1 %v5198_v14, %s4362_s19 }
 0x3ff   : > { %3112 = vrot.lane.b32.xlu0 %v5170_v21, %s4363_s22 }
 0x400   : > { %3114 = vrot.lane.b32.xlu1 %v5198_v14, %s4363_s22 }
 0x403   : > { %3316 = vrot.lane.b32.xlu0 %v5178_v12, %s4364_s23 }
 0x404   : > { %3318 = vrot.lane.b32.xlu1 %v5198_v14, %s4364_s23 }
 0x407   : > { %2812 = vrot.lane.b32.xlu0 %v5224_v34, %s4359_s18 }
 0x408   : > { %3322 = vrot.lane.b32.xlu1 %v5227_v36, %s4364_s23 }
 0x40b   : > { %2767 = vrot.lane.b32.xlu0 %v5224_v34, %s4361_s30 }
 0x40c   : > { %2814 = vrot.lane.b32.xlu1 %v5234_v46, %s4359_s18 }
 0x40f   : > { %3006 = vrot.lane.b32.xlu0 %v5224_v34, %s4362_s19 }
 0x410   : > { %2769 = vrot.lane.b32.xlu1 %v5234_v46, %s4361_s30 }
 0x413   : > { %3128 = vrot.lane.b32.xlu0 %v5224_v34, %s4363_s22 }
 0x414   : > { %3008 = vrot.lane.b32.xlu1 %v5234_v46, %s4362_s19 }
 0x417   : > { %3320 = vrot.lane.b32.xlu0 %v5224_v34, %s4364_s23 }
 0x418   : > { %3130 = vrot.lane.b32.xlu1 %v5234_v46, %s4363_s22 }
 0x41b   : > { %2800 = vrot.lane.b32.xlu0 %v5227_v36, %s4359_s18 }
 0x41c   : > { %2802 = vrot.lane.b32.xlu1 %v5254_v51, %s4359_s18 }
 0x41f   : > { %3434 = vrot.lane.b32.xlu0 %v5167_v62, %s4365_s24 }
 0x420   : > { %3436 = vrot.lane.b32.xlu1 %v5170_v21, %s4365_s24 }
 0x423   : > { %2751 = vrot.lane.b32.xlu0 %v5227_v36, %s4361_s30 }
 0x424   : > { %2753 = vrot.lane.b32.xlu1 %v5254_v51, %s4361_s30 }
 0x427   : > { %2994 = vrot.lane.b32.xlu0 %v5227_v36, %s4362_s19 }
 0x428   : > { %3440 = vrot.lane.b32.xlu1 %v5198_v14, %s4365_s24 }
 0x42b   : > { %3116 = vrot.lane.b32.xlu0 %v5227_v36, %s4363_s22 }
 0x42c   : > { %2996 = vrot.lane.b32.xlu1 %v5254_v51, %s4362_s19 }
 0x42f   : > { %3324 = vrot.lane.b32.xlu0 %v5234_v46, %s4364_s23 }
 0x430   : > { %3444 = vrot.lane.b32.xlu1 %v5227_v36, %s4365_s24 }
 0x433   : > { %3438 = vrot.lane.b32.xlu0 %v5178_v12, %s4365_s24 }
 0x434   : > { %3118 = vrot.lane.b32.xlu1 %v5254_v51, %s4363_s22  ;;  %s3904_s22 = sshll.u32 %s3893_s12, 1 }
 0x435   : > { %p378_p4 = scmp.lt.s32.totalorder %s3904_s22, 3 }
 0x437   : > { %3442 = vrot.lane.b32.xlu0 %v5224_v34, %s4365_s24  ;;  %s5662_s22 = smov (!%p378_p4, %s3904_s22), 3 }
 0x438   : > { %3558 = vrot.lane.b32.xlu1 %v5170_v21, %s4366_s25 }
 0x43b   : > { %3446 = vrot.lane.b32.xlu0 %v5234_v46, %s4365_s24 }
 0x43c   : > { %3562 = vrot.lane.b32.xlu1 %v5198_v14, %s4366_s25 }
 0x43f   : > { %3556 = vrot.lane.b32.xlu0 %v5167_v62, %s4366_s25 }
 0x440   : > { %3566 = vrot.lane.b32.xlu1 %v5227_v36, %s4366_s25 }
 0x443   : > { %3560 = vrot.lane.b32.xlu0 %v5178_v12, %s4366_s25 }
 0x444   : > { %3326 = vrot.lane.b32.xlu1 %v5254_v51, %s4364_s23  ;;  %s3999_s23 = sld [smem:[#allocation2 + $0x2]] }
 0x447   : > { %3564 = vrot.lane.b32.xlu0 %v5224_v34, %s4366_s25 }
 0x448   : > { %3680 = vrot.lane.b32.xlu1 %v5170_v21, %s4367_s26 }
 0x44b   : > { %3568 = vrot.lane.b32.xlu0 %v5234_v46, %s4366_s25 }
 0x44c   : > { %3448 = vrot.lane.b32.xlu1 %v5254_v51, %s4365_s24  ;;  %s3905_s24 = sshll.u32 %s5662_s22, 3 }
 0x44d   : > { %s381_s20 = scalar_lea.vmem %s5636_s9, %s3905_s24 }
 0x44f   : > { %3678 = vrot.lane.b32.xlu0 %v5167_v62, %s4367_s26 }
 0x450   : > { %3684 = vrot.lane.b32.xlu1 %v5198_v14, %s4367_s26 }
 0x451   : > { %v2809_v45 = vpop.permute.xlu0 %2808 }
 0x452   : > { %v3315_v52 = vpop.permute.xlu1 %3314 }
 0x453   : > { %3682 = vrot.lane.b32.xlu0 %v5178_v12, %s4367_s26 }
 0x454   : > { %3570 = vrot.lane.b32.xlu1 %v5254_v51, %s4366_s25 }
 0x455   : > { %v2764_v53 = vpop.permute.xlu0 %2763 }
 0x456   : > { %v2811_v56 = vpop.permute.xlu1 %2810 }
 0x457   : > { %3686 = vrot.lane.b32.xlu0 %v5224_v34, %s4367_s26 }
 0x458   : > { %3688 = vrot.lane.b32.xlu1 %v5227_v36, %s4367_s26 }
 0x459   : > { %v5320_v59 = vpop.permute.xlu0 %3002 }
 0x45a   : > { %v2766_v61 = vpop.permute.xlu1 %2765 }
 0x45b   : > { %3690 = vrot.lane.b32.xlu0 %v5234_v46, %s4367_s26 }
 0x45c   : > { %3692 = vrot.lane.b32.xlu1 %v5254_v51, %s4367_s26 }
 0x45d   : > { %v5329_v10 = vpop.permute.xlu0 %3124 }
 0x45e   : > { %v5331_v63 = vpop.permute.xlu1 %3004 }
 0x45f   : > { %3803 = vperm.xlu0 %4305, %v3800_v8  }
 0x461   : > { %v3313_v19 = vpop.permute.xlu0 %3312 }
 0x462   : > { %v5334_v0 = vsel %vm1033_vm5, %v3313_v19, %v3315_v52  ;;  %v5337_v1 = vsel %vm1033_vm5, %v3315_v52, %v3313_v19  ;;  %v5339_v11 = vpop.permute.xlu1 %3126 }
 0x465   : > { %v2797_v13 = vpop.permute.xlu0 %2796 }
 0x466   : > { %v2816_v2 = vsel %vm478_vm0, %v2809_v45, %v2797_v13  ;;  %v2828_v3 = vsel %vm478_vm0, %v2797_v13, %v2809_v45  ;;  %v2799_v4 = vpop.permute.xlu1 %2798 }
 0x467   : > { %v2832_v7 = vmul.f32 %v2828_v3, %v4645_v26  ;;  %v2833_v20 = vmul.f32 %v2816_v2, %v4637_v24  ;;  %v2817_v15 = vsel %vm478_vm0, %v2811_v56, %v2799_v4  ;;  %v2829_v22 = vsel %vm478_vm0, %v2799_v4, %v2811_v56 }
 0x468   : > { %v2834_v23 = vmul.f32 %v2829_v22, %v4645_v26  ;;  %v2835_v25 = vmul.f32 %v2817_v15, %v4637_v24 }
 0x469   : > { %v2748_v27 = vpop.permute.xlu0 %2747 }
 0x46a   : > { %v4094_v28 = vpack.c.bf16 %v2834_v23, %v2832_v7  ;;  %v2750_v29 = vpop.permute.xlu1 %2749  ;;  %v4092_v30 = vpack.c.bf16 %v2835_v25, %v2833_v20  ;;  %v2771_v15 = vsel %vm420_vm1, %v2764_v53, %v2748_v27  ;;  %v2783_v25 = vsel %vm420_vm1, %v2748_v27, %v2764_v53 }
 0x46b   : > { %v2772_v22 = vsel %vm420_vm1, %v2766_v61, %v2750_v29  ;;  %v2788_v54 = vmul.f32 %v2771_v15, %v4680_v58  ;;  %v2787_v27 = vmul.f32 %v2783_v25, %v4677_v57 }
 0x46c   : > { %4093 = vmatprep.subr.bf16.mxu0 %v4092_v30  ;;  %v2790_v55 = vmul.f32 %v2772_v22, %v4680_v58 }
 0x46d   : > { %v2991_v31 = vpop.permute.xlu0 %2990  ;;  %4095 = vmatpush1.bf16.msra.mxu0 %v4094_v28  ;;  %v2784_v28 = vsel %vm420_vm1, %v2750_v29, %v2766_v61 }
 0x46e   : > { %v2993_v32 = vpop.permute.xlu1 %2992  ;;  %v2789_v29 = vmul.f32 %v2784_v28, %v4677_v57  ;;  %v3010_v15 = vsel %vm687_vm3, %v5320_v59, %v2991_v31 }
 0x471   : > { %v5349_v33 = vpop.permute.xlu0 %3112 }
 0x472   : > { %v3144_v35 = vsel %vm823_vm4, %v5349_v33, %v5329_v10  ;;  %v5354_v41 = vpop.permute.xlu1 %3114 }
 0x473   : > { %v5357_v42 = vmul.f32 %v3144_v35, %v4737_v17  ;;  %v3145_v47 = vsel %vm823_vm4, %v5354_v41, %v5339_v11 }
 0x474   : > { %v5363_v48 = vmul.f32 %v3145_v47, %v4737_v17 }
 0x475   : > { %v5365_v49 = vpop.permute.xlu0 %3316 }
 0x476   : > { %v5369_v45 = vpop.permute.xlu1 %3318 }
 0x479   : > { %v2813_v52 = vpop.permute.xlu0 %2812 }
 0x47a   : > { %v5371_v56 = vpop.permute.xlu1 %3322 }
 0x47d   : > { %v2768_v8 = vpop.permute.xlu0 %2767 }
 0x47e   : > { %v2815_v19 = vpop.permute.xlu1 %2814 }
 0x481   : > { %v5373_v13 = vpop.permute.xlu0 %3006 }
 0x482   : > { %v2770_v2 = vpop.permute.xlu1 %2769 }
 0x485   : > { %v5375_v3 = vpop.permute.xlu0 %3128 }
 0x486   : > { %v5377_v4 = vpop.permute.xlu1 %3008 }
 0x489   : > { %v5379_v7 = vpop.permute.xlu0 %3320 }
 0x48a   : > { %v5381_v20 = vpop.permute.xlu1 %3130 }
 0x48d   : > { %v2801_v23 = vpop.permute.xlu0 %2800 }
 0x48e   : > { %v2818_v30 = vsel %vm478_vm0, %v2813_v52, %v2801_v23  ;;  %v2830_v35 = vsel %vm478_vm0, %v2801_v23, %v2813_v52  ;;  %v2803_v47 = vpop.permute.xlu1 %2802 }
 0x48f   : > { %v2836_v50 = vmul.f32 %v2830_v35, %v4645_v26  ;;  %v2837_v16 = vmul.f32 %v2818_v30, %v4637_v24  ;;  %v2819_v43 = vsel %vm478_vm0, %v2815_v19, %v2803_v47  ;;  %v2831_v44 = vsel %vm478_vm0, %v2803_v47, %v2815_v19 }
 0x490   : > { %v2838_v53 = vmul.f32 %v2831_v44, %v4645_v26  ;;  %v2839_v61 = vmul.f32 %v2819_v43, %v4637_v24  ;;  %v4100_v19 = vpack.c.bf16 %v2790_v55, %v2788_v54  ;;  %v4102_v47 = vpack.c.bf16 %v2789_v29, %v2787_v27  ;;  %v4000_v43 = vld [vmem:[%s5632_s5 + $0x8] sm:$0xff] }
 0x491   : > { %v5399_v52 = vpop.permute.xlu0 %3434  ;;  %v3011_v26 = vsel %vm687_vm3, %v5331_v63, %v2993_v32  ;;  %v3022_v44 = vsel %vm687_vm3, %v2991_v31, %v5320_v59 }
 0x492   : > { %v4098_v23 = vpack.c.bf16 %v2838_v53, %v2836_v50  ;;  %v5401_v30 = vpop.permute.xlu1 %3436  ;;  %v4096_v35 = vpack.c.bf16 %v2839_v61, %v2837_v16  ;;  %v3023_v16 = vsel %vm687_vm3, %v2993_v32, %v5331_v63  ;;  %v3027_v61 = vmul.f32 %v3010_v15, %v4710_v39 }
 0x493   : > { %v3029_v59 = vmul.f32 %v3011_v26, %v4710_v39  ;;  %v3026_v27 = vmul.f32 %v3022_v44, %v4707_v38  ;;  %v3028_v29 = vmul.f32 %v3023_v16, %v4707_v38 }
 0x494   : > { %4097 = vmatprep.subr.bf16.mxu0 %v4096_v35 }
 0x495   : > { %v2752_v24 = vpop.permute.xlu0 %2751  ;;  %4099 = vmatpush1.bf16.msra.mxu0 %v4098_v23 }
 0x496   : > { %v2773_v54 = vsel %vm420_vm1, %v2768_v8, %v2752_v24  ;;  %v2785_v55 = vsel %vm420_vm1, %v2752_v24, %v2768_v8  ;;  %4101 = vmatprep.subr.bf16.mxu0 %v4100_v19  ;;  %v2754_v50 = vpop.permute.xlu1 %2753  ;;  %v5652_v8 = vmov 0.0   ;;  %v4108_v19 = vpack.c.bf16 %v3029_v59, %v3027_v61  ;;  %v2795_v24 = vld [vmem:[%s5632_s5] sm:$0xff]  ;;  %v4003_v61 = vld [vmem:[%s5632_s5 + $0x10] sm:$0xff] }
 0x497   : > { %v2791_v22 = vmul.f32 %v2785_v55, %v4677_v57  ;;  %v2792_v25 = vmul.f32 %v2773_v54, %v4680_v58  ;;  %v2774_v28 = vsel %vm420_vm1, %v2770_v2, %v2754_v50  ;;  %v2786_v53 = vsel %vm420_vm1, %v2754_v50, %v2770_v2 }
 0x498   : > { %v2793_v63 = vmul.f32 %v2786_v53, %v4677_v57  ;;  %v2794_v31 = vmul.f32 %v2774_v28, %v4680_v58  ;;  %4001 = vmatmul.mubr.msk.f32.vlgmr.msra.gmra.mrb[2].mxu0 %vm518_vm2, %v4000_v43  ;;  %v3132_v57 = vsel %vm823_vm4, %v5329_v10, %v5349_v33  ;;  %v3133_v58 = vsel %vm823_vm4, %v5339_v11, %v5354_v41 }
 0x499   : > { %v2995_v32 = vpop.permute.xlu0 %2994  ;;  %4103 = vmatpush1.bf16.msra.mxu0 %v4102_v47  ;;  %2983 = vmatprep.mubr.f32.mxu0 %v5652_v8  ;;  %v4110_v43 = vpack.c.bf16 %v3028_v29, %v3026_v27  ;;  %v3149_v33 = vmul.f32 %v3132_v57, %v4740_v18  ;;  %v3151_v11 = vmul.f32 %v3133_v58, %v4740_v18 }
 0x49a   : > { %v4106_v23 = vpack.c.bf16 %v2793_v63, %v2791_v22  ;;  %v5428_v2 = vpop.permute.xlu1 %3440  ;;  %v4104_v35 = vpack.c.bf16 %v2794_v31, %v2792_v25  ;;  %v3012_v47 = vsel %vm687_vm3, %v5373_v13, %v2995_v32  ;;  %v3024_v15 = vsel %vm687_vm3, %v2995_v32, %v5373_v13 }
 0x49b   : > { %v3030_v13 = vmul.f32 %v3024_v15, %v4707_v38  ;;  %v3031_v16 = vmul.f32 %v3012_v47, %v4710_v39  ;;  %v3329_v47 = vsel %vm1033_vm5, %v5365_v49, %v5369_v45  ;;  %v4128_v15 = vpack.c.bf16 %v5254_v51, %v5227_v36 }
 0x49c   : > { %4105 = vmatprep.subr.bf16.mxu0 %v4104_v35  ;;  %v5653_v35 = vpack.c.bf16 %v5363_v48, %v5357_v42  ;;  %v4005_v42 = vld [vmem:[%s5632_s5 + $0x18] sm:$0xff]  ;;  %v3348_v36 = vmul.f32 %v5334_v0, %v4784_v9  ;;  %v3466_v0 = vsel %vm1169_vm6, %v5401_v30, %v5399_v52 }
 0x49d   : > { %v3117_v26 = vpop.permute.xlu0 %3116  ;;  %4107 = vmatpush1.bf16.msra.mxu0 %v4106_v23 }
 0x49e   : > { %4109 = vmatprep.subr.bf16.mxu0 %v4108_v19  ;;  %v2997_v10 = vpop.permute.xlu1 %2996  ;;  %v3134_v53 = vsel %vm823_vm4, %v5375_v3, %v3117_v26  ;;  %v4124_v19 = vpack.c.bf16 %v5198_v14, %v5170_v21  ;;  %v4126_v21 = vpack.c.bf16 %v5178_v12, %v5167_v62  ;;  %v3330_v62 = vsel %vm1033_vm5, %v5379_v7, %v5371_v56 }
 0x49f   : > { %v3013_v41 = vsel %vm687_vm3, %v5377_v4, %v2997_v10  ;;  %v3025_v44 = vsel %vm687_vm3, %v2997_v10, %v5377_v4  ;;  %v4116_v4 = vpack.c.bf16 %v3151_v11, %v3149_v33  ;;  %v3153_v27 = vmul.f32 %v3134_v53, %v4740_v18  ;;  %v4007_v33 = vld [vmem:[%s5632_s5 + $0x20] sm:$0xff] }
 0x4a0   : > { %v3032_v54 = vmul.f32 %v3025_v44, %v4707_v38  ;;  %v3033_v55 = vmul.f32 %v3013_v41, %v4710_v39  ;;  %4002 = vmatmul.mubr.msk.f32.vlgmr.msra.gmra.mrb[2].mxu0 %vm518_vm2, %v2795_v24  ;;  %v3146_v38 = vsel %vm823_vm4, %v3117_v26, %v5375_v3  ;;  %v3349_v24 = vmul.f32 %v5337_v1, %v4774_v60 }
 0x4a1   : > { %v5454_v50 = vpop.permute.xlu0 %3324  ;;  %4111 = vmatpush1.bf16.msra.mxu0 %v4110_v43  ;;  %3103 = vmatprep.mubr.f32.mxu0 %v5652_v8  ;;  %v3152_v32 = vmul.f32 %v3146_v38, %v4737_v17  ;;  %v3350_v43 = vmul.f32 %v3329_v47, %v4784_v9  ;;  %v4130_v12 = vpack.c.bf16 %v5234_v46, %v5224_v34 }
 0x4a2   : > { %v4114_v22 = vpack.c.bf16 %v3032_v54, %v3030_v13  ;;  %v5457_v25 = vpop.permute.xlu1 %3444  ;;  %v4112_v28 = vpack.c.bf16 %v3033_v55, %v3031_v16  ;;  %v3346_v1 = vsel %vm1033_vm5, %v5371_v56, %v5379_v7  ;;  %v3352_v34 = vmul.f32 %v3330_v62, %v4784_v9 }
 0x4a3   : > { %v4134_v11 = vpack.c.bf16 %v3350_v43, %v3348_v36  ;;  %v3353_v44 = vmul.f32 %v3346_v1, %v4774_v60 }
 0x4a4   : > { %4113 = vmatprep.subr.bf16.mxu0 %v4112_v28 }
 0x4a5   : > { %v3439_v39 = vpop.permute.xlu0 %3438  ;;  %4115 = vmatpush1.bf16.msra.mxu0 %v4114_v22 }
 0x4a6   : > { %4117 = vmatprep.subr.bf16.mxu0 %v4116_v4  ;;  %v3119_v59 = vpop.permute.xlu1 %3118  ;;  %v3451_v56 = vsel %vm1169_vm6, %v3439_v39, %v5428_v2 }
 0x4a7   : > { %v3135_v63 = vsel %vm823_vm4, %v5381_v20, %v3119_v59  ;;  %v3147_v31 = vsel %vm823_vm4, %v3119_v59, %v5381_v20  ;;  %v3472_v22 = vmul.f32 %v3451_v56, %v4810_v37 }
 0x4a8   : > { %v3154_v3 = vmul.f32 %v3147_v31, %v4737_v17  ;;  %v3155_v29 = vmul.f32 %v3135_v63, %v4740_v18  ;;  %4004 = vmatmul.mubr.msk.f32.vlgmr.msra.gmra.mrb[2].mxu0 %vm518_vm2, %v4003_v61  ;;  %v3345_v17 = vsel %vm1033_vm5, %v5369_v45, %v5365_v49  ;;  %v3467_v45 = vsel %vm1169_vm6, %v5428_v2, %v3439_v39  ;;  %v4009_v61 = vld [vmem:[%s5632_s5 + $0x28] sm:$0xff] }
 0x4a9   : > { %v3443_v23 = vpop.permute.xlu0 %3442  ;;  %4119 = vmatpush1.bf16.msra.mxu0 %v5653_v35  ;;  %3225 = vmatprep.mubr.f32.mxu0 %v5652_v8  ;;  %v3351_v14 = vmul.f32 %v3345_v17, %v4774_v60  ;;  %v3473_v13 = vmul.f32 %v3467_v45, %v4813_v40  ;;  %v3450_v2 = vsel %vm1169_vm6, %v5399_v52, %v5401_v30  ;;  %v5654_v45 = vld [vmem:[#allocation7_spill] sm:$0xff] }
 0x4aa   : > { %v4122_v57 = vpack.c.bf16 %v3154_v3, %v3152_v32  ;;  %v5479_v58 = vpop.permute.xlu1 %3558  ;;  %v4120_v20 = vpack.c.bf16 %v3155_v29, %v3153_v27  ;;  %v3468_v52 = vsel %vm1169_vm6, %v5457_v25, %v3443_v23 }
 0x4ab   : > { %v4132_v51 = vpack.c.bf16 %v3351_v14, %v3349_v24  ;;  %v3475_v29 = vmul.f32 %v3468_v52, %v4813_v40 }
 0x4ac   : > { %4121 = vmatprep.subr.bf16.mxu0 %v4120_v20 }
 0x4ad   : > { %v5486_v18 = vpop.permute.xlu0 %3446  ;;  %4123 = vmatpush1.bf16.msra.mxu0 %v4122_v57 }
 0x4ae   : > { %4125 = vmatprep.subr.bf16.mxu0 %v4124_v19  ;;  %v3563_v48 = vpop.permute.xlu1 %3562 }
 0x4b0   : > { %4006 = vmatmul.mubr.msk.f32.vlgmr.msra.gmra.mrb[2].mxu0 %vm518_vm2, %v4005_v42 }
 0x4b1   : > { %v3557_v26 = vpop.permute.xlu0 %3556  ;;  %4127 = vmatpush1.bf16.msra.mxu0 %v4126_v21  ;;  %3303 = vmatprep.mubr.f32.mxu0 %v5652_v8 }
 0x4b2   : > { %4129 = vmatprep.subr.bf16.mxu0 %v4128_v15  ;;  %v5504_v49 = vpop.permute.xlu1 %3566  ;;  %v3588_v32 = vsel %vm1305_vm7, %v5479_v58, %v3557_v26  ;;  %v3572_v20 = vsel %vm1305_vm7, %v3557_v26, %v5479_v58  ;;  %v4011_v15 = vld [vmem:[%s5632_s5 + $0x30] sm:$0xff] }
 0x4b3   : > { %v3593_v17 = vmul.f32 %v3588_v32, %v4843_v6 }
 0x4b5   : > { %v3561_v10 = vpop.permute.xlu0 %3560  ;;  %4131 = vmatpush1.bf16.msra.mxu0 %v4130_v12 }
 0x4b6   : > { %4133 = vmatprep.subr.bf16.mxu0 %v4132_v51  ;;  %v3327_v46 = vpop.permute.xlu1 %3326  ;;  %v3589_v30 = vsel %vm1305_vm7, %v3563_v48, %v3561_v10  ;;  %v3573_v27 = vsel %vm1305_vm7, %v3561_v10, %v3563_v48 }
 0x4b7   : > { %v3331_v7 = vsel %vm1033_vm5, %v5454_v50, %v3327_v46  ;;  %v3347_v41 = vsel %vm1033_vm5, %v3327_v46, %v5454_v50  ;;  %v3471_v50 = vmul.f32 %v3466_v0, %v4813_v40 }
 0x4b8   : > { %v3354_v16 = vmul.f32 %v3331_v7, %v4784_v9  ;;  %v3355_v54 = vmul.f32 %v3347_v41, %v4774_v60  ;;  %4008 = vmatmul.mubr.msk.f32.vlgmr.msra.gmra.mrb[2].mxu0 %vm518_vm2, %v4007_v33  ;;  %v3452_v60 = vsel %vm1169_vm6, %v3443_v23, %v5457_v25  ;;  %v3470_v9 = vmul.f32 %v3450_v2, %v4810_v37 }
 0x4b9   : > { %v3565_v55 = vpop.permute.xlu0 %3564  ;;  %4135 = vmatpush1.bf16.msra.mxu0 %v4134_v11  ;;  %3425 = vmatprep.mubr.f32.mxu0 %v5652_v8  ;;  %v4140_v38 = vpack.c.bf16 %v3473_v13, %v3471_v50  ;;  %v3474_v63 = vmul.f32 %v3452_v60, %v4810_v37  ;;  %v3595_v23 = vmul.f32 %v3589_v30, %v4843_v6 }
 0x4ba   : > { %v4138_v28 = vpack.c.bf16 %v3354_v16, %v3352_v34  ;;  %v3681_v4 = vpop.permute.xlu1 %3680  ;;  %v4136_v53 = vpack.c.bf16 %v3355_v54, %v3353_v44  ;;  %v4142_v59 = vpack.c.bf16 %v3472_v22, %v3470_v9  ;;  %v3590_v21 = vsel %vm1305_vm7, %v5504_v49, %v3565_v55  ;;  %v5655_v44 = vld [vmem:[#allocation6_spill] sm:$0xff] }
 0x4bb   : > { %v4148_v58 = vpack.c.bf16 %v3595_v23, %v3593_v17  ;;  %v3597_v12 = vmul.f32 %v3590_v21, %v4843_v6 }
 0x4bc   : > { %4137 = vmatprep.subr.bf16.mxu0 %v4136_v53 }
 0x4bd   : > { %v3569_v39 = vpop.permute.xlu0 %3568  ;;  %4139 = vmatpush1.bf16.msra.mxu0 %v4138_v28 }
 0x4be   : > { %4141 = vmatprep.subr.bf16.mxu0 %v4140_v38  ;;  %v3449_v31 = vpop.permute.xlu1 %3448 }
 0x4bf   : > { %v3453_v25 = vsel %vm1169_vm6, %v5486_v18, %v3449_v31  ;;  %v3469_v3 = vsel %vm1169_vm6, %v3449_v31, %v5486_v18  ;;  %v3594_v18 = vmul.f32 %v3573_v27, %v4840_v5 }
 0x4c0   : > { %v3476_v35 = vmul.f32 %v3453_v25, %v4810_v37  ;;  %v3477_v57 = vmul.f32 %v3469_v3, %v4813_v40  ;;  %4010 = vmatmul.mubr.msk.f32.vlgmr.msra.gmra.mrb[2].mxu0 %vm518_vm2, %v4009_v61  ;;  %v3574_v37 = vsel %vm1305_vm7, %v3565_v55, %v5504_v49  ;;  %v3592_v40 = vmul.f32 %v3572_v20, %v4840_v5  ;;  %v4013_v55 = vld [vmem:[%s5632_s5 + $0x38] sm:$0xff] }
 0x4c1   : > { %v3679_v19 = vpop.permute.xlu0 %3678  ;;  %4143 = vmatpush1.bf16.msra.mxu0 %v4142_v59  ;;  %3547 = vmatprep.mubr.f32.mxu0 %v5652_v8  ;;  %v3596_v24 = vmul.f32 %v3574_v37, %v4840_v5 }
 0x4c2   : > { %v4146_v42 = vpack.c.bf16 %v3476_v35, %v3474_v63  ;;  %v3685_v48 = vpop.permute.xlu1 %3684  ;;  %v4144_v47 = vpack.c.bf16 %v3477_v57, %v3475_v29  ;;  %v4150_v26 = vpack.c.bf16 %v3594_v18, %v3592_v40  ;;  %v3710_v36 = vsel %vm1441_vm8, %v3681_v4, %v3679_v19  ;;  %v5656_v29 = vld [vmem:[#allocation9_spill] sm:$0xff]  ;;  %v5657_v57 = vld [vmem:[#allocation8_spill] sm:$0xff] }
 0x4c3   : > { %v3694_v46 = vsel %vm1441_vm8, %v3679_v19, %v3681_v4  ;;  %v3715_v0 = vmul.f32 %v3710_v36, %v5654_v45  ;;  %v3810_v63 = vstv %s3999_s23 }
 0x4c4   : > { %4145 = vmatprep.subr.bf16.mxu0 %v4144_v47 }
 0x4c5   : > { %v3683_v14 = vpop.permute.xlu0 %3682  ;;  %4147 = vmatpush1.bf16.msra.mxu0 %v4146_v42 }
 0x4c6   : > { %v3711_v43 = vsel %vm1441_vm8, %v3685_v48, %v3683_v14  ;;  %4149 = vmatprep.subr.bf16.mxu0 %v4148_v58  ;;  %v3571_v62 = vpop.permute.xlu1 %3570  ;;  %v3695_v1 = vsel %vm1441_vm8, %v3683_v14, %v3685_v48 }
 0x4c7   : > { %v3575_v49 = vsel %vm1305_vm7, %v3569_v39, %v3571_v62  ;;  %v3591_v51 = vsel %vm1305_vm7, %v3571_v62, %v3569_v39  ;;  %v3717_v10 = vmul.f32 %v3711_v43, %v5654_v45  ;;  %v3716_v13 = vmul.f32 %v3695_v1, %v5655_v44  ;;  %v4015_v39 = vld [vmem:[%s5632_s5 + $0x40] sm:$0xff] }
 0x4c8   : > { %v3598_v33 = vmul.f32 %v3575_v49, %v4840_v5  ;;  %v3599_v11 = vmul.f32 %v3591_v51, %v4843_v6  ;;  %4012 = vmatmul.mubr.msk.f32.vlgmr.msra.gmra.mrb[2].mxu0 %vm518_vm2, %v4011_v15  ;;  %v3714_v5 = vmul.f32 %v3694_v46, %v5655_v44 }
 0x4c9   : > { %v3687_v34 = vpop.permute.xlu0 %3686  ;;  %4151 = vmatpush1.bf16.msra.mxu0 %v4150_v26  ;;  %3669 = vmatprep.mubr.f32.mxu0 %v5652_v8  ;;  %v4156_v16 = vpack.c.bf16 %v3717_v10, %v3715_v0 }
 0x4ca   : > { %v4154_v56 = vpack.c.bf16 %v3598_v33, %v3596_v24  ;;  %v3689_v7 = vpop.permute.xlu1 %3688  ;;  %v4152_v41 = vpack.c.bf16 %v3599_v11, %v3597_v12  ;;  %v4158_v22 = vpack.c.bf16 %v3716_v13, %v3714_v5 }
 0x4cb   : > { %v3696_v6 = vsel %vm1441_vm8, %v3687_v34, %v3689_v7  ;;  %v3712_v54 = vsel %vm1441_vm8, %v3689_v7, %v3687_v34 }
 0x4cc   : > { %4153 = vmatprep.subr.bf16.mxu0 %v4152_v41  ;;  %v3718_v53 = vmul.f32 %v3696_v6, %v5655_v44  ;;  %v3719_v60 = vmul.f32 %v3712_v54, %v5654_v45 }
 0x4cd   : > { %v3691_v2 = vpop.permute.xlu0 %3690  ;;  %4155 = vmatpush1.bf16.msra.mxu0 %v4154_v56 }
 0x4ce   : > { %4157 = vmatprep.subr.bf16.mxu0 %v4156_v16  ;;  %v3693_v50 = vpop.permute.xlu1 %3692 }
 0x4cf   : > { %v3697_v28 = vsel %vm1441_vm8, %v3691_v2, %v3693_v50  ;;  %v3713_v4 = vsel %vm1441_vm8, %v3693_v50, %v3691_v2 }
 0x4d0   : > { %v3720_v9 = vmul.f32 %v3697_v28, %v5655_v44  ;;  %v3721_v38 = vmul.f32 %v3713_v4, %v5654_v45  ;;  %4014 = vmatmul.mubr.msk.f32.vlgmr.msra.gmra.mrb[2].mxu0 %vm518_vm2, %v4013_v55 }
 0x4d1   : > { %4159 = vmatpush1.bf16.msra.mxu0 %v4158_v22  ;;  %3791 = vmatprep.mubr.f32.mxu0 %v5652_v8 }
 0x4d2   : > { %v4162_v52 = vpack.c.bf16 %v3720_v9, %v3718_v53  ;;  %v4160_v30 = vpack.c.bf16 %v3721_v38, %v3719_v60 }
 0x4d4   : > { %4161 = vmatprep.subr.bf16.mxu0 %v4160_v30 }
 0x4d5   : > { %4163 = vmatpush1.bf16.msra.mxu0 %v4162_v52 }
 0x4d8   : > { %4016 = vmatmul.mubr.msk.f32.vlgmr.msra.gmra.mrb[2].mxu0 %vm518_vm2, %v4015_v39 }
 0x4de   : > { %v3804_v61 = vpop.permute.xlu0 %3803 }
 0x5ab   : > { %v3793_v59 = vpop.f32.mrb[2].mxu0 }
 0x5ac   : > { %v3806_v31 = vadd.f32 %v3804_v61, %v3793_v59  ;;  %v3795_v8 = vpop.f32.mrb[3].mxu0 }
 0x5ad   : > { %v3807_v32 = vadd.f32 %v3804_v61, %v3795_v8 }
 0x5ae   : > { %vm3808_vm0 = vcmp.ge.f32.partialorder %v3806_v31, 0.0  ;;  %v3811_v27 = vmul.f32 %v3810_v63, %v3806_v31 }
 0x5af   : > { %vm3809_vm1 = vcmp.ge.f32.partialorder %v3807_v32, 0.0  ;;  %v3812_v25 = vmul.f32 %v3810_v63, %v3807_v32 }
 0x5b0   : > { %v3813_v3 = vsel %vm3808_vm0, %v3806_v31, %v3811_v27 }
 0x5b1   : > { %v3815_v23 = vadd.f32 %v3813_v3, %v5656_v29  ;;  %v3814_v35 = vsel %vm3809_vm1, %v3807_v32, %v3812_v25 }
 0x5b2   : > { %v3816_v20 = vadd.f32 %v3814_v35, %v5657_v57 }
 0x5b3   : > { %3817 = vst [vmem:[%s381_s20] sm:$0xff] %v3815_v23 }
 0x5b4   : > { %3818 = vst [vmem:[%s381_s20 + $0x8] sm:$0xff] %v3816_v20 }
 0x5b5 PF: > { %p17_p6 = scmp.ge.s32.totalorder %s4436_s13, 4   ;;  %s5658_s30 = smov %s4352_s10 }
 0x5b6   : > { %s5659_s10 = smov %s4446_s16  ;;  %s5660_s11 = smov %s4436_s13 }
 0x5b7   :  { %19 = sbr.rel (!%p17_p6) target bundleno = 2 (0x2), region = 150 }
 0x5be   :  { %3841 = vsyncpa [#allocation3], 1 }
 0x5bf   :  { %3843 = vsyncpa [#allocation3 + $0x1], 1 }

// kernel: pbpn_block.2
= control target key start
LH: loop header
LB: loop body
LE: loop exit
PB: predicated region body
PF: predicated region fallthrough
CT: control target
= control target key end

     0   :  { %14 = vsyncpa [#allocation3], 0  ;;  %s4514_s30 = smov 0   ;;  %s4516_s10 = smov 0   ;;  %s5677_s0 = inlined_call_operand.vmem [shape: f32[3], index: 0, kind: input, shape index: {}]   ;;  %s5678_s1 = inlined_call_operand.vmem [shape: f32[9,32,8], index: 1, kind: input, shape index: {}]   ;;  %s5679_s2 = inlined_call_operand.vmem [shape: f32[32,1], index: 2, kind: input, shape index: {}]   ;;  %s5680_s3 = inlined_call_operand.vmem [shape: f32[9,8,32], index: 3, kind: input, shape index: {}]   ;;  %s5681_s4 = inlined_call_operand.vmem [shape: f32[8,1], index: 4, kind: input, shape index: {}]   ;;  %s5682_s5 = inlined_call_operand.vmem [shape: f32[9,32,8], index: 5, kind: input, shape index: {}]   ;;  %s5683_s6 = inlined_call_operand.vmem [shape: f32[32,1], index: 6, kind: input, shape index: {}]   ;;  %s5684_s7 = inlined_call_operand.vmem [shape: f32[9,1,256], index: 7, kind: input, shape index: {}]   ;;  %s5685_s8 = inlined_call_operand.vmem [shape: f32[8,512], index: 8, kind: input, shape index: {}]   ;;  %s5686_s9 = inlined_call_operand.vmem [shape: f32[32,512], index: 9, kind: output, shape index: {}]  }
   0x1   :  { %s4518_s11 = smov 0  }
   0x2 LB: > { %s4527_s12 = sadd.s32 4294967295, %s4451_s11   ;;  %s4529_s13 = sadd.s32 1, %s4451_s11   ;;  %s4451_s11 = sphi %s4518_s11, %s5715_s11   ;;  %s4447_s10 = sphi %s4516_s10, %s5714_s10   ;;  %s4443_s30 = sphi %s4514_s30, %s5713_s30  }
   0x3   : > { %s218_s14 = ssub.s32 %s4451_s11, %s4529_s13  ;;  %s221_s15 = sadd.s32 1, %s4447_s10 }
   0x4   : > { %p219_p0 = scmp.eq.s32.totalorder %s218_s14, 0  ;;  %p231_p1 = scmp.ne.s32.totalorder %s4447_s10, %s4443_s30 }
   0x5   : > { %p232_p2 = scmp.eq.s32.totalorder %s4527_s12, 1  ;;  %p3969_p3 = scmp.ge.s32.totalorder %s4451_s11, 1 }
   0x6   : > { %s4537_s16 = scalar_select %p219_p0, %s4447_s10, %s221_s15  }
   0x7   : > { %p4539_p4 = por %p232_p2, %p231_p1  ;;  %p245_p5 = scmp.lt.s32.totalorder %s4451_s11, 3 }
   0x8   : > { %p4369_p6 = scmp.eq.s32.totalorder %s4527_s12, 0  ;;  %s258_s21 = sshll.u32 %s5677_s0, 4  ;;  %s259_s21 = int_to_ptr.vmem [resolvable:$true] %s258_s21 }
   0x9   : > { %p4544_p7 = pnand %p3969_p3, %p245_p5  ;;  %s4410_s22 = scalar_lea.vmem %s259_s21, 16 }
   0xa   : > { %p4411_p10 = scmp.ne.s32.totalorder %s259_s21, %s4410_s22  ;;  %p4418_p0 = scmp.lt.s32.totalorder %s259_s21, %s259_s21 }
   0xb   : > { %p4365_p8 = pneg %p4544_p7  ;;  %p4419_p1 = scmp.lt.s32.totalorder %s4410_s22, %s4410_s22 }
   0xd   : > { %p4366_p9 = pnand %p4369_p6, %p4365_p8  ;;  %p4420_p2 = por %p4419_p1, %p4418_p0 }
   0xf   : > { %p4412_p11 = pneg %p4366_p9 }
  0x11   : > { %p4413_p12 = pnand %p4412_p11, %p4411_p10 }
  0x13   : > { %p4414_p13 = pneg %p4413_p12 }
  0x15   : > { %p4421_p3 = pnand %p4420_p2, %p4414_p13 }
  0x17   : > { %4424 = shalt.err (!%p4421_p3)
}
  0x18   : > { %s4453_s23 = smov [#allocation2]   ;;  %301 = sbr.rel (%p4544_p7) target bundleno = 1440 (0x5a0), region = 56 }
  0x19   : > { %4368 = dma.vmem_to_smem (!%p4366_p9), %s259_s21, 16, %s4453_s23, [#allocation3]  }
  0x1f   : > { %4438 = dma.done.wait (%p4369_p6), [#allocation3], 16  }
  0x20   : > { %4440 = vsyncadd (%p4369_p6), [#allocation3], 4294967280 }
  0x21   : > { %307 = sfence }
  0x22   : > { %s3975_s24 = sshll.u32 %s4527_s12, 1  ;;  %v5687_v0 = vmov 0.0   ;;  %s4455_s29 = smov 17   ;;  %v361_v3 = vlaneseq  ;;  %v359_v7 = vld [vmem:[%s5684_s7] sm:$0x3]  ;;  %vm354_vm0 = vcmask 138240  }
  0x23   : > { %p338_p5 = scmp.lt.s32.totalorder %s3975_s24, 3  ;;  %484 = vmatprep.mubr.f32.mxu0 %v5687_v0  ;;  %1857 = vmatprep.mubr.f32.mxu1 %v5687_v0  ;;  %s4456_s11 = smov 16   ;;  %v3977_v8 = vld [vmem:[%s5684_s7 + $0x2] sm:$0x3]  ;;  %vm382_vm1 = vcmask 130048   ;;  %vm615_vm2 = vcmask 121856  }
  0x24   : > { %s4457_s14 = smov 15   ;;  %s4458_s15 = smov 1   ;;  %v362_v4 = vshrl.u32 %v361_v3, 7  ;;  %v3990_v15 = vld [vmem:[%s5684_s7 + $0x4] sm:$0x3]  ;;  %vm407_vm3 = vcmask 64512  }
  0x25   : > { %s5717_s24 = smov (!%p338_p5, %s3975_s24), 3  ;;  %s4459_s18 = smov 127   ;;  %v3978_v27 = vld [vmem:[%s5678_s1 + $0x20] sm:$0xff]  ;;  %v3979_v32 = vld [vmem:[%s5678_s1 + $0x28] sm:$0xff]  ;;  %v3980_v33 = vld [vmem:[%s5678_s1 + $0x30] sm:$0xff]  ;;  %vm754_vm4 = vcmask 7168  }
  0x26   : > { %s3976_s25 = sshll.u32 %s5717_s24, 3  ;;  %s4460_s19 = smov 113   ;;  %v4607_v5 = vsub.s32 0, %v362_v4  ;;  %v4609_v6 = vsub.s32 1, %v362_v4  ;;  %v3999_v34 = vld [vmem:[%s5684_s7 + $0x6] sm:$0x3] }
  0x27   : > { %s4567_s28 = scalar_lea.vmem %s5685_s8, %s3976_s25  ;;  %s4461_s20 = smov 112   ;;  %v3981_v37 = vld [vmem:[%s5678_s1 + $0x38] sm:$0xff]  ;;  %v1558_v42 = vld [vmem:[%s5679_s2] sm:$0xff]  ;;  %v1559_v43 = vld [vmem:[%s5679_s2 + $0x8] sm:$0xff]  ;;  %v4463_v46 = vmov 0   ;;  %vm1006_vm5 = vcmask 1039360  }
  0x28   : > { %v4570_v1 = vld [vmem:[%s4567_s28 + $0x8] sm:$0xff]  ;;  %v4577_v2 = vld [vmem:[%s4567_s28] sm:$0xff]  ;;  %s4462_s21 = smov 111   ;;  %v4618_v11 = vrot.slane %v3977_v8, %v4609_v6  ;;  %v4621_v12 = vrot.slane %v3977_v8, %v4607_v5  ;;  %v4624_v13 = vrot.slane %v359_v7, %v4609_v6  ;;  %v4627_v14 = vrot.slane %v359_v7, %v4607_v5  ;;  %4406 = vset.pattern.permute.xlu0 %v4463_v46  ;;  %v1561_v48 = vld [vmem:[%s5679_s2 + $0x18] sm:$0xff]  ;;  %s346_s22 = sld [smem:[#allocation2]] }
  0x29   : > { %348 = vrot.lane.b32.xlu1 %v4570_v1, %s4455_s29  ;;  %377 = vrot.lane.b32.xlu0 %v4570_v1, %s4456_s11  ;;  %v4640_v25 = vrot.slane %v3990_v15, %v4609_v6  ;;  %v4667_v38 = vrot.slane %v3990_v15, %v4607_v5  ;;  %v4671_v40 = vrot.slane %v3999_v34, %v4609_v6  ;;  %v373_v45 = vld [vmem:[%s5678_s1] sm:$0xff]  ;;  %v1560_v49 = vld [vmem:[%s5679_s2 + $0x10] sm:$0xff]  ;;  %vm1145_vm6 = vcmask 924672   ;;  %s4052_s25 = sld [smem:[#allocation2 + $0x1]] }
  0x2a   : > { %4407 = vset.pattern.permute.xlu1 %v4463_v46  ;;  %v374_v50 = vld [vmem:[%s5678_s1 + $0x8] sm:$0xff]  ;;  %v375_v51 = vld [vmem:[%s5678_s1 + $0x10] sm:$0xff]  ;;  %v376_v52 = vld [vmem:[%s5678_s1 + $0x18] sm:$0xff]  ;;  %v4709_v53 = vrot.slane %v3999_v34, %v4607_v5  ;;  %vm1284_vm7 = vcmask 916480   ;;  %vm1423_vm8 = vcmask 908288  }
  0x2b   : > { %v3991_v56 = vld [vmem:[%s5678_s1 + $0x40] sm:$0xff]  ;;  %v3992_v57 = vld [vmem:[%s5678_s1 + $0x48] sm:$0xff]  ;;  %v3993_v58 = vld [vmem:[%s5678_s1 + $0x50] sm:$0xff] }
  0x2c   : > { %v4016_v59 = vld [vmem:[%s5684_s7 + $0xa] sm:$0x3]  ;;  %v3994_v62 = vld [vmem:[%s5678_s1 + $0x58] sm:$0xff]  ;;  %v4000_v3 = vld [vmem:[%s5678_s1 + $0x60] sm:$0xff] }
  0x2d   : > { %352 = vrot.lane.b32.xlu1 %v4577_v2, %s4455_s29  ;;  %380 = vrot.lane.b32.xlu0 %v4577_v2, %s4456_s11  ;;  %v4738_v63 = vrot.slane %v4016_v59, %v4609_v6  ;;  %v4001_v7 = vld [vmem:[%s5678_s1 + $0x68] sm:$0xff]  ;;  %v4002_v8 = vld [vmem:[%s5678_s1 + $0x70] sm:$0xff] }
  0x2e   : > { %v4003_v15 = vld [vmem:[%s5678_s1 + $0x78] sm:$0xff] }
  0x31   : > { %613 = vrot.lane.b32.xlu1 %v4577_v2, %s4457_s14  ;;  %610 = vrot.lane.b32.xlu0 %v4570_v1, %s4457_s14 }
  0x35   : > { %752 = vrot.lane.b32.xlu1 %v4577_v2, %s4458_s15  ;;  %749 = vrot.lane.b32.xlu0 %v4570_v1, %s4458_s15 }
  0x39   : > { %1004 = vrot.lane.b32.xlu1 %v4570_v1, %s4459_s18  ;;  %1002 = vrot.lane.b32.xlu0 %v4577_v2, %s4459_s18 }
  0x3d   : > { %1143 = vrot.lane.b32.xlu1 %v4570_v1, %s4460_s19  ;;  %1141 = vrot.lane.b32.xlu0 %v4577_v2, %s4460_s19 }
  0x41   : > { %1282 = vrot.lane.b32.xlu1 %v4570_v1, %s4461_s20  ;;  %1280 = vrot.lane.b32.xlu0 %v4577_v2, %s4461_s20 }
  0x45   : > { %1421 = vrot.lane.b32.xlu1 %v4570_v1, %s4462_s21  ;;  %1419 = vrot.lane.b32.xlu0 %v4577_v2, %s4462_s21 }
  0x49   : > { %1564 = vperm.xlu0 %4406, %v1558_v42   ;;  %1569 = vperm.xlu1 %4407, %v1559_v43  }
  0x4d   : > { %1579 = vperm.xlu0 %4406, %v1561_v48   ;;  %1574 = vperm.xlu1 %4407, %v1560_v49  }
  0x9b   : > { %v349_v9 = vpop.permute.xlu1 %348  ;;  %v378_v10 = vpop.permute.xlu0 %377 }
  0x9f   : > { %v353_v16 = vpop.permute.xlu1 %352  ;;  %v381_v17 = vpop.permute.xlu0 %380 }
  0xa0   : > { %v355_v18 = vsel %vm354_vm0, %v353_v16, %v349_v9  ;;  %v358_v19 = vsel %vm354_vm0, %v349_v9, %v353_v16  ;;  %v383_v20 = vsel %vm382_vm1, %v381_v17, %v378_v10  ;;  %v386_v21 = vsel %vm382_vm1, %v378_v10, %v381_v17  ;;  %v4025_v9 = vld [vmem:[%s5684_s7 + $0xc] sm:$0x3] }
  0xa1   : > { %v401_v22 = vmul.f32 %v4618_v11, %v383_v20  ;;  %v400_v23 = vmul.f32 %v4621_v12, %v386_v21  ;;  %v372_v24 = vmul.f32 %v4624_v13, %v355_v18  ;;  %v371_v26 = vmul.f32 %v4627_v14, %v358_v19  ;;  %v4008_v21 = vld [vmem:[%s5678_s1 + $0x80] sm:$0xff] }
  0xa2   : > { %v4767_v16 = vrot.slane %v4016_v59, %v4607_v5  ;;  %v4771_v18 = vrot.slane %v4025_v9, %v4609_v6  ;;  %v4037_v59 = vld [vmem:[%s5678_s1 + $0xf0] sm:$0xff] }
  0xa3   : > { %420 = vmatprep.subr.mxu0 %v401_v22  ;;  %v614_v28 = vpop.permute.xlu1 %613  ;;  %v611_v29 = vpop.permute.xlu0 %610 }
  0xa4   : > { %421 = vmatpush1.msra.mxu0 %v400_v23  ;;  %v616_v30 = vsel %vm615_vm2, %v614_v28, %v611_v29  ;;  %v619_v39 = vsel %vm615_vm2, %v611_v29, %v614_v28  ;;  %v4009_v23 = vld [vmem:[%s5678_s1 + $0x88] sm:$0xff]  ;;  %v4011_v29 = vld [vmem:[%s5678_s1 + $0x98] sm:$0xff] }
  0xa5   : > { %3982 = vmatmul.mubr.msk.f32.vlgmr.msra.gmra.mrb[0].mxu0 %vm407_vm3, %v3978_v27  ;;  %521 = vmatprep.subr.mxu0 %v372_v24  ;;  %v634_v31 = vmul.f32 %v4640_v25, %v616_v30  ;;  %v633_v44 = vmul.f32 %v4667_v38, %v619_v39  ;;  %v4010_v24 = vld [vmem:[%s5678_s1 + $0x90] sm:$0xff]  ;;  %v4800_v30 = vrot.slane %v4025_v9, %v4607_v5 }
  0xa6   : > { %522 = vmatpush1.msra.mxu0 %v371_v26  ;;  %490 = vmatprep.mubr.f32.mxu0 %v5687_v0  ;;  %v4034_v26 = vld [vmem:[%s5684_s7 + $0xe] sm:$0x3]  ;;  %v4019_v39 = vld [vmem:[%s5678_s1 + $0xb0] sm:$0xff] }
  0xa7   : > { %652 = vmatprep.subr.mxu0 %v634_v31  ;;  %v753_v35 = vpop.permute.xlu1 %752  ;;  %v750_v36 = vpop.permute.xlu0 %749 }
  0xa8   : > { %v755_v41 = vsel %vm754_vm4, %v753_v35, %v750_v36  ;;  %v758_v54 = vsel %vm754_vm4, %v750_v36, %v753_v35  ;;  %v4017_v35 = vld [vmem:[%s5678_s1 + $0xa0] sm:$0xff] }
  0xa9   : > { %3983 = vmatmul.mubr.msk.f32.gmra.mrb[2].mxu0 %vm407_vm3, %v3979_v32  ;;  %v773_v47 = vmul.f32 %v4671_v40, %v755_v41  ;;  %v772_v55 = vmul.f32 %v4709_v53, %v758_v54  ;;  %v4804_v32 = vrot.slane %v4034_v26, %v4609_v6  ;;  %v4043_v41 = vld [vmem:[%s5684_s7 + $0x10] sm:$0x3]  ;;  %v4029_v54 = vld [vmem:[%s5678_s1 + $0xd8] sm:$0xff] }
  0xaa   : > { %496 = vmatprep.mubr.f32.mxu0 %v5687_v0 }
  0xab   : > { %v1005_v60 = vpop.permute.xlu1 %1004  ;;  %v1003_v61 = vpop.permute.xlu0 %1002  ;;  %5699 = vst [vmem:[#allocation6_spill] sm:$0xff] %v4804_v32 }
  0xac   : > { %v1007_v17 = vsel %vm1006_vm5, %v1003_v61, %v1005_v60 }
  0xad   : > { %3984 = vmatmul.mubr.msk.f32.gmra.mrb[4].mxu0 %vm407_vm3, %v3980_v33  ;;  %v1025_v20 = vmul.f32 %v4767_v16, %v1007_v17 }
  0xae   : > { %502 = vmatprep.mubr.f32.mxu0 %v5687_v0 }
  0xaf   : > { %v1142_v10 = vpop.permute.xlu0 %1141 }
  0xb1   : > { %3985 = vmatmul.mubr.msk.f32.gmra.mrb[6].mxu0 %vm407_vm3, %v3981_v37  ;;  %v4018_v37 = vld [vmem:[%s5678_s1 + $0xa8] sm:$0xff] }
  0xb2   : > { %585 = vmatprep.mubr.f32.mxu0 %v5687_v0 }
  0xb3   : > { %v1281_v28 = vpop.permute.xlu0 %1280 }
  0xb5   : > { %3986 = vmatmul.mubr.msk.f32.vlgmr.msra.gmra.mrb[0].mxu0 %vm407_vm3, %v373_v45  ;;  %v4833_v45 = vrot.slane %v4034_v26, %v4607_v5 }
  0xb6   : > { %653 = vmatpush1.msra.mxu0 %v633_v44  ;;  %591 = vmatprep.mubr.f32.mxu0 %v5687_v0  ;;  %v4020_v44 = vld [vmem:[%s5678_s1 + $0xb8] sm:$0xff] }
  0xb7   : > { %791 = vmatprep.subr.mxu0 %v773_v47  ;;  %v1420_v43 = vpop.permute.xlu0 %1419  ;;  %v4837_v47 = vrot.slane %v4043_v41, %v4609_v6  ;;  %v4027_v6 = vld [vmem:[%s5678_s1 + $0xc8] sm:$0xff] }
  0xb9   : > { %3987 = vmatmul.mubr.msk.f32.gmra.mrb[2].mxu0 %vm407_vm3, %v374_v50  ;;  %5700 = vst [vmem:[#allocation7_spill] sm:$0xff] %v4837_v47  ;;  %v4026_v50 = vld [vmem:[%s5678_s1 + $0xc0] sm:$0xff] }
  0xba   : > { %597 = vmatprep.mubr.f32.mxu0 %v5687_v0 }
  0xbd   : > { %3988 = vmatmul.mubr.msk.f32.gmra.mrb[4].mxu0 %vm407_vm3, %v375_v51 }
  0xbe   : > { %603 = vmatprep.mubr.f32.mxu0 %v5687_v0 }
  0xc1   : > { %3989 = vmatmul.mubr.msk.f32.gmra.mrb[6].mxu0 %vm407_vm3, %v376_v52  ;;  %v4028_v52 = vld [vmem:[%s5678_s1 + $0xd0] sm:$0xff] }
  0xc2   : > { %716 = vmatprep.mubr.f32.mxu0 %v5687_v0 }
  0xc5   : > { %3995 = vmatmul.mubr.msk.f32.vlgmr.msra.gmra.mrb[0].mxu0 %vm407_vm3, %v3991_v56 }
  0xc6   : > { %792 = vmatpush1.msra.mxu0 %v772_v55  ;;  %722 = vmatprep.mubr.f32.mxu0 %v5687_v0  ;;  %v4863_v55 = vrot.slane %v4043_v41, %v4607_v5  ;;  %v4036_v5 = vld [vmem:[%s5678_s1 + $0xe8] sm:$0xff] }
  0xc7   : > { %905 = vmatprep.subr.mxu0 %v4570_v1  ;;  %v1011_v1 = vsel %vm1006_vm5, %v1005_v60, %v1003_v61  ;;  %v4038_v60 = vld [vmem:[%s5678_s1 + $0xf8] sm:$0xff]  ;;  %v4044_v61 = vld [vmem:[%s5678_s1 + $0x100] sm:$0xff] }
  0xc8   : > { %v1026_v4 = vmul.f32 %v4738_v63, %v1011_v1  ;;  %5701 = vst [vmem:[#allocation8_spill] sm:$0xff] %v4863_v55  ;;  %v4046_v1 = vld [vmem:[%s5678_s1 + $0x110] sm:$0xff] }
  0xc9   : > { %3996 = vmatmul.mubr.msk.f32.gmra.mrb[2].mxu0 %vm407_vm3, %v3992_v57 }
  0xca   : > { %728 = vmatprep.mubr.f32.mxu0 %v5687_v0 }
  0xcd   : > { %3997 = vmatmul.mubr.msk.f32.gmra.mrb[4].mxu0 %vm407_vm3, %v3993_v58  ;;  %v4035_v58 = vld [vmem:[%s5678_s1 + $0xe0] sm:$0xff] }
  0xce   : > { %734 = vmatprep.mubr.f32.mxu0 %v5687_v0 }
  0xd1   : > { %3998 = vmatmul.mubr.msk.f32.gmra.mrb[6].mxu0 %vm407_vm3, %v3994_v62  ;;  %v4045_v62 = vld [vmem:[%s5678_s1 + $0x108] sm:$0xff] }
  0xd2   : > { %855 = vmatprep.mubr.f32.mxu0 %v5687_v0 }
  0xd5   : > { %4004 = vmatmul.mubr.msk.f32.vlgmr.msra.gmra.mrb[0].mxu0 %vm407_vm3, %v4000_v3  ;;  %v4047_v3 = vld [vmem:[%s5678_s1 + $0x118] sm:$0xff] }
  0xd6   : > { %861 = vmatprep.mubr.f32.mxu0 %v5687_v0  ;;  %906 = vmatpush1.msra.mxu0 %v4577_v2  ;;  %v1144_v2 = vpop.permute.xlu1 %1143 }
  0xd7   : > { %1044 = vmatprep.subr.mxu0 %v1026_v4  ;;  %v1150_v19 = vsel %vm1145_vm6, %v1144_v2, %v1142_v10  ;;  %v1146_v31 = vsel %vm1145_vm6, %v1142_v10, %v1144_v2  ;;  %v1565_v4 = vpop.permute.xlu0 %1564 }
  0xd8   : > { %v1165_v22 = vmul.f32 %v4771_v18, %v1150_v19  ;;  %v1164_v34 = vmul.f32 %v4800_v30, %v1146_v31 }
  0xd9   : > { %4005 = vmatmul.mubr.msk.f32.gmra.mrb[2].mxu0 %vm407_vm3, %v4001_v7 }
  0xda   : > { %867 = vmatprep.mubr.f32.mxu0 %v5687_v0  ;;  %v1283_v27 = vpop.permute.xlu1 %1282 }
  0xdb   : > { %v1289_v33 = vsel %vm1284_vm7, %v1283_v27, %v1281_v28  ;;  %v1285_v46 = vsel %vm1284_vm7, %v1281_v28, %v1283_v27 }
  0xdc   : > { %v1304_v36 = vmul.f32 %v4804_v32, %v1289_v33  ;;  %v1303_v49 = vmul.f32 %v4833_v45, %v1285_v46 }
  0xdd   : > { %4006 = vmatmul.mubr.msk.f32.gmra.mrb[4].mxu0 %vm407_vm3, %v4002_v8  ;;  %v4909_v8 = vstv %s346_s22 }
  0xde   : > { %873 = vmatprep.mubr.f32.mxu0 %v5687_v0  ;;  %v1422_v42 = vpop.permute.xlu1 %1421 }
  0xdf   : > { %v1428_v48 = vsel %vm1423_vm8, %v1422_v42, %v1420_v43  ;;  %v1424_v56 = vsel %vm1423_vm8, %v1420_v43, %v1422_v42 }
  0xe0   : > { %v1443_v51 = vmul.f32 %v4837_v47, %v1428_v48  ;;  %v1442_v57 = vmul.f32 %v4863_v55, %v1424_v56 }
  0xe1   : > { %4007 = vmatmul.mubr.msk.f32.gmra.mrb[6].mxu0 %vm407_vm3, %v4003_v15 }
  0xe2   : > { %969 = vmatprep.mubr.f32.mxu0 %v5687_v0 }
  0xe5   : > { %4012 = vmatmul.mubr.msk.f32.vlgmr.msra.gmra.mrb[0].mxu0 %vm407_vm3, %v4008_v21 }
  0xe6   : > { %1045 = vmatpush1.msra.mxu0 %v1025_v20  ;;  %975 = vmatprep.mubr.f32.mxu0 %v5687_v0 }
  0xe7   : > { %1183 = vmatprep.subr.mxu0 %v1165_v22 }
  0xe9   : > { %4013 = vmatmul.mubr.msk.f32.gmra.mrb[2].mxu0 %vm407_vm3, %v4009_v23  ;;  %v1570_v23 = vpop.permute.xlu1 %1569 }
  0xea   : > { %981 = vmatprep.mubr.f32.mxu0 %v5687_v0 }
  0xed   : > { %4014 = vmatmul.mubr.msk.f32.gmra.mrb[4].mxu0 %vm407_vm3, %v4010_v24  ;;  %v1575_v43 = vpop.permute.xlu1 %1574 }
  0xee   : > { %987 = vmatprep.mubr.f32.mxu0 %v5687_v0 }
  0xf1   : > { %4015 = vmatmul.mubr.msk.f32.gmra.mrb[6].mxu0 %vm407_vm3, %v4011_v29  ;;  %v1580_v29 = vpop.permute.xlu0 %1579 }
  0xf2   : > { %1108 = vmatprep.mubr.f32.mxu0 %v5687_v0 }
  0xf5   : > { %4021 = vmatmul.mubr.msk.f32.vlgmr.msra.gmra.mrb[0].mxu0 %vm407_vm3, %v4017_v35 }
  0xf6   : > { %1184 = vmatpush1.msra.mxu0 %v1164_v34  ;;  %1114 = vmatprep.mubr.f32.mxu0 %v5687_v0 }
  0xf7   : > { %1322 = vmatprep.subr.mxu0 %v1304_v36 }
  0xf9   : > { %4022 = vmatmul.mubr.msk.f32.gmra.mrb[2].mxu0 %vm407_vm3, %v4018_v37 }
  0xfa   : > { %1120 = vmatprep.mubr.f32.mxu0 %v5687_v0 }
  0xfd   : > { %4023 = vmatmul.mubr.msk.f32.gmra.mrb[4].mxu0 %vm407_vm3, %v4019_v39 }
  0xfe   : > { %1126 = vmatprep.mubr.f32.mxu0 %v5687_v0 }
 0x101   : > { %4024 = vmatmul.mubr.msk.f32.gmra.mrb[6].mxu0 %vm407_vm3, %v4020_v44 }
 0x102   : > { %1247 = vmatprep.mubr.f32.mxu0 %v5687_v0 }
 0x105   : > { %4030 = vmatmul.mubr.msk.f32.vlgmr.msra.gmra.mrb[0].mxu0 %vm407_vm3, %v4026_v50 }
 0x106   : > { %1323 = vmatpush1.msra.mxu0 %v1303_v49  ;;  %1253 = vmatprep.mubr.f32.mxu0 %v5687_v0 }
 0x107   : > { %1461 = vmatprep.subr.mxu0 %v1443_v51 }
 0x109   : > { %4031 = vmatmul.mubr.msk.f32.gmra.mrb[2].mxu0 %vm407_vm3, %v4027_v6 }
 0x10a   : > { %1259 = vmatprep.mubr.f32.mxu0 %v5687_v0 }
 0x10d   : > { %4032 = vmatmul.mubr.msk.f32.gmra.mrb[4].mxu0 %vm407_vm3, %v4028_v52 }
 0x10e   : > { %1265 = vmatprep.mubr.f32.mxu0 %v5687_v0 }
 0x111   : > { %4033 = vmatmul.mubr.msk.f32.gmra.mrb[6].mxu0 %vm407_vm3, %v4029_v54 }
 0x112   : > { %1386 = vmatprep.mubr.f32.mxu0 %v5687_v0 }
 0x115   : > { %4039 = vmatmul.mubr.msk.f32.vlgmr.msra.gmra.mrb[0].mxu0 %vm407_vm3, %v4035_v58 }
 0x116   : > { %1462 = vmatpush1.msra.mxu0 %v1442_v57  ;;  %1392 = vmatprep.mubr.f32.mxu0 %v5687_v0 }
 0x119   : > { %4040 = vmatmul.mubr.msk.f32.gmra.mrb[2].mxu0 %vm407_vm3, %v4036_v5 }
 0x11a   : > { %1398 = vmatprep.mubr.f32.mxu0 %v5687_v0 }
 0x11d   : > { %4041 = vmatmul.mubr.msk.f32.gmra.mrb[4].mxu0 %vm407_vm3, %v4037_v59 }
 0x11e   : > { %1404 = vmatprep.mubr.f32.mxu0 %v5687_v0 }
 0x121   : > { %4042 = vmatmul.mubr.msk.f32.gmra.mrb[6].mxu0 %vm407_vm3, %v4038_v60 }
 0x122   : > { %1525 = vmatprep.mubr.f32.mxu0 %v5687_v0 }
 0x125   : > { %4048 = vmatmul.mubr.msk.f32.vlgmr.msra.gmra.mrb[0].mxu0 %vm407_vm3, %v4044_v61  ;;  %v2674_v61 = vld [vmem:[%s5681_s4] sm:$0xff] }
 0x126   : > { %1531 = vmatprep.mubr.f32.mxu0 %v5687_v0 }
 0x129   : > { %4049 = vmatmul.mubr.msk.f32.gmra.mrb[2].mxu0 %vm407_vm3, %v4045_v62 }
 0x12a   : > { %1537 = vmatprep.mubr.f32.mxu0 %v5687_v0 }
 0x12d   : > { %4050 = vmatmul.mubr.msk.f32.gmra.mrb[4].mxu0 %vm407_vm3, %v4046_v1 }
 0x12e   : > { %1543 = vmatprep.mubr.f32.mxu0 %v5687_v0 }
 0x131   : > { %4051 = vmatmul.mubr.msk.f32.gmra.mrb[6].mxu0 %vm407_vm3, %v4047_v3 }
 0x132   : > { %1783 = vmatprep.mubr.f32.mxu0 %v5687_v0 }
 0x1f8   : > { %v1527_v7 = vpop.f32.mrb[0].mxu0 }
 0x1f9   : > { %v1582_v9 = vadd.f32 %v1565_v4, %v1527_v7  ;;  %v1529_v2 = vpop.f32.mrb[1].mxu0 }
 0x1fa   : > { %v1583_v10 = vadd.f32 %v1565_v4, %v1529_v2 }
 0x1fb   : > { %vm1590_vm9 = vcmp.ge.f32.partialorder %v1582_v9, 0.0  ;;  %v1599_v15 = vmul.f32 %v4909_v8, %v1582_v9 }
 0x1fc   : > { %vm1591_vm10 = vcmp.ge.f32.partialorder %v1583_v10, 0.0  ;;  %v1600_v17 = vmul.f32 %v4909_v8, %v1583_v10  ;;  %v1533_v19 = vpop.f32.mrb[2].mxu0 }
 0x1fd   : > { %v4913_v20 = vsel %vm1590_vm9, %v1582_v9, %v1599_v15  ;;  %v1535_v21 = vpop.f32.mrb[3].mxu0  ;;  %v1584_v27 = vadd.f32 %v1570_v23, %v1533_v19 }
 0x1fe   : > { %v4915_v22 = vsel %vm1591_vm10, %v1583_v10, %v1600_v17  ;;  %1636 = vrot.lane.b32.xlu1 %v4913_v20, %s4455_s29  ;;  %v1585_v39 = vadd.f32 %v1570_v23, %v1535_v21  ;;  %vm1715_vm10 = vcmask 261120  }
 0x1ff   : > { %2188 = vrot.lane.b32.xlu0 %v4915_v22, %s4459_s18  ;;  %v1601_v33 = vmul.f32 %v4909_v8, %v1584_v27  ;;  %vm1592_vm11 = vcmp.ge.f32.partialorder %v1584_v27, 0.0 }
 0x200   : > { %v1539_v24 = vpop.f32.mrb[4].mxu0  ;;  %v1602_v41 = vmul.f32 %v4909_v8, %v1585_v39  ;;  %vm1593_vm13 = vcmp.ge.f32.partialorder %v1585_v39, 0.0 }
 0x201   : > { %v1541_v26 = vpop.f32.mrb[5].mxu0  ;;  %v4931_v36 = vsel %vm1592_vm11, %v1584_v27, %v1601_v33  ;;  %v1586_v44 = vadd.f32 %v1575_v43, %v1539_v24 }
 0x202   : > { %1876 = vrot.lane.b32.xlu1 %v4913_v20, %s4457_s14  ;;  %v4948_v42 = vsel %vm1593_vm13, %v1585_v39, %v1602_v41  ;;  %v1587_v46 = vadd.f32 %v1575_v43, %v1541_v26 }
 0x203   : > { %2310 = vrot.lane.b32.xlu0 %v4915_v22, %s4460_s19  ;;  %v1603_v48 = vmul.f32 %v4909_v8, %v1586_v44  ;;  %vm1594_vm14 = vcmp.ge.f32.partialorder %v1586_v44, 0.0 }
 0x204   : > { %v1545_v28 = vpop.f32.mrb[6].mxu0  ;;  %v1604_v49 = vmul.f32 %v4909_v8, %v1587_v46  ;;  %vm1595_vm15 = vcmp.ge.f32.partialorder %v1587_v46, 0.0 }
 0x205   : > { %v1547_v31 = vpop.f32.mrb[7].mxu0  ;;  %v4976_v50 = vsel %vm1594_vm14, %v1586_v44, %v1603_v48  ;;  %v1588_v6 = vadd.f32 %v1580_v29, %v1545_v28 }
 0x206   : > { %v1589_v34 = vadd.f32 %v1580_v29, %v1547_v31  ;;  %1998 = vrot.lane.b32.xlu1 %v4913_v20, %s4458_s15  ;;  %v4978_v51 = vsel %vm1595_vm15, %v1587_v46, %v1604_v49 }
 0x207   : > { %2432 = vrot.lane.b32.xlu0 %v4915_v22, %s4461_s20  ;;  %v1605_v52 = vmul.f32 %v4909_v8, %v1588_v6  ;;  %vm1596_vm9 = vcmp.ge.f32.partialorder %v1588_v6, 0.0 }
 0x208   : > { %vm1597_vm12 = vcmp.ge.f32.partialorder %v1589_v34, 0.0  ;;  %v1606_v35 = vmul.f32 %v4909_v8, %v1589_v34 }
 0x209   : > { %v4989_v54 = vsel %vm1596_vm9, %v1588_v6, %v1605_v52 }
 0x20a   : > { %v4933_v37 = vsel %vm1597_vm12, %v1589_v34, %v1606_v35  ;;  %2186 = vrot.lane.b32.xlu1 %v4913_v20, %s4459_s18 }
 0x20b   : > { %1638 = vrot.lane.b32.xlu0 %v4931_v36, %s4455_s29 }
 0x20e   : > { %2308 = vrot.lane.b32.xlu1 %v4913_v20, %s4460_s19 }
 0x20f   : > { %1878 = vrot.lane.b32.xlu0 %v4931_v36, %s4457_s14 }
 0x212   : > { %2430 = vrot.lane.b32.xlu1 %v4913_v20, %s4461_s20 }
 0x213   : > { %2000 = vrot.lane.b32.xlu0 %v4931_v36, %s4458_s15 }
 0x216   : > { %1620 = vrot.lane.b32.xlu1 %v4915_v22, %s4455_s29 }
 0x217   : > { %1622 = vrot.lane.b32.xlu0 %v4948_v42, %s4455_s29 }
 0x21a   : > { %1864 = vrot.lane.b32.xlu1 %v4915_v22, %s4457_s14 }
 0x21b   : > { %1866 = vrot.lane.b32.xlu0 %v4948_v42, %s4457_s14 }
 0x21e   : > { %1986 = vrot.lane.b32.xlu1 %v4915_v22, %s4458_s15 }
 0x21f   : > { %1988 = vrot.lane.b32.xlu0 %v4948_v42, %s4458_s15 }
 0x222   : > { %2190 = vrot.lane.b32.xlu1 %v4931_v36, %s4459_s18 }
 0x223   : > { %2192 = vrot.lane.b32.xlu0 %v4948_v42, %s4459_s18 }
 0x226   : > { %2312 = vrot.lane.b32.xlu1 %v4931_v36, %s4460_s19 }
 0x227   : > { %2314 = vrot.lane.b32.xlu0 %v4948_v42, %s4460_s19 }
 0x22a   : > { %2434 = vrot.lane.b32.xlu1 %v4931_v36, %s4461_s20 }
 0x22b   : > { %2436 = vrot.lane.b32.xlu0 %v4948_v42, %s4461_s20 }
 0x22e   : > { %1640 = vrot.lane.b32.xlu1 %v4976_v50, %s4455_s29 }
 0x22f   : > { %2196 = vrot.lane.b32.xlu0 %v4978_v51, %s4459_s18 }
 0x232   : > { %1880 = vrot.lane.b32.xlu1 %v4976_v50, %s4457_s14 }
 0x233   : > { %2318 = vrot.lane.b32.xlu0 %v4978_v51, %s4460_s19 }
 0x236   : > { %2002 = vrot.lane.b32.xlu1 %v4976_v50, %s4458_s15 }
 0x237   : > { %1642 = vrot.lane.b32.xlu0 %v4989_v54, %s4455_s29 }
 0x23a   : > { %2194 = vrot.lane.b32.xlu1 %v4976_v50, %s4459_s18 }
 0x23b   : > { %1882 = vrot.lane.b32.xlu0 %v4989_v54, %s4457_s14 }
 0x23e   : > { %2316 = vrot.lane.b32.xlu1 %v4976_v50, %s4460_s19 }
 0x23f   : > { %2004 = vrot.lane.b32.xlu0 %v4989_v54, %s4458_s15 }
 0x242   : > { %1624 = vrot.lane.b32.xlu1 %v4978_v51, %s4455_s29 }
 0x243   : > { %1626 = vrot.lane.b32.xlu0 %v4933_v37, %s4455_s29 }
 0x246   : > { %2438 = vrot.lane.b32.xlu1 %v4976_v50, %s4461_s20 }
 0x247   : > { %2440 = vrot.lane.b32.xlu0 %v4978_v51, %s4461_s20 }
 0x24a   : > { %1868 = vrot.lane.b32.xlu1 %v4978_v51, %s4457_s14 }
 0x24b   : > { %1870 = vrot.lane.b32.xlu0 %v4933_v37, %s4457_s14 }
 0x24e   : > { %1990 = vrot.lane.b32.xlu1 %v4978_v51, %s4458_s15 }
 0x24f   : > { %1671 = vrot.lane.b32.xlu0 %v4948_v42, %s4456_s11 }
 0x252   : > { %2198 = vrot.lane.b32.xlu1 %v4989_v54, %s4459_s18 }
 0x253   : > { %1992 = vrot.lane.b32.xlu0 %v4933_v37, %s4458_s15 }
 0x256   : > { %2320 = vrot.lane.b32.xlu1 %v4989_v54, %s4460_s19 }
 0x257   : > { %1683 = vrot.lane.b32.xlu0 %v4931_v36, %s4456_s11 }
 0x25a   : > { %2442 = vrot.lane.b32.xlu1 %v4989_v54, %s4461_s20 }
 0x25b   : > { %2554 = vrot.lane.b32.xlu0 %v4915_v22, %s4462_s21 }
 0x25e   : > { %1669 = vrot.lane.b32.xlu1 %v4915_v22, %s4456_s11 }
 0x25f   : > { %2558 = vrot.lane.b32.xlu0 %v4948_v42, %s4462_s21 }
 0x262   : > { %1681 = vrot.lane.b32.xlu1 %v4913_v20, %s4456_s11 }
 0x263   : > { %2200 = vrot.lane.b32.xlu0 %v4933_v37, %s4459_s18 }
 0x266   : > { %2552 = vrot.lane.b32.xlu1 %v4913_v20, %s4462_s21 }
 0x267   : > { %1687 = vrot.lane.b32.xlu0 %v4989_v54, %s4456_s11 }
 0x26a   : > { %2556 = vrot.lane.b32.xlu1 %v4931_v36, %s4462_s21 }
 0x26b   : > { %2322 = vrot.lane.b32.xlu0 %v4933_v37, %s4460_s19 }
 0x26e   : > { %1673 = vrot.lane.b32.xlu1 %v4978_v51, %s4456_s11 }
 0x26f   : > { %2562 = vrot.lane.b32.xlu0 %v4978_v51, %s4462_s21 }
 0x270   : > { %v1637_v56 = vpop.permute.xlu1 %1636 }
 0x271   : > { %v2189_v57 = vpop.permute.xlu0 %2188 }
 0x272   : > { %1685 = vrot.lane.b32.xlu1 %v4976_v50, %s4456_s11 }
 0x273   : > { %2444 = vrot.lane.b32.xlu0 %v4933_v37, %s4461_s20 }
 0x274   : > { %v5055_v58 = vpop.permute.xlu1 %1876 }
 0x275   : > { %v2311_v5 = vpop.permute.xlu0 %2310 }
 0x276   : > { %2560 = vrot.lane.b32.xlu1 %v4976_v50, %s4462_s21 }
 0x277   : > { %1675 = vrot.lane.b32.xlu0 %v4933_v37, %s4456_s11 }
 0x278   : > { %v5061_v59 = vpop.permute.xlu1 %1998 }
 0x279   : > { %v2433_v60 = vpop.permute.xlu0 %2432 }
 0x27a   : > { %2564 = vrot.lane.b32.xlu1 %v4989_v54, %s4462_s21 }
 0x27b   : > { %2566 = vrot.lane.b32.xlu0 %v4933_v37, %s4462_s21 }
 0x27c   : > { %v2187_v62 = vpop.permute.xlu1 %2186 }
 0x27d   : > { %v5071_v1 = vsel %vm1006_vm5, %v2187_v62, %v2189_v57  ;;  %v5074_v3 = vsel %vm1006_vm5, %v2189_v57, %v2187_v62  ;;  %v1639_v4 = vpop.permute.xlu0 %1638 }
 0x27e   : > { %2677 = vperm.xlu1 %4407, %v2674_v61  }
 0x280   : > { %v2309_v7 = vpop.permute.xlu1 %2308 }
 0x281   : > { %v2324_v8 = vsel %vm1145_vm6, %v2309_v7, %v2311_v5  ;;  %v5078_v9 = vsel %vm1145_vm6, %v2311_v5, %v2309_v7  ;;  %v1879_v2 = vpop.permute.xlu0 %1878 }
 0x282   : > { %v5108_v57 = vmul.f32 %v2324_v8, %v4800_v30 }
 0x284   : > { %v2431_v10 = vpop.permute.xlu1 %2430 }
 0x285   : > { %v2446_v15 = vsel %vm1284_vm7, %v2431_v10, %v2433_v60  ;;  %v2462_v17 = vsel %vm1284_vm7, %v2433_v60, %v2431_v10  ;;  %v5082_v19 = vpop.permute.xlu0 %2000 }
 0x286   : > { %v5118_v10 = vmul.f32 %v2446_v15, %v4833_v45 }
 0x288   : > { %v1621_v21 = vpop.permute.xlu1 %1620  ;;  %5702 = vst [vmem:[#allocation9_spill] sm:$0xff] %v5118_v10 }
 0x289   : > { %v1644_v23 = vsel %vm354_vm0, %v1637_v56, %v1621_v21  ;;  %v1656_v24 = vsel %vm354_vm0, %v1621_v21, %v1637_v56  ;;  %v1623_v26 = vpop.permute.xlu0 %1622  ;;  %v5121_v21 = vmul.f32 %v2462_v17, %v4804_v32 }
 0x28a   : > { %v1660_v27 = vmul.f32 %v1656_v24, %v4627_v14  ;;  %v1645_v28 = vsel %vm354_vm0, %v1639_v4, %v1623_v26  ;;  %v1657_v29 = vsel %vm354_vm0, %v1623_v26, %v1639_v4  ;;  %v1661_v31 = vmul.f32 %v1644_v23, %v4624_v13 }
 0x28b   : > { %v1662_v33 = vmul.f32 %v1657_v29, %v4627_v14  ;;  %v1663_v34 = vmul.f32 %v1645_v28, %v4624_v13 }
 0x28c   : > { %v1865_v35 = vpop.permute.xlu1 %1864 }
 0x28d   : > { %v1867_v39 = vpop.permute.xlu0 %1866  ;;  %v4153_v41 = vpack.c.bf16 %v1663_v34, %v1661_v31  ;;  %v4155_v43 = vpack.c.bf16 %v1662_v33, %v1660_v27 }
 0x28f   : > { %4154 = vmatprep.subr.bf16.mxu1 %v4153_v41 }
 0x290   : > { %v5092_v44 = vpop.permute.xlu1 %1986  ;;  %4156 = vmatpush1.bf16.msra.mxu1 %v4155_v43 }
 0x291   : > { %v5094_v46 = vpop.permute.xlu0 %1988 }
 0x294   : > { %v5096_v48 = vpop.permute.xlu1 %2190 }
 0x295   : > { %v5098_v49 = vpop.permute.xlu0 %2192 }
 0x298   : > { %v5100_v6 = vpop.permute.xlu1 %2312 }
 0x299   : > { %v5102_v52 = vpop.permute.xlu0 %2314 }
 0x29a   : > { %v2325_v56 = vsel %vm1145_vm6, %v5100_v6, %v5102_v52 }
 0x29b   : > { %v5111_v5 = vmul.f32 %v2325_v56, %v4800_v30  ;;  %v1884_v56 = vsel %vm615_vm2, %v5055_v58, %v1865_v35 }
 0x29c   : > { %v2435_v60 = vpop.permute.xlu1 %2434 }
 0x29d   : > { %v2437_v62 = vpop.permute.xlu0 %2436 }
 0x29e   : > { %v2447_v4 = vsel %vm1284_vm7, %v2435_v60, %v2437_v62  ;;  %v2463_v7 = vsel %vm1284_vm7, %v2437_v62, %v2435_v60  ;;  %v1885_v60 = vsel %vm615_vm2, %v1879_v2, %v1867_v39 }
 0x29f   : > { %v5124_v8 = vmul.f32 %v2447_v4, %v4833_v45  ;;  %v5127_v23 = vmul.f32 %v2463_v7, %v4804_v32  ;;  %v1896_v4 = vsel %vm615_vm2, %v1865_v35, %v5055_v58  ;;  %v1897_v7 = vsel %vm615_vm2, %v1867_v39, %v1879_v2 }
 0x2a0   : > { %v1641_v24 = vpop.permute.xlu1 %1640  ;;  %v1901_v32 = vmul.f32 %v1884_v56, %v4640_v25  ;;  %v1903_v47 = vmul.f32 %v1885_v60, %v4640_v25  ;;  %v1900_v35 = vmul.f32 %v1896_v4, %v4667_v38  ;;  %v1902_v39 = vmul.f32 %v1897_v7, %v4667_v38  ;;  %v1668_v60 = vld [vmem:[%s5680_s3] sm:$0xff] }
 0x2a1   : > { %5703 = vst [vmem:[#allocation10_spill] sm:$0xff] %v5124_v8  ;;  %v5131_v27 = vpop.permute.xlu0 %2196 }
 0x2a2   : > { %v4163_v56 = vpack.c.bf16 %v1902_v39, %v1900_v35 }
 0x2a4   : > { %v1881_v15 = vpop.permute.xlu1 %1880 }
 0x2a5   : > { %v5135_v29 = vpop.permute.xlu0 %2318 }
 0x2a8   : > { %v5137_v17 = vpop.permute.xlu1 %2002 }
 0x2a9   : > { %v1643_v31 = vpop.permute.xlu0 %1642 }
 0x2ac   : > { %v5139_v33 = vpop.permute.xlu1 %2194 }
 0x2ad   : > { %v1883_v34 = vpop.permute.xlu0 %1882 }
 0x2b0   : > { %v5141_v41 = vpop.permute.xlu1 %2316 }
 0x2b1   : > { %v5143_v43 = vpop.permute.xlu0 %2004 }
 0x2b4   : > { %v1625_v62 = vpop.permute.xlu1 %1624 }
 0x2b5   : > { %v1646_v26 = vsel %vm354_vm0, %v1641_v24, %v1625_v62  ;;  %v1658_v28 = vsel %vm354_vm0, %v1625_v62, %v1641_v24  ;;  %v1627_v61 = vpop.permute.xlu0 %1626 }
 0x2b6   : > { %v1664_v0 = vmul.f32 %v1658_v28, %v4627_v14  ;;  %v1665_v55 = vmul.f32 %v1646_v26, %v4624_v13  ;;  %v1647_v10 = vsel %vm354_vm0, %v1643_v31, %v1627_v61  ;;  %v1659_v8 = vsel %vm354_vm0, %v1627_v61, %v1643_v31 }
 0x2b7   : > { %v1666_v58 = vmul.f32 %v1659_v8, %v4627_v14  ;;  %v1667_v2 = vmul.f32 %v1647_v10, %v4624_v13  ;;  %v2006_v61 = vsel %vm754_vm4, %v5061_v59, %v5092_v44  ;;  %v4161_v31 = vpack.c.bf16 %v1903_v47, %v1901_v32 }
 0x2b8   : > { %v5163_v24 = vpop.permute.xlu1 %2438  ;;  %v2007_v10 = vsel %vm754_vm4, %v5082_v19, %v5094_v46 }
 0x2b9   : > { %v5165_v28 = vpop.permute.xlu0 %2440  ;;  %v4157_v26 = vpack.c.bf16 %v1667_v2, %v1665_v55  ;;  %v4159_v62 = vpack.c.bf16 %v1666_v58, %v1664_v0  ;;  %v2018_v0 = vsel %vm754_vm4, %v5092_v44, %v5061_v59  ;;  %v2023_v55 = vmul.f32 %v2006_v61, %v4671_v40 }
 0x2ba   : > { %v2019_v59 = vsel %vm754_vm4, %v5094_v46, %v5082_v19  ;;  %v2025_v44 = vmul.f32 %v2007_v10, %v4671_v40 }
 0x2bb   : > { %4158 = vmatprep.subr.bf16.mxu1 %v4157_v26 }
 0x2bc   : > { %v1869_v8 = vpop.permute.xlu1 %1868  ;;  %4160 = vmatpush1.bf16.msra.mxu1 %v4159_v62  ;;  %v5704_v62 = vmov 0.0   ;;  %v4169_v19 = vpack.c.bf16 %v2025_v44, %v2023_v55 }
 0x2bd   : > { %v1886_v32 = vsel %vm615_vm2, %v1881_v15, %v1869_v8  ;;  %v1898_v47 = vsel %vm615_vm2, %v1869_v8, %v1881_v15  ;;  %4162 = vmatprep.subr.bf16.mxu1 %v4161_v31  ;;  %v1871_v4 = vpop.permute.xlu0 %1870 }
 0x2be   : > { %v1904_v7 = vmul.f32 %v1898_v47, %v4667_v38  ;;  %v1905_v58 = vmul.f32 %v1886_v32, %v4640_v25  ;;  %v1887_v2 = vsel %vm615_vm2, %v1883_v34, %v1871_v4  ;;  %v1899_v35 = vsel %vm615_vm2, %v1871_v4, %v1883_v34 }
 0x2bf   : > { %v1906_v39 = vmul.f32 %v1899_v35, %v4667_v38  ;;  %v1907_v15 = vmul.f32 %v1887_v2, %v4640_v25  ;;  %4055 = vmatmul.mubr.msk.f32.vlgmr.msra.gmra.mrb[0].mxu1 %vm1715_vm10, %v1668_v60  ;;  %v2022_v34 = vmul.f32 %v2018_v0, %v4709_v53  ;;  %v2024_v32 = vmul.f32 %v2019_v59, %v4709_v53 }
 0x2c0   : > { %v1991_v26 = vpop.permute.xlu1 %1990  ;;  %4164 = vmatpush1.bf16.msra.mxu1 %v4163_v56  ;;  %1977 = vmatprep.mubr.f32.mxu1 %v5704_v62  ;;  %v4056_v56 = vld [vmem:[%s5680_s3 + $0x10] sm:$0xff] }
 0x2c1   : > { %v4167_v61 = vpack.c.bf16 %v1906_v39, %v1904_v7  ;;  %v1672_v31 = vpop.permute.xlu0 %1671  ;;  %v4165_v8 = vpack.c.bf16 %v1907_v15, %v1905_v58  ;;  %v2008_v46 = vsel %vm754_vm4, %v5137_v17, %v1991_v26  ;;  %v2020_v10 = vsel %vm754_vm4, %v1991_v26, %v5137_v17 }
 0x2c2   : > { %v4171_v4 = vpack.c.bf16 %v2024_v32, %v2022_v34  ;;  %v2026_v7 = vmul.f32 %v2020_v10, %v4709_v53  ;;  %v2027_v58 = vmul.f32 %v2008_v46, %v4671_v40  ;;  %v2219_v15 = vsel %vm1006_vm5, %v5098_v49, %v5096_v48 }
 0x2c3   : > { %4166 = vmatprep.subr.bf16.mxu1 %v4165_v8  ;;  %v2203_v8 = vsel %vm1006_vm5, %v5096_v48, %v5098_v49  ;;  %v4179_v32 = vpack.c.bf16 %v4931_v36, %v4913_v20  ;;  %v4181_v46 = vpack.c.bf16 %v4933_v37, %v4978_v51  ;;  %v2223_v48 = vmul.f32 %v5074_v3, %v4738_v63 }
 0x2c4   : > { %v2199_v60 = vpop.permute.xlu1 %2198  ;;  %4168 = vmatpush1.bf16.msra.mxu1 %v4167_v61  ;;  %v4058_v61 = vld [vmem:[%s5680_s3 + $0x18] sm:$0xff]  ;;  %v2224_v10 = vmul.f32 %v2203_v8, %v4767_v16  ;;  %v2341_v49 = vsel %vm1145_vm6, %v5102_v52, %v5100_v6  ;;  %v2204_v6 = vsel %vm1006_vm5, %v5139_v33, %v5131_v27  ;;  %v2220_v52 = vsel %vm1006_vm5, %v5131_v27, %v5139_v33 }
 0x2c5   : > { %4170 = vmatprep.subr.bf16.mxu1 %v4169_v19  ;;  %v1993_v47 = vpop.permute.xlu0 %1992  ;;  %v2225_v19 = vmul.f32 %v2219_v15, %v4738_v63  ;;  %v2347_v3 = vmul.f32 %v2341_v49, %v4771_v18  ;;  %v2226_v8 = vmul.f32 %v2204_v6, %v4767_v16  ;;  %v2345_v49 = vmul.f32 %v5078_v9, %v4771_v18  ;;  %v4062_v9 = vld [vmem:[%s5680_s3 + $0x28] sm:$0xff] }
 0x2c6   : > { %v2009_v0 = vsel %vm754_vm4, %v5143_v43, %v1993_v47  ;;  %v2021_v55 = vsel %vm754_vm4, %v1993_v47, %v5143_v43  ;;  %v4177_v43 = vpack.c.bf16 %v4948_v42, %v4915_v22 }
 0x2c7   : > { %v2028_v17 = vmul.f32 %v2021_v55, %v4709_v53  ;;  %v2029_v2 = vmul.f32 %v2009_v0, %v4671_v40  ;;  %4057 = vmatmul.mubr.msk.f32.vlgmr.msra.gmra.mrb[0].mxu1 %vm1715_vm10, %v4056_v56 }
 0x2c8   : > { %v5212_v35 = vpop.permute.xlu1 %2320  ;;  %4172 = vmatpush1.bf16.msra.mxu1 %v4171_v4  ;;  %2099 = vmatprep.mubr.f32.mxu1 %v5704_v62  ;;  %v2222_v4 = vmul.f32 %v5071_v1, %v4767_v16 }
 0x2c9   : > { %v4175_v59 = vpack.c.bf16 %v2028_v17, %v2026_v7  ;;  %v1684_v44 = vpop.permute.xlu0 %1683  ;;  %v4173_v39 = vpack.c.bf16 %v2029_v2, %v2027_v58  ;;  %v4183_v7 = vpack.c.bf16 %v4989_v54, %v4976_v50  ;;  %v4185_v58 = vpack.c.bf16 %v2225_v19, %v2223_v48 }
 0x2ca   : > { %v1690_v0 = vsel %vm382_vm1, %v1684_v44, %v1672_v31  ;;  %v1702_v55 = vsel %vm382_vm1, %v1672_v31, %v1684_v44  ;;  %v4187_v17 = vpack.c.bf16 %v2224_v10, %v2222_v4  ;;  %v4060_v31 = vld [vmem:[%s5680_s3 + $0x20] sm:$0xff] }
 0x2cb   : > { %4174 = vmatprep.subr.bf16.mxu1 %v4173_v39  ;;  %v1707_v2 = vmul.f32 %v1702_v55, %v4621_v12  ;;  %v4193_v55 = vpack.c.bf16 %v2347_v3, %v2345_v49 }
 0x2cc   : > { %v5220_v26 = vpop.permute.xlu1 %2442  ;;  %4176 = vmatpush1.bf16.msra.mxu1 %v4175_v59  ;;  %v1708_v59 = vmul.f32 %v1690_v0, %v4618_v11 }
 0x2cd   : > { %4178 = vmatprep.subr.bf16.mxu1 %v4177_v43  ;;  %v5228_v34 = vpop.permute.xlu0 %2554 }
 0x2cf   : > { %4059 = vmatmul.mubr.msk.f32.vlgmr.msra.gmra.mrb[0].mxu1 %vm1715_vm10, %v4058_v61 }
 0x2d0   : > { %v1670_v56 = vpop.permute.xlu1 %1669  ;;  %4180 = vmatpush1.bf16.msra.mxu1 %v4179_v32  ;;  %2177 = vmatprep.mubr.f32.mxu1 %v5704_v62  ;;  %v2227_v32 = vmul.f32 %v2220_v52, %v4738_v63 }
 0x2d1   : > { %4182 = vmatprep.subr.bf16.mxu1 %v4181_v46  ;;  %v5243_v47 = vpop.permute.xlu0 %2558 }
 0x2d4   : > { %v1682_v1 = vpop.permute.xlu1 %1681  ;;  %4184 = vmatpush1.bf16.msra.mxu1 %v4183_v7  ;;  %v2326_v7 = vsel %vm1145_vm6, %v5141_v41, %v5135_v29 }
 0x2d5   : > { %v1689_v44 = vsel %vm382_vm1, %v1682_v1, %v1670_v56  ;;  %v1701_v39 = vsel %vm382_vm1, %v1670_v56, %v1682_v1  ;;  %4186 = vmatprep.subr.bf16.mxu1 %v4185_v58  ;;  %v2201_v43 = vpop.permute.xlu0 %2200  ;;  %v2342_v58 = vsel %vm1145_vm6, %v5135_v29, %v5141_v41  ;;  %v2348_v1 = vmul.f32 %v2326_v7, %v4800_v30  ;;  %v5709_v7 = vld [vmem:[#allocation10_spill] sm:$0xff] }
 0x2d6   : > { %v1705_v15 = vmul.f32 %v1701_v39, %v4621_v12  ;;  %v1706_v27 = vmul.f32 %v1689_v44, %v4618_v11  ;;  %v2205_v33 = vsel %vm1006_vm5, %v2199_v60, %v2201_v43  ;;  %v2221_v61 = vsel %vm1006_vm5, %v2201_v43, %v2199_v60 }
 0x2d7   : > { %v2228_v19 = vmul.f32 %v2205_v33, %v4767_v16  ;;  %v2229_v46 = vmul.f32 %v2221_v61, %v4738_v63  ;;  %4061 = vmatmul.mubr.msk.f32.vlgmr.msra.gmra.mrb[0].mxu1 %vm1715_vm10, %v4060_v31  ;;  %v2349_v31 = vmul.f32 %v2342_v58, %v4771_v18  ;;  %v2448_v43 = vsel %vm1284_vm7, %v5163_v24, %v5165_v28  ;;  %v5710_v58 = vld [vmem:[#allocation9_spill] sm:$0xff] }
 0x2d8   : > { %v4147_v10 = vpack.c.bf16 %v1707_v2, %v1705_v15  ;;  %v2553_v56 = vpop.permute.xlu1 %2552  ;;  %4188 = vmatpush1.bf16.msra.mxu1 %v4187_v17  ;;  %v4145_v48 = vpack.c.bf16 %v1708_v59, %v1706_v27  ;;  %2299 = vmatprep.mubr.f32.mxu1 %v5704_v62  ;;  %v5705_v59 = vpack.c.bf16 %v5111_v5, %v5108_v57  ;;  %v4064_v57 = vld [vmem:[%s5680_s3 + $0x30] sm:$0xff] }
 0x2d9   : > { %v4191_v60 = vpack.c.bf16 %v2228_v19, %v2226_v8  ;;  %v1688_v4 = vpop.permute.xlu0 %1687  ;;  %v4189_v0 = vpack.c.bf16 %v2229_v46, %v2227_v32  ;;  %v2464_v27 = vsel %vm1284_vm7, %v5165_v28, %v5163_v24  ;;  %v2470_v5 = vmul.f32 %v2448_v43, %v4833_v45  ;;  %v5707_v24 = vld [vmem:[#allocation7_spill] sm:$0xff] }
 0x2da   : > { %4146 = vmatprep.subr.bf16.mxu0 %v4145_v48  ;;  %v2584_v61 = vsel %vm1423_vm8, %v5228_v34, %v2553_v56  ;;  %v5706_v8 = vpack.c.bf16 %v5127_v23, %v5121_v21  ;;  %v5708_v48 = vld [vmem:[#allocation6_spill] sm:$0xff] }
 0x2db   : > { %4148 = vmatpush1.bf16.msra.mxu0 %v4147_v10  ;;  %4190 = vmatprep.subr.bf16.mxu1 %v4189_v0  ;;  %v2471_v49 = vmul.f32 %v2464_v27, %v5708_v48  ;;  %v2589_v23 = vmul.f32 %v2584_v61, %v5707_v24 }
 0x2dc   : > { %v2557_v17 = vpop.permute.xlu1 %2556  ;;  %4192 = vmatpush1.bf16.msra.mxu1 %v4191_v60 }
 0x2dd   : > { %4194 = vmatprep.subr.bf16.mxu1 %v4193_v55  ;;  %v2323_v6 = vpop.permute.xlu0 %2322  ;;  %v2585_v15 = vsel %vm1423_vm8, %v5243_v47, %v2557_v17  ;;  %v2569_v19 = vsel %vm1423_vm8, %v2557_v17, %v5243_v47  ;;  %v5711_v17 = vpack.c.bf16 %v5709_v7, %v5710_v58  ;;  %v2684_v58 = vstv %s4052_s25 }
 0x2de   : > { %v2327_v52 = vsel %vm1145_vm6, %v5212_v35, %v2323_v6  ;;  %v2343_v3 = vsel %vm1145_vm6, %v2323_v6, %v5212_v35  ;;  %v2591_v28 = vmul.f32 %v2585_v15, %v5707_v24 }
 0x2df   : > { %v2350_v29 = vmul.f32 %v2327_v52, %v4800_v30  ;;  %v2351_v41 = vmul.f32 %v2343_v3, %v4771_v18  ;;  %4063 = vmatmul.mubr.msk.f32.vlgmr.msra.gmra.mrb[0].mxu1 %vm1715_vm10, %v4062_v9  ;;  %v5712_v9 = vld [vmem:[#allocation8_spill] sm:$0xff] }
 0x2e0   : > { %v1674_v2 = vpop.permute.xlu1 %1673  ;;  %4196 = vmatpush1.bf16.msra.mxu1 %v5705_v59  ;;  %2421 = vmatprep.mubr.f32.mxu1 %v5704_v62  ;;  %v2590_v6 = vmul.f32 %v2569_v19, %v5712_v9 }
 0x2e1   : > { %v4199_v44 = vpack.c.bf16 %v2350_v29, %v2348_v1  ;;  %v2563_v39 = vpop.permute.xlu0 %2562  ;;  %v4197_v35 = vpack.c.bf16 %v2351_v41, %v2349_v31 }
 0x2e3   : > { %4198 = vmatprep.subr.bf16.mxu1 %v4197_v35 }
 0x2e4   : > { %v1686_v33 = vpop.permute.xlu1 %1685  ;;  %4200 = vmatpush1.bf16.msra.mxu1 %v4199_v44 }
 0x2e5   : > { %4202 = vmatprep.subr.bf16.mxu1 %v5706_v8  ;;  %v2445_v32 = vpop.permute.xlu0 %2444  ;;  %v1703_v60 = vsel %vm382_vm1, %v1674_v2, %v1686_v33  ;;  %v1691_v47 = vsel %vm382_vm1, %v1686_v33, %v1674_v2  ;;  %v4209_v2 = vpack.c.bf16 %v2591_v28, %v2589_v23 }
 0x2e6   : > { %v2449_v46 = vsel %vm1284_vm7, %v5220_v26, %v2445_v32  ;;  %v2465_v10 = vsel %vm1284_vm7, %v2445_v32, %v5220_v26  ;;  %v2568_v26 = vsel %vm1423_vm8, %v2553_v56, %v5228_v34  ;;  %v1709_v31 = vmul.f32 %v1703_v60, %v4621_v12  ;;  %v4068_v60 = vld [vmem:[%s5680_s3 + $0x40] sm:$0xff] }
 0x2e7   : > { %v2472_v0 = vmul.f32 %v2449_v46, %v4833_v45  ;;  %v2473_v21 = vmul.f32 %v2465_v10, %v5708_v48  ;;  %4065 = vmatmul.mubr.msk.f32.vlgmr.msra.gmra.mrb[0].mxu1 %vm1715_vm10, %v4064_v57  ;;  %v1710_v59 = vmul.f32 %v1691_v47, %v4618_v11  ;;  %v2588_v56 = vmul.f32 %v2568_v26, %v5712_v9  ;;  %v4053_v46 = vld [vmem:[%s5680_s3 + $0x8] sm:$0xff] }
 0x2e8   : > { %v2561_v55 = vpop.permute.xlu1 %2560  ;;  %4204 = vmatpush1.bf16.msra.mxu1 %v5711_v17  ;;  %2543 = vmatprep.mubr.f32.mxu1 %v5704_v62 }
 0x2e9   : > { %v4207_v52 = vpack.c.bf16 %v2472_v0, %v2470_v5  ;;  %v1676_v3 = vpop.permute.xlu0 %1675  ;;  %v4205_v1 = vpack.c.bf16 %v2473_v21, %v2471_v49  ;;  %v2570_v44 = vsel %vm1423_vm8, %v2561_v55, %v2563_v39  ;;  %v2586_v43 = vsel %vm1423_vm8, %v2563_v39, %v2561_v55 }
 0x2ea   : > { %v1692_v29 = vsel %vm382_vm1, %v1688_v4, %v1676_v3  ;;  %v1704_v41 = vsel %vm382_vm1, %v1676_v3, %v1688_v4  ;;  %v4066_v4 = vld [vmem:[%s5680_s3 + $0x38] sm:$0xff]  ;;  %v4211_v5 = vpack.c.bf16 %v2590_v6, %v2588_v56  ;;  %v2592_v61 = vmul.f32 %v2570_v44, %v5712_v9  ;;  %v3792_v44 = vld [vmem:[%s5683_s6 + $0x8] sm:$0xff]  ;;  %v3793_v56 = vld [vmem:[%s5683_s6 + $0x10] sm:$0xff] }
 0x2eb   : > { %v1711_v35 = vmul.f32 %v1704_v41, %v4621_v12  ;;  %v1712_v34 = vmul.f32 %v1692_v29, %v4618_v11  ;;  %4206 = vmatprep.subr.bf16.mxu1 %v4205_v1  ;;  %v2593_v19 = vmul.f32 %v2586_v43, %v5707_v24 }
 0x2ec   : > { %v2565_v15 = vpop.permute.xlu1 %2564  ;;  %4208 = vmatpush1.bf16.msra.mxu1 %v4207_v52 }
 0x2ed   : > { %v4151_v27 = vpack.c.bf16 %v1711_v35, %v1709_v31  ;;  %4210 = vmatprep.subr.bf16.mxu1 %v4209_v2  ;;  %v2567_v33 = vpop.permute.xlu0 %2566  ;;  %v4149_v57 = vpack.c.bf16 %v1712_v34, %v1710_v59  ;;  %v4408_v31 = vld [vmem:[%s4567_s28] sm:$0xff]  ;;  %v4409_v2 = vld [vmem:[%s4567_s28 + $0x8] sm:$0xff]  ;;  %v3794_v34 = vld [vmem:[%s5683_s6 + $0x18] sm:$0xff] }
 0x2ee   : > { %v2571_v8 = vsel %vm1423_vm8, %v2565_v15, %v2567_v33  ;;  %v2587_v32 = vsel %vm1423_vm8, %v2567_v33, %v2565_v15  ;;  %v3791_v35 = vld [vmem:[%s5683_s6] sm:$0xff] }
 0x2ef   : > { %v2594_v39 = vmul.f32 %v2571_v8, %v5712_v9  ;;  %v2595_v28 = vmul.f32 %v2587_v32, %v5707_v24  ;;  %4150 = vmatprep.subr.bf16.mxu0 %v4149_v57  ;;  %4067 = vmatmul.mubr.msk.f32.vlgmr.msra.gmra.mrb[0].mxu1 %vm1715_vm10, %v4066_v4 }
 0x2f0   : > { %4152 = vmatpush1.bf16.msra.mxu0 %v4151_v27  ;;  %4212 = vmatpush1.bf16.msra.mxu1 %v4211_v5 }
 0x2f1   : > { %v4215_v10 = vpack.c.bf16 %v2594_v39, %v2592_v61  ;;  %v4213_v49 = vpack.c.bf16 %v2595_v28, %v2593_v19  ;;  %2665 = vmatprep.mubr.f32.mxu1 %v5704_v62  ;;  %v4083_v61 = vld [vmem:[%s5682_s5 + $0x40] sm:$0xff] }
 0x2f3   : > { %4214 = vmatprep.subr.bf16.mxu1 %v4213_v49  ;;  %4054 = vmatmul.mubr.msk.f32.vlgmr.msra.gmra.mrb[8].mxu0 %vm1715_vm10, %v4053_v46 }
 0x2f4   : > { %4216 = vmatpush1.bf16.msra.mxu1 %v4215_v10  ;;  %2801 = vmatprep.mubr.f32.mxu0 %v5704_v62 }
 0x2f7   : > { %4069 = vmatmul.mubr.msk.f32.vlgmr.msra.gmra.mrb[0].mxu1 %vm1715_vm10, %v4068_v60  ;;  %v4086_v60 = vld [vmem:[%s5682_s5 + $0x58] sm:$0xff] }
 0x2f8   : > { %3019 = vmatprep.mubr.f32.mxu1 %v5704_v62 }
 0x2fd   : > { %v2678_v7 = vpop.permute.xlu1 %2677 }
 0x3c6   : > { %v1785_v0 = vpop.f32.mrb[8].mxu0 }
 0x3c7   : > { %v1787_v21 = vpop.f32.mrb[9].mxu0 }
 0x3ca   : > { %v2667_v23 = vpop.f32.mrb[0].mxu1 }
 0x3cb   : > { %v4217_v47 = vadd.f32 %v2667_v23, %v1785_v0  ;;  %v2669_v55 = vpop.f32.mrb[1].mxu1 }
 0x3cc   : > { %v4218_v17 = vadd.f32 %v2669_v55, %v1787_v21 }
 0x3cd   : > { %v2680_v26 = vadd.f32 %v4217_v47, %v2678_v7 }
 0x3ce   : > { %v2681_v6 = vadd.f32 %v4218_v17, %v2678_v7  ;;  %v4091_v17 = vld [vmem:[%s5682_s5 + $0x60] sm:$0xff] }
 0x3cf   : > { %vm2682_vm11 = vcmp.ge.f32.partialorder %v2680_v26, 0.0  ;;  %v2685_v52 = vmul.f32 %v2684_v58, %v2680_v26 }
 0x3d0   : > { %vm2683_vm12 = vcmp.ge.f32.partialorder %v2681_v6, 0.0  ;;  %v2686_v3 = vmul.f32 %v2684_v58, %v2681_v6 }
 0x3d1   : > { %v2687_v1 = vsel %vm2682_vm11, %v2680_v26, %v2685_v52  ;;  %v4071_v26 = vld [vmem:[%s5682_s5 + $0x20] sm:$0xff]  ;;  %v4092_v52 = vld [vmem:[%s5682_s5 + $0x68] sm:$0xff] }
 0x3d2   : > { %v5368_v29 = vsub.f32 %v2687_v1, %v4408_v31  ;;  %v2688_v41 = vsel %vm2683_vm12, %v2681_v6, %v2686_v3  ;;  %v4072_v3 = vld [vmem:[%s5682_s5 + $0x28] sm:$0xff] }
 0x3d3   : > { %v2690_v59 = vsub.f32 %v2688_v41, %v4409_v2  ;;  %v4093_v2 = vld [vmem:[%s5682_s5 + $0x70] sm:$0xff] }
 0x3d4   : > { %2930 = vrot.lane.b32.xlu1 %v5368_v29, %s4457_s14 }
 0x3d5   : > { %2927 = vrot.lane.b32.xlu0 %v2690_v59, %s4457_s14 }
 0x3d8   : > { %3055 = vrot.lane.b32.xlu1 %v5368_v29, %s4458_s15 }
 0x3d9   : > { %3052 = vrot.lane.b32.xlu0 %v2690_v59, %s4458_s15 }
 0x3dc   : > { %3293 = vrot.lane.b32.xlu1 %v2690_v59, %s4459_s18 }
 0x3dd   : > { %3291 = vrot.lane.b32.xlu0 %v5368_v29, %s4459_s18 }
 0x3e0   : > { %3418 = vrot.lane.b32.xlu1 %v2690_v59, %s4460_s19 }
 0x3e1   : > { %3416 = vrot.lane.b32.xlu0 %v5368_v29, %s4460_s19  ;;  %s4070_s19 = sld [smem:[#allocation2 + $0x2]] }
 0x3e4   : > { %2712 = vrot.lane.b32.xlu1 %v5368_v29, %s4456_s11 }
 0x3e5   : > { %2709 = vrot.lane.b32.xlu0 %v2690_v59, %s4456_s11 }
 0x3e8   : > { %3543 = vrot.lane.b32.xlu1 %v2690_v59, %s4461_s20 }
 0x3e9   : > { %3541 = vrot.lane.b32.xlu0 %v5368_v29, %s4461_s20 }
 0x3ec   : > { %2697 = vrot.lane.b32.xlu1 %v5368_v29, %s4455_s29 }
 0x3ed   : > { %2693 = vrot.lane.b32.xlu0 %v2690_v59, %s4455_s29  ;;  %s334_s29 = sand.u32 1, %s4443_s30  }
 0x3ee   : > { %s3974_s20 = sshll.u32 %s334_s29, 6 }
 0x3ef   : > { %s5637_s30 = scalar_lea.vmem [#allocation4], %s3974_s20 }
 0x3f0   : > { %3668 = vrot.lane.b32.xlu1 %v2690_v59, %s4462_s21 }
 0x3f1   : > { %3666 = vrot.lane.b32.xlu0 %v5368_v29, %s4462_s21  ;;  %s4144_s21 = sshll.u32 (%p4539_p4), %s4527_s12, 4 }
 0x3f2   : > { %s3873_s22 = scalar_lea.vmem (%p4539_p4), %s5686_s9, %s4144_s21 }
 0x3f4   : > { %3802 = vperm.xlu1 %4407, %v3792_v44  }
 0x3f5   : > { %3797 = vperm.xlu0 %4406, %v3791_v35  }
 0x3f8   : > { %3812 = vperm.xlu1 %4407, %v3794_v34   ;;  %v4099_v34 = vld [vmem:[%s5682_s5 + $0x80] sm:$0xff] }
 0x3f9   : > { %3807 = vperm.xlu0 %4406, %v3793_v56   ;;  %v2705_v56 = vld [vmem:[%s5682_s5] sm:$0xff] }
 0x446   : > { %v2931_v43 = vpop.permute.xlu1 %2930 }
 0x447   : > { %v2928_v15 = vpop.permute.xlu0 %2927 }
 0x448   : > { %v2932_v4 = vsel %vm615_vm2, %v2931_v43, %v2928_v15  ;;  %v2935_v27 = vsel %vm615_vm2, %v2928_v15, %v2931_v43 }
 0x449   : > { %v2936_v33 = vmul.f32 %v2935_v27, %v4667_v38  ;;  %v2937_v57 = vmul.f32 %v2932_v4, %v4640_v25  ;;  %v4084_v25 = vld [vmem:[%s5682_s5 + $0x48] sm:$0xff] }
 0x44a   : > { %v3056_v5 = vpop.permute.xlu1 %3055  ;;  %v4100_v4 = vld [vmem:[%s5682_s5 + $0x88] sm:$0xff] }
 0x44b   : > { %2955 = vmatprep.subr.mxu1 %v2937_v57  ;;  %v3053_v8 = vpop.permute.xlu0 %3052  ;;  %v2706_v27 = vld [vmem:[%s5682_s5 + $0x8] sm:$0xff]  ;;  %v2708_v57 = vld [vmem:[%s5682_s5 + $0x18] sm:$0xff] }
 0x44c   : > { %v3057_v32 = vsel %vm754_vm4, %v3056_v5, %v3053_v8  ;;  %v3060_v19 = vsel %vm754_vm4, %v3053_v8, %v3056_v5  ;;  %2956 = vmatpush1.msra.mxu1 %v2936_v33  ;;  %v4102_v33 = vld [vmem:[%s5682_s5 + $0x98] sm:$0xff]  ;;  %v4107_v8 = vld [vmem:[%s5682_s5 + $0xa0] sm:$0xff] }
 0x44d   : > { %v3061_v39 = vmul.f32 %v3060_v19, %v4709_v53  ;;  %v3062_v28 = vmul.f32 %v3057_v32, %v4671_v40  ;;  %4087 = vmatmul.mubr.msk.f32.vlgmr.msra.gmra.mrb[2].mxu1 %vm407_vm3, %v4083_v61  ;;  %v4085_v40 = vld [vmem:[%s5682_s5 + $0x50] sm:$0xff] }
 0x44e   : > { %v3294_v38 = vpop.permute.xlu1 %3293  ;;  %3025 = vmatprep.mubr.f32.mxu1 %v5704_v62 }
 0x44f   : > { %3080 = vmatprep.subr.mxu1 %v3062_v28  ;;  %v3292_v46 = vpop.permute.xlu0 %3291 }
 0x450   : > { %3081 = vmatpush1.msra.mxu1 %v3061_v39  ;;  %v3299_v7 = vsel %vm1006_vm5, %v3294_v38, %v3292_v46  ;;  %v3295_v44 = vsel %vm1006_vm5, %v3292_v46, %v3294_v38  ;;  %v4108_v39 = vld [vmem:[%s5682_s5 + $0xa8] sm:$0xff] }
 0x451   : > { %4088 = vmatmul.mubr.msk.f32.gmra.mrb[4].mxu1 %vm407_vm3, %v4084_v25  ;;  %3194 = vmatprep.subr.mxu1 %v2690_v59  ;;  %v4073_v59 = vld [vmem:[%s5682_s5 + $0x30] sm:$0xff]  ;;  %v3300_v43 = vmul.f32 %v3295_v44, %v4767_v16 }
 0x452   : > { %v5424_v10 = vpop.permute.xlu1 %3418  ;;  %3031 = vmatprep.mubr.f32.mxu1 %v5704_v62  ;;  %v4101_v16 = vld [vmem:[%s5682_s5 + $0x90] sm:$0xff] }
 0x453   : > { %v5430_v53 = vpop.permute.xlu0 %3416 }
 0x454   : > { %v3424_v35 = vsel %vm1145_vm6, %v5424_v10, %v5430_v53  ;;  %v3420_v5 = vsel %vm1145_vm6, %v5430_v53, %v5424_v10  ;;  %v4115_v10 = vld [vmem:[%s5682_s5 + $0xc0] sm:$0xff] }
 0x455   : > { %4089 = vmatmul.mubr.msk.f32.gmra.mrb[6].mxu1 %vm407_vm3, %v4085_v40  ;;  %v3426_v15 = vmul.f32 %v3424_v35, %v4771_v18  ;;  %v2707_v18 = vld [vmem:[%s5682_s5 + $0x10] sm:$0xff]  ;;  %v3425_v32 = vmul.f32 %v3420_v5, %v4800_v30 }
 0x456   : > { %v2713_v49 = vpop.permute.xlu1 %2712  ;;  %3037 = vmatprep.mubr.f32.mxu1 %v5704_v62  ;;  %v4109_v30 = vld [vmem:[%s5682_s5 + $0xb0] sm:$0xff] }
 0x457   : > { %v2710_v0 = vpop.permute.xlu0 %2709 }
 0x458   : > { %v2714_v21 = vsel %vm382_vm1, %v2713_v49, %v2710_v0  ;;  %v2717_v23 = vsel %vm382_vm1, %v2710_v0, %v2713_v49  ;;  %v4116_v49 = vld [vmem:[%s5682_s5 + $0xc8] sm:$0xff]  ;;  %v4123_v0 = vld [vmem:[%s5682_s5 + $0xe0] sm:$0xff] }
 0x459   : > { %v2718_v47 = vmul.f32 %v2717_v23, %v4621_v12  ;;  %v2719_v55 = vmul.f32 %v2714_v21, %v4618_v11  ;;  %4090 = vmatmul.mubr.msk.f32.gmra.mrb[8].mxu1 %vm407_vm3, %v4086_v60  ;;  %v3301_v11 = vmul.f32 %v3299_v7, %v4738_v63  ;;  %v4124_v23 = vld [vmem:[%s5682_s5 + $0xe8] sm:$0xff] }
 0x45a   : > { %v5443_v58 = vpop.permute.xlu1 %3543  ;;  %3144 = vmatprep.mubr.f32.mxu1 %v5704_v62  ;;  %v4132_v7 = vld [vmem:[%s5682_s5 + $0x108] sm:$0xff] }
 0x45b   : > { %2737 = vmatprep.subr.mxu0 %v2719_v55  ;;  %v5452_v12 = vpop.permute.xlu0 %3541  ;;  %v4131_v55 = vld [vmem:[%s5682_s5 + $0x100] sm:$0xff] }
 0x45c   : > { %2738 = vmatpush1.msra.mxu0 %v2718_v47  ;;  %v3549_v61 = vsel %vm1284_vm7, %v5443_v58, %v5452_v12  ;;  %v3545_v25 = vsel %vm1284_vm7, %v5452_v12, %v5443_v58  ;;  %v4125_v47 = vld [vmem:[%s5682_s5 + $0xf0] sm:$0xff] }
 0x45d   : > { %4095 = vmatmul.mubr.msk.f32.vlgmr.msra.gmra.mrb[2].mxu1 %vm407_vm3, %v4091_v17  ;;  %4075 = vmatmul.mubr.msk.f32.vlgmr.msra.gmra.mrb[10].mxu0 %vm407_vm3, %v4071_v26  ;;  %v3551_v19 = vmul.f32 %v3549_v61, %v5708_v48  ;;  %v4110_v48 = vld [vmem:[%s5682_s5 + $0xb8] sm:$0xff]  ;;  %v3550_v40 = vmul.f32 %v3545_v25, %v4833_v45  ;;  %v4117_v45 = vld [vmem:[%s5682_s5 + $0xd0] sm:$0xff] }
 0x45e   : > { %3195 = vmatpush1.msra.mxu1 %v5368_v29  ;;  %v2698_v6 = vpop.permute.xlu1 %2697  ;;  %3150 = vmatprep.mubr.f32.mxu1 %v5704_v62  ;;  %v4133_v58 = vld [vmem:[%s5682_s5 + $0x110] sm:$0xff]  ;;  %v4134_v17 = vld [vmem:[%s5682_s5 + $0x118] sm:$0xff] }
 0x45f   : > { %3319 = vmatprep.subr.mxu1 %v3301_v11  ;;  %v2694_v1 = vpop.permute.xlu0 %2693  ;;  %2807 = vmatprep.mubr.f32.mxu0 %v5704_v62 }
 0x460   : > { %v2699_v63 = vsel %vm354_vm0, %v2698_v6, %v2694_v1  ;;  %v2702_v31 = vsel %vm354_vm0, %v2694_v1, %v2698_v6 }
 0x461   : > { %v2703_v29 = vmul.f32 %v2702_v31, %v4627_v14  ;;  %v2704_v41 = vmul.f32 %v2699_v63, %v4624_v13  ;;  %4096 = vmatmul.mubr.msk.f32.gmra.mrb[4].mxu1 %vm407_vm3, %v4092_v52  ;;  %4076 = vmatmul.mubr.msk.f32.gmra.mrb[12].mxu0 %vm407_vm3, %v4072_v3  ;;  %v4094_v13 = vld [vmem:[%s5682_s5 + $0x78] sm:$0xff] }
 0x462   : > { %3156 = vmatprep.mubr.f32.mxu1 %v5704_v62  ;;  %2813 = vmatprep.mubr.f32.mxu0 %v5704_v62  ;;  %v4074_v14 = vld [vmem:[%s5682_s5 + $0x38] sm:$0xff]  ;;  %v3669_v28 = vpop.permute.xlu1 %3668 }
 0x463   : > { %2838 = vmatprep.subr.mxu0 %v2704_v41  ;;  %v3667_v38 = vpop.permute.xlu0 %3666 }
 0x464   : > { %2839 = vmatpush1.msra.mxu0 %v2703_v29  ;;  %v3674_v46 = vsel %vm1423_vm8, %v3669_v28, %v3667_v38  ;;  %v3670_v60 = vsel %vm1423_vm8, %v3667_v38, %v3669_v28 }
 0x465   : > { %4097 = vmatmul.mubr.msk.f32.gmra.mrb[6].mxu1 %vm407_vm3, %v4093_v2  ;;  %4077 = vmatmul.mubr.msk.f32.gmra.mrb[14].mxu0 %vm407_vm3, %v4073_v59  ;;  %v3676_v53 = vmul.f32 %v3674_v46, %v5707_v24  ;;  %v4118_v24 = vld [vmem:[%s5682_s5 + $0xd8] sm:$0xff]  ;;  %v3675_v21 = vmul.f32 %v3670_v60, %v5712_v9  ;;  %v3831_v2 = vstv %s4070_s19 }
 0x466   : > { %3162 = vmatprep.mubr.f32.mxu1 %v5704_v62  ;;  %2819 = vmatprep.mubr.f32.mxu0 %v5704_v62  ;;  %v4126_v9 = vld [vmem:[%s5682_s5 + $0xf8] sm:$0xff] }
 0x469   : > { %4098 = vmatmul.mubr.msk.f32.gmra.mrb[8].mxu1 %vm407_vm3, %v4094_v13  ;;  %4078 = vmatmul.mubr.msk.f32.gmra.mrb[16].mxu0 %vm407_vm3, %v4074_v14 }
 0x46a   : > { %3258 = vmatprep.mubr.f32.mxu1 %v5704_v62  ;;  %2902 = vmatprep.mubr.f32.mxu0 %v5704_v62 }
 0x46d   : > { %4103 = vmatmul.mubr.msk.f32.vlgmr.msra.gmra.mrb[2].mxu1 %vm407_vm3, %v4099_v34  ;;  %4079 = vmatmul.mubr.msk.f32.vlgmr.msra.gmra.mrb[10].mxu0 %vm407_vm3, %v2705_v56 }
 0x46e   : > { %3320 = vmatpush1.msra.mxu1 %v3300_v43  ;;  %3264 = vmatprep.mubr.f32.mxu1 %v5704_v62 }
 0x46f   : > { %3444 = vmatprep.subr.mxu1 %v3426_v15  ;;  %2908 = vmatprep.mubr.f32.mxu0 %v5704_v62 }
 0x471   : > { %4104 = vmatmul.mubr.msk.f32.gmra.mrb[4].mxu1 %vm407_vm3, %v4100_v4  ;;  %4080 = vmatmul.mubr.msk.f32.gmra.mrb[12].mxu0 %vm407_vm3, %v2706_v27 }
 0x472   : > { %3270 = vmatprep.mubr.f32.mxu1 %v5704_v62  ;;  %2914 = vmatprep.mubr.f32.mxu0 %v5704_v62 }
 0x473   : > { %v3803_v43 = vpop.permute.xlu1 %3802 }
 0x475   : > { %4105 = vmatmul.mubr.msk.f32.gmra.mrb[6].mxu1 %vm407_vm3, %v4101_v16  ;;  %4081 = vmatmul.mubr.msk.f32.gmra.mrb[14].mxu0 %vm407_vm3, %v2707_v18 }
 0x476   : > { %3276 = vmatprep.mubr.f32.mxu1 %v5704_v62  ;;  %2920 = vmatprep.mubr.f32.mxu0 %v5704_v62 }
 0x479   : > { %4106 = vmatmul.mubr.msk.f32.gmra.mrb[8].mxu1 %vm407_vm3, %v4102_v33  ;;  %4082 = vmatmul.mubr.msk.f32.gmra.mrb[16].mxu0 %vm407_vm3, %v2708_v57 }
 0x47a   : > { %3383 = vmatprep.mubr.f32.mxu1 %v5704_v62 }
 0x47d   : > { %4111 = vmatmul.mubr.msk.f32.vlgmr.msra.gmra.mrb[2].mxu1 %vm407_vm3, %v4107_v8 }
 0x47e   : > { %3445 = vmatpush1.msra.mxu1 %v3425_v32  ;;  %3389 = vmatprep.mubr.f32.mxu1 %v5704_v62 }
 0x47f   : > { %3569 = vmatprep.subr.mxu1 %v3551_v19 }
 0x481   : > { %4112 = vmatmul.mubr.msk.f32.gmra.mrb[4].mxu1 %vm407_vm3, %v4108_v39 }
 0x482   : > { %3395 = vmatprep.mubr.f32.mxu1 %v5704_v62 }
 0x485   : > { %4113 = vmatmul.mubr.msk.f32.gmra.mrb[6].mxu1 %vm407_vm3, %v4109_v30 }
 0x486   : > { %3401 = vmatprep.mubr.f32.mxu1 %v5704_v62 }
 0x489   : > { %4114 = vmatmul.mubr.msk.f32.gmra.mrb[8].mxu1 %vm407_vm3, %v4110_v48 }
 0x48a   : > { %3508 = vmatprep.mubr.f32.mxu1 %v5704_v62 }
 0x48d   : > { %4119 = vmatmul.mubr.msk.f32.vlgmr.msra.gmra.mrb[2].mxu1 %vm407_vm3, %v4115_v10 }
 0x48e   : > { %3570 = vmatpush1.msra.mxu1 %v3550_v40  ;;  %3514 = vmatprep.mubr.f32.mxu1 %v5704_v62 }
 0x48f   : > { %3694 = vmatprep.subr.mxu1 %v3676_v53 }
 0x491   : > { %4120 = vmatmul.mubr.msk.f32.gmra.mrb[4].mxu1 %vm407_vm3, %v4116_v49 }
 0x492   : > { %3520 = vmatprep.mubr.f32.mxu1 %v5704_v62 }
 0x495   : > { %4121 = vmatmul.mubr.msk.f32.gmra.mrb[6].mxu1 %vm407_vm3, %v4117_v45  ;;  %v3813_v45 = vpop.permute.xlu1 %3812 }
 0x496   : > { %3526 = vmatprep.mubr.f32.mxu1 %v5704_v62 }
 0x499   : > { %4122 = vmatmul.mubr.msk.f32.gmra.mrb[8].mxu1 %vm407_vm3, %v4118_v24 }
 0x49a   : > { %3633 = vmatprep.mubr.f32.mxu1 %v5704_v62 }
 0x49d   : > { %4127 = vmatmul.mubr.msk.f32.vlgmr.msra.gmra.mrb[2].mxu1 %vm407_vm3, %v4123_v0 }
 0x49e   : > { %3695 = vmatpush1.msra.mxu1 %v3675_v21  ;;  %3639 = vmatprep.mubr.f32.mxu1 %v5704_v62 }
 0x4a1   : > { %4128 = vmatmul.mubr.msk.f32.gmra.mrb[4].mxu1 %vm407_vm3, %v4124_v23 }
 0x4a2   : > { %3645 = vmatprep.mubr.f32.mxu1 %v5704_v62 }
 0x4a5   : > { %4129 = vmatmul.mubr.msk.f32.gmra.mrb[6].mxu1 %vm407_vm3, %v4125_v47 }
 0x4a6   : > { %3651 = vmatprep.mubr.f32.mxu1 %v5704_v62 }
 0x4a9   : > { %4130 = vmatmul.mubr.msk.f32.gmra.mrb[8].mxu1 %vm407_vm3, %v4126_v9 }
 0x4aa   : > { %3758 = vmatprep.mubr.f32.mxu1 %v5704_v62 }
 0x4ad   : > { %4135 = vmatmul.mubr.msk.f32.vlgmr.msra.gmra.mrb[2].mxu1 %vm407_vm3, %v4131_v55 }
 0x4ae   : > { %3764 = vmatprep.mubr.f32.mxu1 %v5704_v62 }
 0x4b1   : > { %4136 = vmatmul.mubr.msk.f32.gmra.mrb[4].mxu1 %vm407_vm3, %v4132_v7 }
 0x4b2   : > { %3770 = vmatprep.mubr.f32.mxu1 %v5704_v62 }
 0x4b5   : > { %4137 = vmatmul.mubr.msk.f32.gmra.mrb[6].mxu1 %vm407_vm3, %v4133_v58 }
 0x4b6   : > { %3776 = vmatprep.mubr.f32.mxu1 %v5704_v62  ;;  %v3798_v62 = vpop.permute.xlu0 %3797 }
 0x4b9   : > { %4138 = vmatmul.mubr.msk.f32.gmra.mrb[8].mxu1 %vm407_vm3, %v4134_v17 }
 0x4ba   : > { %v3808_v39 = vpop.permute.xlu0 %3807 }
 0x540   : > { %v2904_v26 = vpop.f32.mrb[10].mxu0 }
 0x541   : > { %v2906_v12 = vpop.f32.mrb[11].mxu0 }
 0x544   : > { %v2910_v11 = vpop.f32.mrb[12].mxu0 }
 0x545   : > { %v2912_v6 = vpop.f32.mrb[13].mxu0 }
 0x548   : > { %v2916_v52 = vpop.f32.mrb[14].mxu0 }
 0x549   : > { %v2918_v3 = vpop.f32.mrb[15].mxu0 }
 0x54c   : > { %v2922_v1 = vpop.f32.mrb[16].mxu0 }
 0x54d   : > { %v2924_v63 = vpop.f32.mrb[17].mxu0 }
 0x580   : > { %v3760_v31 = vpop.f32.mrb[2].mxu1 }
 0x581   : > { %v4219_v29 = vadd.f32 %v3760_v31, %v2904_v26  ;;  %v3762_v41 = vpop.f32.mrb[3].mxu1 }
 0x582   : > { %v4220_v59 = vadd.f32 %v3762_v41, %v2906_v12 }
 0x583   : > { %v3815_v13 = vadd.f32 %v4219_v29, %v3798_v62 }
 0x584   : > { %v3816_v14 = vadd.f32 %v4220_v59, %v3798_v62  ;;  %v3766_v44 = vpop.f32.mrb[4].mxu1 }
 0x585   : > { %vm3823_vm0 = vcmp.ge.f32.partialorder %v3815_v13, 0.0  ;;  %v3832_v35 = vmul.f32 %v3831_v2, %v3815_v13  ;;  %v4221_v34 = vadd.f32 %v3766_v44, %v2910_v11  ;;  %v3768_v56 = vpop.f32.mrb[5].mxu1 }
 0x586   : > { %vm3824_vm1 = vcmp.ge.f32.partialorder %v3816_v14, 0.0  ;;  %v3833_v15 = vmul.f32 %v3831_v2, %v3816_v14  ;;  %v4222_v4 = vadd.f32 %v3768_v56, %v2912_v6 }
 0x587   : > { %v3840_v27 = vsel %vm3823_vm0, %v3815_v13, %v3832_v35  ;;  %v3817_v16 = vadd.f32 %v4221_v34, %v3803_v43 }
 0x588   : > { %v3848_v18 = vadd.f32 %v3840_v27, %v4913_v20  ;;  %v3841_v33 = vsel %vm3824_vm1, %v3816_v14, %v3833_v15  ;;  %v3818_v57 = vadd.f32 %v4222_v4, %v3803_v43  ;;  %v3772_v5 = vpop.f32.mrb[6].mxu1 }
 0x589   : > { %v3849_v61 = vadd.f32 %v3841_v33, %v4915_v22  ;;  %vm3825_vm2 = vcmp.ge.f32.partialorder %v3817_v16, 0.0  ;;  %v3834_v8 = vmul.f32 %v3831_v2, %v3817_v16  ;;  %v4223_v32 = vadd.f32 %v3772_v5, %v2916_v52  ;;  %v3774_v19 = vpop.f32.mrb[7].mxu1 }
 0x58a   : > { %3856 = vst [vmem:[%s5637_s30] sm:$0xff] %v3848_v18  ;;  %vm3826_vm3 = vcmp.ge.f32.partialorder %v3818_v57, 0.0  ;;  %v3835_v30 = vmul.f32 %v3831_v2, %v3818_v57  ;;  %v4224_v48 = vadd.f32 %v3774_v19, %v2918_v3 }
 0x58b   : > { %3857 = vst [vmem:[%s5637_s30 + $0x8] sm:$0xff] %v3849_v61  ;;  %v3842_v20 = vsel %vm3825_vm2, %v3817_v16, %v3834_v8  ;;  %v3819_v28 = vadd.f32 %v4223_v32, %v3808_v39 }
 0x58c   : > { %v3850_v22 = vadd.f32 %v3842_v20, %v4931_v36  ;;  %v3843_v38 = vsel %vm3826_vm3, %v3818_v57, %v3835_v30  ;;  %v3820_v25 = vadd.f32 %v4224_v48, %v3808_v39  ;;  %v3778_v46 = vpop.f32.mrb[8].mxu1 }
 0x58d   : > { %v3851_v10 = vadd.f32 %v3843_v38, %v4948_v42  ;;  %vm3827_vm4 = vcmp.ge.f32.partialorder %v3819_v28, 0.0  ;;  %v3836_v40 = vmul.f32 %v3831_v2, %v3819_v28  ;;  %v4225_v53 = vadd.f32 %v3778_v46, %v2922_v1  ;;  %v3780_v49 = vpop.f32.mrb[9].mxu1 }
 0x58e   : > { %3858 = vst [vmem:[%s5637_s30 + $0x10] sm:$0xff] %v3850_v22  ;;  %vm3828_vm5 = vcmp.ge.f32.partialorder %v3820_v25, 0.0  ;;  %v3837_v24 = vmul.f32 %v3831_v2, %v3820_v25  ;;  %v4226_v60 = vadd.f32 %v3780_v49, %v2924_v63 }
 0x58f   : > { %3859 = vst [vmem:[%s5637_s30 + $0x18] sm:$0xff] %v3851_v10  ;;  %v3844_v0 = vsel %vm3827_vm4, %v3819_v28, %v3836_v40  ;;  %v3821_v36 = vadd.f32 %v4225_v53, %v3813_v45 }
 0x590   : > { %v3852_v21 = vadd.f32 %v3844_v0, %v4976_v50  ;;  %v3845_v23 = vsel %vm3828_vm5, %v3820_v25, %v3837_v24  ;;  %v3822_v42 = vadd.f32 %v4226_v60, %v3813_v45 }
 0x591   : > { %v3853_v47 = vadd.f32 %v3845_v23, %v4978_v51  ;;  %vm3829_vm6 = vcmp.ge.f32.partialorder %v3821_v36, 0.0  ;;  %v3838_v9 = vmul.f32 %v3831_v2, %v3821_v36  ;;  %3870 = sbr.rel (!%p4539_p4) target bundleno = 1440 (0x5a0), region = 64  ;;  %v3886_v50 = vld [vmem:[%s5637_s30] sm:$0xff] (%p4539_p4) }
 0x592   : > { %3860 = vst [vmem:[%s5637_s30 + $0x20] sm:$0xff] %v3852_v21  ;;  %vm3830_vm7 = vcmp.ge.f32.partialorder %v3822_v42, 0.0  ;;  %v3839_v55 = vmul.f32 %v3831_v2, %v3822_v42  ;;  %v3888_v51 = vld [vmem:[%s5637_s30 + $0x8] sm:$0xff] (%p4539_p4)  ;;  %3887 = vst [vmem:[%s3873_s22] sm:$0xff] (%p4539_p4), %v3886_v50 }
 0x593   : > { %3861 = vst [vmem:[%s5637_s30 + $0x28] sm:$0xff] %v3853_v47  ;;  %v3846_v7 = vsel %vm3829_vm6, %v3821_v36, %v3838_v9  ;;  %3889 = vst [vmem:[%s3873_s22 + $0x8] sm:$0xff] (%p4539_p4), %v3888_v51 }
 0x594   : > { %v3854_v58 = vadd.f32 %v3846_v7, %v4989_v54  ;;  %v3847_v17 = vsel %vm3830_vm7, %v3822_v42, %v3839_v55 }
 0x595   : > { %v3855_v26 = vadd.f32 %v3847_v17, %v4933_v37  ;;  %v3890_v54 = vld [vmem:[%s5637_s30 + $0x10] sm:$0xff] (%p4539_p4) }
 0x596   : > { %3862 = vst [vmem:[%s5637_s30 + $0x30] sm:$0xff] %v3854_v58  ;;  %v3892_v37 = vld [vmem:[%s5637_s30 + $0x18] sm:$0xff] (%p4539_p4)  ;;  %3891 = vst [vmem:[%s3873_s22 + $0x20] sm:$0xff] (%p4539_p4), %v3890_v54 }
 0x597   : > { %3863 = vst [vmem:[%s5637_s30 + $0x38] sm:$0xff] %v3855_v26  ;;  %3893 = vst [vmem:[%s3873_s22 + $0x28] sm:$0xff] (%p4539_p4), %v3892_v37 }
 0x599   : > { %v3894_v12 = vld [vmem:[%s5637_s30 + $0x20] sm:$0xff] }
 0x59a   : > { %v3896_v11 = vld [vmem:[%s5637_s30 + $0x28] sm:$0xff]  ;;  %3895 = vst [vmem:[%s3873_s22 + $0x40] sm:$0xff] %v3894_v12 }
 0x59b   : > { %3897 = vst [vmem:[%s3873_s22 + $0x48] sm:$0xff] %v3896_v11 }
 0x59d   : > { %v3898_v6 = vld [vmem:[%s5637_s30 + $0x30] sm:$0xff] }
 0x59e   : > { %v3900_v52 = vld [vmem:[%s5637_s30 + $0x38] sm:$0xff]  ;;  %3899 = vst [vmem:[%s3873_s22 + $0x60] sm:$0xff] %v3898_v6 }
 0x59f   : > { %3901 = vst [vmem:[%s3873_s22 + $0x68] sm:$0xff] %v3900_v52 }
 0x5a0 PF: > { %p17_p4 = scmp.ge.s32.totalorder %s4529_s13, 4   ;;  %s5713_s30 = smov %s4447_s10 }
 0x5a1   : > { %s5714_s10 = smov %s4537_s16  ;;  %s5715_s11 = smov %s4529_s13 }
 0x5a2   :  { %19 = sbr.rel (!%p17_p4) target bundleno = 2 (0x2), region = 145 }
 0x5a9   :  { %3917 = vsyncpa [#allocation3], 1 }
 0x5aa   :  { %3919 = vsyncpa [#allocation3 + $0x1], 1 }

</bundles_post_ra>
